<compile_context>
chip_gen: v6e
topology: v6e:2x2x1
jax: 0.10.0
libtpu: 0.0.40
codegen_flags: <defaults>
</compile_context>

<pallas_src>
import jax
import jax.numpy as jnp
from jax.experimental import pallas as pl
from jax.experimental.pallas import tpu as pltpu

MXU_DTYPE = jnp.bfloat16   # matmul input dtype (accumulation stays f32)
CIN_PAD = 8                # pad the 3 RGB channels up to a sublane-friendly 8


def _zero_border(p_ref):
    """Zero the 1-pixel spatial border of a (NB, Hp, Wp, C) padded scratch."""
    NB, Hp, Wp, C = p_ref.shape
    zrow = jnp.zeros((NB, 1, Wp, C), p_ref.dtype)
    zcol = jnp.zeros((NB, Hp, 1, C), p_ref.dtype)
    p_ref[:, 0:1, :, :] = zrow
    p_ref[:, Hp - 1:Hp, :, :] = zrow
    p_ref[:, :, 0:1, :] = zcol
    p_ref[:, :, Wp - 1:Wp, :] = zcol


def _conv_block(pad_ref, w_ref, ss_ref):
    """One ConvBlock (conv3x3 pad=1 -> BN -> ReLU -> maxpool2) on VMEM data.

    pad_ref: (NB, Hn+2, Wn+2, Cin) zero-border-padded activations (VMEM)
    w_ref  : (9*Cin, Cout)          im2col weights, row = (3*dh + dw)*Cin + cin
    ss_ref : (2, Cout)              packed (scale, shift) from bias + BN fold
    returns: (NB, Hn//2, Wn//2, Cout) float32 pooled activation (value)
    """
    NB, Hp, Wp, Cin = pad_ref.shape
    Hn, Wn = Hp - 2, Wp - 2
    Cout = w_ref.shape[1]

    xp = pad_ref[...]                                        # (NB, Hn+2, Wn+2, Cin)
    # im2col: 9 shifted taps concatenated along channels -> one K = 9*Cin dot.
    cols = [xp[:, dh:dh + Hn, dw:dw + Wn, :].reshape(NB * Hn * Wn, Cin)
            for dh in range(3) for dw in range(3)]
    xcol = jnp.concatenate(cols, axis=-1).astype(MXU_DTYPE)  # (NB*Hn*Wn, 9*Cin)

    acc = jnp.dot(xcol, w_ref[...], preferred_element_type=jnp.float32)

    # Folded conv-bias + BatchNorm (inference), then ReLU.
    scale = ss_ref[0]
    shift = ss_ref[1]
    out = jnp.maximum(acc * scale + shift, 0.0)              # (NB*Hn*Wn, Cout)

    # 2x2 max-pool, stride 2.
    out = out.reshape(NB, Hn, Wn, Cout)
    out = jnp.max(out.reshape(NB, Hn // 2, 2, Wn, Cout), axis=2)
    out = jnp.max(out.reshape(NB, Hn // 2, Wn // 2, 2, Cout), axis=3)
    return out


def _convnet4_kernel(x_ref, w1, w2, w3, w4, ss1, ss2, ss3, ss4, o_ref,
                     p1, p2, p3, p4):
    """Fused ConvNet4 forward for NB images (one grid step)."""
    _, H, W, _ = x_ref.shape

    # layer 1
    _zero_border(p1)
    p1[:, 1:H + 1, 1:W + 1, :] = x_ref[...]
    a = _conv_block(p1, w1, ss1)

    # layer 2
    H, W = H // 2, W // 2
    _zero_border(p2)
    p2[:, 1:H + 1, 1:W + 1, :] = a
    a = _conv_block(p2, w2, ss2)

    # layer 3
    H, W = H // 2, W // 2
    _zero_border(p3)
    p3[:, 1:H + 1, 1:W + 1, :] = a
    a = _conv_block(p3, w3, ss3)

    # layer 4
    H, W = H // 2, W // 2
    _zero_border(p4)
    p4[:, 1:H + 1, 1:W + 1, :] = a
    a = _conv_block(p4, w4, ss4)

    o_ref[...] = a.astype(o_ref.dtype)


def _fold_bn(bias, gamma, beta, mean, var, eps=1e-5):
    """Fold conv bias + inference BN into packed (scale, shift): (2, Cout)."""
    scale = gamma / jnp.sqrt(var + eps)
    shift = (bias - mean) * scale + beta
    return jnp.stack([scale, shift]).astype(jnp.float32)


def _pack_w(w, cin_pad=None):
    """(3, 3, Cin, Cout) conv weight -> (9*Cin[_pad], Cout) im2col matrix."""
    _, _, cin, cout = w.shape
    if cin_pad is not None and cin_pad > cin:
        w = jnp.pad(w, ((0, 0), (0, 0), (0, cin_pad - cin), (0, 0)))
        cin = cin_pad
    return w.reshape(9 * cin, cout).astype(MXU_DTYPE)


def _pick_batch_block(N, H, W):
    """Images per grid step: keep >= 2 grid steps (both TensorCores), cap the
    layer-1 padded scratch, and batch the matmuls when N is large."""
    if N < 2:
        return 1
    per_img = (H + 2) * (W + 2) * CIN_PAD * 4     # layer-1 padded scratch bytes
    best = 1
    for d in range(1, N // 2 + 1):
        if N % d == 0 and d <= 8 and d * per_img <= (2 << 20):
            best = d
    return best


@jax.jit
def convnet4_forward(x_nchw, params):
    """ConvNet4.forward: 4 fused ConvBlocks then flatten. x_nchw: (N, 3, H, W)."""
    N, cin, H, W = x_nchw.shape
    assert H % 16 == 0 and W % 16 == 0, "spatial dims must survive 4 maxpools"

    # NCHW -> NHWC (C on the 128-lane axis); zero-pad channels 3 -> CIN_PAD.
    x = jnp.transpose(x_nchw, (0, 2, 3, 1)).astype(jnp.float32)
    x = jnp.pad(x, ((0, 0), (0, 0), (0, 0), (0, CIN_PAD - cin)))

    ws = [_pack_w(params[0]["w"], cin_pad=CIN_PAD)]
    ws += [_pack_w(p["w"]) for p in params[1:]]
    sss = [_fold_bn(p["b"], p["gamma"], p["beta"], p["mean"], p["var"])
           for p in params]

    c_hid = params[0]["w"].shape[-1]
    c_out = params[3]["w"].shape[-1]
    Ho, Wo = H // 16, W // 16
    NB = _pick_batch_block(N, H, W)

    def _full(arr):
        idx = (0,) * arr.ndim
        return pl.BlockSpec(arr.shape, lambda n: idx)

    out = pl.pallas_call(
        _convnet4_kernel,
        out_shape=jax.ShapeDtypeStruct((N, Ho, Wo, c_out), jnp.float32),
        grid_spec=pltpu.PrefetchScalarGridSpec(
            num_scalar_prefetch=0,
            grid=(N // NB,),
            in_specs=([pl.BlockSpec((NB, H, W, CIN_PAD), lambda n: (n, 0, 0, 0))]
                      + [_full(w) for w in ws]
                      + [_full(s) for s in sss]),
            out_specs=pl.BlockSpec((NB, Ho, Wo, c_out), lambda n: (n, 0, 0, 0)),
            scratch_shapes=[
                pltpu.VMEM((NB, H + 2, W + 2, CIN_PAD), jnp.float32),
                pltpu.VMEM((NB, H // 2 + 2, W // 2 + 2, c_hid), jnp.float32),
                pltpu.VMEM((NB, H // 4 + 2, W // 4 + 2, c_hid), jnp.float32),
                pltpu.VMEM((NB, H // 8 + 2, W // 8 + 2, c_hid), jnp.float32),
            ]),
        compiler_params=pltpu.CompilerParams(
            dimension_semantics=("parallel",)),
    )(x, *ws, *sss)

    # Back to NCHW, then out.view(N, -1) exactly like the PyTorch module.
    out = jnp.transpose(out, (0, 3, 1, 2))
    return out.reshape(N, -1)


def _reference_forward(x_nchw, params, eps=1e-5):
    """Pure-JAX (XLA) reference of ConvNet4.forward for correctness checking."""
    x = jnp.transpose(x_nchw, (0, 2, 3, 1)).astype(jnp.float32)
    for p in params:
        y = jax.lax.conv_general_dilated(
            x, p["w"], window_strides=(1, 1), padding="SAME",
            dimension_numbers=("NHWC", "HWIO", "NHWC"))
        y = y + p["b"]
        y = (y - p["mean"]) / jnp.sqrt(p["var"] + eps) * p["gamma"] + p["beta"]
        y = jnp.maximum(y, 0.0)
        y = jax.lax.reduce_window(y, -jnp.inf, jax.lax.max,
                                  (1, 2, 2, 1), (1, 2, 2, 1), "VALID")
        x = y
    y = jnp.transpose(x, (0, 3, 1, 2))
    return y.reshape(y.shape[0], -1)


def init_convnet4_params(key, hid_dim=32, out_dim=32):
    """Deterministic parameter init matching ConvNet4(3 -> hid -> hid -> hid -> out)."""
    chans = [3, hid_dim, hid_dim, hid_dim, out_dim]
    params = []
    for i in range(4):
        cin, cout = chans[i], chans[i + 1]
        key, kw, kb = jax.random.split(key, 3)
        # PyTorch Conv2d weight is (Cout, Cin, 3, 3); store as (3, 3, Cin, Cout).
        w = jax.random.normal(kw, (cout, cin, 3, 3), jnp.float32) * 0.1
        w = jnp.transpose(w, (2, 3, 1, 0))
        b = jax.random.normal(kb, (cout,), jnp.float32) * 0.01
        params.append(dict(
            w=w, b=b,
            gamma=jnp.ones((cout,), jnp.float32),
            beta=jnp.zeros((cout,), jnp.float32),
            mean=jnp.zeros((cout,), jnp.float32),
            var=jnp.ones((cout,), jnp.float32)))
    return params


if __name__ == "__main__":
    key = jax.random.PRNGKey(0)
    key, kx = jax.random.split(key)

    # Small shapes: batch=2, 3 input channels, 16x16 spatial, hid_dim=out_dim=32.
    N, H, W = 2, 16, 16
    hid_dim, out_dim = 32, 32
    x = jax.random.normal(kx, (N, 3, H, W), jnp.float32)

    params = init_convnet4_params(key, hid_dim=hid_dim, out_dim=out_dim)

    out = jax.block_until_ready(convnet4_forward(x, params))

    assert out.shape == (N, out_dim * (H // 16) * (W // 16)), out.shape
    assert jnp.all(jnp.isfinite(out))

    # Correctness vs a pure-JAX f32 reference (loose tolerance: bf16 MXU inputs).
    ref = jax.block_until_ready(_reference_forward(x, params))
    max_diff = float(jnp.max(jnp.abs(out - ref)))
    max_ref = float(jnp.max(jnp.abs(ref)))
    assert max_diff <= 0.05 * max(1.0, max_ref), (max_diff, max_ref)

    print("KERNEL_OK")
</pallas_src>

<mosaic_0001>
module attributes {stable_mosaic.version = 11 : i64} {
  func.func @_convnet4_kernel(%arg0: i32, %arg1: memref<1x16x16x8xf32, #tpu.memory_space<vmem>>, %arg2: memref<72x32xbf16, #tpu.memory_space<vmem>>, %arg3: memref<288x32xbf16, #tpu.memory_space<vmem>>, %arg4: memref<288x32xbf16, #tpu.memory_space<vmem>>, %arg5: memref<288x32xbf16, #tpu.memory_space<vmem>>, %arg6: memref<2x32xf32, #tpu.memory_space<vmem>>, %arg7: memref<2x32xf32, #tpu.memory_space<vmem>>, %arg8: memref<2x32xf32, #tpu.memory_space<vmem>>, %arg9: memref<2x32xf32, #tpu.memory_space<vmem>>, %arg10: memref<1x1x1x32xf32, #tpu.memory_space<vmem>>, %arg11: memref<1x18x18x8xf32, #tpu.memory_space<vmem>>, %arg12: memref<1x10x10x32xf32, #tpu.memory_space<vmem>>, %arg13: memref<1x6x6x32xf32, #tpu.memory_space<vmem>>, %arg14: memref<1x4x4x32xf32, #tpu.memory_space<vmem>>) attributes {dimension_semantics = [#tpu.dimension_semantics<parallel>], iteration_bounds = array<i64: 2>, scalar_prefetch = 0 : i64, scratch_operands = 4 : i64, tpu.core_type = #tpu.core_type<tc>, window_params = [{transform_indices = @transform_0, window_bounds = array<i64: 1, 16, 16, 8>}, {pipeline_mode = #tpu.pipeline_mode<synchronous>, transform_indices = @transform_1, window_bounds = array<i64: 72, 32>}, {pipeline_mode = #tpu.pipeline_mode<synchronous>, transform_indices = @transform_2, window_bounds = array<i64: 288, 32>}, {pipeline_mode = #tpu.pipeline_mode<synchronous>, transform_indices = @transform_3, window_bounds = array<i64: 288, 32>}, {pipeline_mode = #tpu.pipeline_mode<synchronous>, transform_indices = @transform_4, window_bounds = array<i64: 288, 32>}, {pipeline_mode = #tpu.pipeline_mode<synchronous>, transform_indices = @transform_5, window_bounds = array<i64: 2, 32>}, {pipeline_mode = #tpu.pipeline_mode<synchronous>, transform_indices = @transform_6, window_bounds = array<i64: 2, 32>}, {pipeline_mode = #tpu.pipeline_mode<synchronous>, transform_indices = @transform_7, window_bounds = array<i64: 2, 32>}, {pipeline_mode = #tpu.pipeline_mode<synchronous>, transform_indices = @transform_8, window_bounds = array<i64: 2, 32>}, {transform_indices = @transform_9, window_bounds = array<i64: 1, 1, 1, 32>}]} {
    %cst = arith.constant 0.000000e+00 : f32
    %0 = vector.broadcast %cst : f32 to vector<1x1x18x8xf32>
    %cst_0 = arith.constant 0.000000e+00 : f32
    %1 = vector.broadcast %cst_0 : f32 to vector<1x18x1x8xf32>
    %c0 = arith.constant 0 : index
    %c0_1 = arith.constant 0 : index
    %c0_2 = arith.constant 0 : index
    %c0_3 = arith.constant 0 : index
    %2 = vector.load %arg11[%c0, %c0_1, %c0_2, %c0_3] : memref<1x18x18x8xf32, #tpu.memory_space<vmem>>, vector<1x1x18x8xf32>
    tpu.vector_store %arg11[%c0, %c0_1, %c0_2, %c0_3], %0 {strides = array<i32>} : memref<1x18x18x8xf32, #tpu.memory_space<vmem>>, vector<1x1x18x8xf32>,
    %c0_4 = arith.constant 0 : index
    %c17 = arith.constant 17 : index
    %c0_5 = arith.constant 0 : index
    %c0_6 = arith.constant 0 : index
    %3 = vector.load %arg11[%c0_4, %c17, %c0_5, %c0_6] : memref<1x18x18x8xf32, #tpu.memory_space<vmem>>, vector<1x1x18x8xf32>
    tpu.vector_store %arg11[%c0_4, %c17, %c0_5, %c0_6], %0 {strides = array<i32>} : memref<1x18x18x8xf32, #tpu.memory_space<vmem>>, vector<1x1x18x8xf32>,
    %c0_7 = arith.constant 0 : index
    %c0_8 = arith.constant 0 : index
    %c0_9 = arith.constant 0 : index
    %c0_10 = arith.constant 0 : index
    %4 = vector.load %arg11[%c0_7, %c0_8, %c0_9, %c0_10] : memref<1x18x18x8xf32, #tpu.memory_space<vmem>>, vector<1x18x1x8xf32>
    tpu.vector_store %arg11[%c0_7, %c0_8, %c0_9, %c0_10], %1 {strides = array<i32>} : memref<1x18x18x8xf32, #tpu.memory_space<vmem>>, vector<1x18x1x8xf32>,
    %c0_11 = arith.constant 0 : index
    %c0_12 = arith.constant 0 : index
    %c17_13 = arith.constant 17 : index
    %c0_14 = arith.constant 0 : index
    %5 = vector.load %arg11[%c0_11, %c0_12, %c17_13, %c0_14] : memref<1x18x18x8xf32, #tpu.memory_space<vmem>>, vector<1x18x1x8xf32>
    tpu.vector_store %arg11[%c0_11, %c0_12, %c17_13, %c0_14], %1 {strides = array<i32>} : memref<1x18x18x8xf32, #tpu.memory_space<vmem>>, vector<1x18x1x8xf32>,
    %c0_15 = arith.constant 0 : index
    %c0_16 = arith.constant 0 : index
    %c0_17 = arith.constant 0 : index
    %c0_18 = arith.constant 0 : index
    %6 = vector.load %arg1[%c0_15, %c0_16, %c0_17, %c0_18] : memref<1x16x16x8xf32, #tpu.memory_space<vmem>>, vector<1x16x16x8xf32>
    %c0_19 = arith.constant 0 : index
    %c1 = arith.constant 1 : index
    %c1_20 = arith.constant 1 : index
    %c0_21 = arith.constant 0 : index
    %7 = vector.load %arg11[%c0_19, %c1, %c1_20, %c0_21] : memref<1x18x18x8xf32, #tpu.memory_space<vmem>>, vector<1x16x16x8xf32>
    tpu.vector_store %arg11[%c0_19, %c1, %c1_20, %c0_21], %6 {strides = array<i32>} : memref<1x18x18x8xf32, #tpu.memory_space<vmem>>, vector<1x16x16x8xf32>,
    %c0_22 = arith.constant 0 : index
    %c0_23 = arith.constant 0 : index
    %c0_24 = arith.constant 0 : index
    %c0_25 = arith.constant 0 : index
    %8 = vector.load %arg11[%c0_22, %c0_23, %c0_24, %c0_25] : memref<1x18x18x8xf32, #tpu.memory_space<vmem>>, vector<1x18x18x8xf32>
    %9 = vector.extract_strided_slice %8 {offsets = [0, 0, 0, 0], sizes = [1, 16, 16, 8], strides = [1, 1, 1, 1]} : vector<1x18x18x8xf32> to vector<1x16x16x8xf32>
    %10 = vector.shape_cast %9 : vector<1x16x16x8xf32> to vector<256x8xf32>
    %11 = vector.extract_strided_slice %8 {offsets = [0, 0, 1, 0], sizes = [1, 16, 16, 8], strides = [1, 1, 1, 1]} : vector<1x18x18x8xf32> to vector<1x16x16x8xf32>
    %12 = vector.shape_cast %11 : vector<1x16x16x8xf32> to vector<256x8xf32>
    %13 = vector.extract_strided_slice %8 {offsets = [0, 0, 2, 0], sizes = [1, 16, 16, 8], strides = [1, 1, 1, 1]} : vector<1x18x18x8xf32> to vector<1x16x16x8xf32>
    %14 = vector.shape_cast %13 : vector<1x16x16x8xf32> to vector<256x8xf32>
    %15 = vector.extract_strided_slice %8 {offsets = [0, 1, 0, 0], sizes = [1, 16, 16, 8], strides = [1, 1, 1, 1]} : vector<1x18x18x8xf32> to vector<1x16x16x8xf32>
    %16 = vector.shape_cast %15 : vector<1x16x16x8xf32> to vector<256x8xf32>
    %17 = vector.extract_strided_slice %8 {offsets = [0, 1, 1, 0], sizes = [1, 16, 16, 8], strides = [1, 1, 1, 1]} : vector<1x18x18x8xf32> to vector<1x16x16x8xf32>
    %18 = vector.shape_cast %17 : vector<1x16x16x8xf32> to vector<256x8xf32>
    %19 = vector.extract_strided_slice %8 {offsets = [0, 1, 2, 0], sizes = [1, 16, 16, 8], strides = [1, 1, 1, 1]} : vector<1x18x18x8xf32> to vector<1x16x16x8xf32>
    %20 = vector.shape_cast %19 : vector<1x16x16x8xf32> to vector<256x8xf32>
    %21 = vector.extract_strided_slice %8 {offsets = [0, 2, 0, 0], sizes = [1, 16, 16, 8], strides = [1, 1, 1, 1]} : vector<1x18x18x8xf32> to vector<1x16x16x8xf32>
    %22 = vector.shape_cast %21 : vector<1x16x16x8xf32> to vector<256x8xf32>
    %23 = vector.extract_strided_slice %8 {offsets = [0, 2, 1, 0], sizes = [1, 16, 16, 8], strides = [1, 1, 1, 1]} : vector<1x18x18x8xf32> to vector<1x16x16x8xf32>
    %24 = vector.shape_cast %23 : vector<1x16x16x8xf32> to vector<256x8xf32>
    %25 = vector.extract_strided_slice %8 {offsets = [0, 2, 2, 0], sizes = [1, 16, 16, 8], strides = [1, 1, 1, 1]} : vector<1x18x18x8xf32> to vector<1x16x16x8xf32>
    %26 = vector.shape_cast %25 : vector<1x16x16x8xf32> to vector<256x8xf32>
    %27 = tpu.concatenate %10, %12, %14, %16, %18, %20, %22, %24, %26 in 1 : vector<256x8xf32>, vector<256x8xf32>, vector<256x8xf32>, vector<256x8xf32>, vector<256x8xf32>, vector<256x8xf32>, vector<256x8xf32>, vector<256x8xf32>, vector<256x8xf32> -> vector<256x72xf32>
    %28 = arith.truncf %27 : vector<256x72xf32> to vector<256x72xbf16>
    %c0_26 = arith.constant 0 : index
    %c0_27 = arith.constant 0 : index
    %29 = vector.load %arg2[%c0_26, %c0_27] : memref<72x32xbf16, #tpu.memory_space<vmem>>, vector<72x32xbf16>
    %cst_28 = arith.constant dense<0.000000e+00> : vector<256x32xf32>
    %30 = tpu.matmul %28, %29, %cst_28 {dimension_numbers = #tpu.dot_dimension_numbers<[1], [0], [0], [1], [0, 0, 1, 1], [], []>} : vector<256x72xbf16>, vector<72x32xbf16>, vector<256x32xf32> -> vector<256x32xf32>
    %c0_29 = arith.constant 0 : index
    %c0_30 = arith.constant 0 : index
    %31 = vector.load %arg6[%c0_29, %c0_30] : memref<2x32xf32, #tpu.memory_space<vmem>>, vector<1x32xf32>
    %32 = vector.shape_cast %31 : vector<1x32xf32> to vector<32xf32>
    %c1_31 = arith.constant 1 : index
    %c0_32 = arith.constant 0 : index
    %33 = vector.load %arg6[%c1_31, %c0_32] : memref<2x32xf32, #tpu.memory_space<vmem>>, vector<1x32xf32>
    %34 = vector.shape_cast %33 : vector<1x32xf32> to vector<32xf32>
    %35 = vector.shape_cast %32 : vector<32xf32> to vector<1x32xf32>
    %36 = vector.broadcast %35 : vector<1x32xf32> to vector<256x32xf32>
    %37 = arith.mulf %30, %36 : vector<256x32xf32>
    %38 = vector.shape_cast %34 : vector<32xf32> to vector<1x32xf32>
    %39 = vector.broadcast %38 : vector<1x32xf32> to vector<256x32xf32>
    %40 = arith.addf %37, %39 : vector<256x32xf32>
    %cst_33 = arith.constant 0.000000e+00 : f32
    %41 = vector.broadcast %cst_33 : f32 to vector<256x32xf32>
    %42 = arith.maximumf %40, %41 : vector<256x32xf32>
    %43 = vector.shape_cast %42 : vector<256x32xf32> to vector<1x16x16x32xf32>
    %44 = vector.shape_cast %43 : vector<1x16x16x32xf32> to vector<1x8x2x16x32xf32>
    %cst_34 = arith.constant dense<0xFF800000> : vector<1x8x16x32xf32>
    %45 = vector.multi_reduction <maximumf>, %44, %cst_34 [2] : vector<1x8x2x16x32xf32> to vector<1x8x16x32xf32>
    %46 = vector.shape_cast %45 : vector<1x8x16x32xf32> to vector<1x8x8x2x32xf32>
    %cst_35 = arith.constant dense<0xFF800000> : vector<1x8x8x32xf32>
    %47 = vector.multi_reduction <maximumf>, %46, %cst_35 [3] : vector<1x8x8x2x32xf32> to vector<1x8x8x32xf32>
    %cst_36 = arith.constant 0.000000e+00 : f32
    %48 = vector.broadcast %cst_36 : f32 to vector<1x1x10x32xf32>
    %cst_37 = arith.constant 0.000000e+00 : f32
    %49 = vector.broadcast %cst_37 : f32 to vector<1x10x1x32xf32>
    %c0_38 = arith.constant 0 : index
    %c0_39 = arith.constant 0 : index
    %c0_40 = arith.constant 0 : index
    %c0_41 = arith.constant 0 : index
    %50 = vector.load %arg12[%c0_38, %c0_39, %c0_40, %c0_41] : memref<1x10x10x32xf32, #tpu.memory_space<vmem>>, vector<1x1x10x32xf32>
    tpu.vector_store %arg12[%c0_38, %c0_39, %c0_40, %c0_41], %48 {strides = array<i32>} : memref<1x10x10x32xf32, #tpu.memory_space<vmem>>, vector<1x1x10x32xf32>,
    %c0_42 = arith.constant 0 : index
    %c9 = arith.constant 9 : index
    %c0_43 = arith.constant 0 : index
    %c0_44 = arith.constant 0 : index
    %51 = vector.load %arg12[%c0_42, %c9, %c0_43, %c0_44] : memref<1x10x10x32xf32, #tpu.memory_space<vmem>>, vector<1x1x10x32xf32>
    tpu.vector_store %arg12[%c0_42, %c9, %c0_43, %c0_44], %48 {strides = array<i32>} : memref<1x10x10x32xf32, #tpu.memory_space<vmem>>, vector<1x1x10x32xf32>,
    %c0_45 = arith.constant 0 : index
    %c0_46 = arith.constant 0 : index
    %c0_47 = arith.constant 0 : index
    %c0_48 = arith.constant 0 : index
    %52 = vector.load %arg12[%c0_45, %c0_46, %c0_47, %c0_48] : memref<1x10x10x32xf32, #tpu.memory_space<vmem>>, vector<1x10x1x32xf32>
    tpu.vector_store %arg12[%c0_45, %c0_46, %c0_47, %c0_48], %49 {strides = array<i32>} : memref<1x10x10x32xf32, #tpu.memory_space<vmem>>, vector<1x10x1x32xf32>,
    %c0_49 = arith.constant 0 : index
    %c0_50 = arith.constant 0 : index
    %c9_51 = arith.constant 9 : index
    %c0_52 = arith.constant 0 : index
    %53 = vector.load %arg12[%c0_49, %c0_50, %c9_51, %c0_52] : memref<1x10x10x32xf32, #tpu.memory_space<vmem>>, vector<1x10x1x32xf32>
    tpu.vector_store %arg12[%c0_49, %c0_50, %c9_51, %c0_52], %49 {strides = array<i32>} : memref<1x10x10x32xf32, #tpu.memory_space<vmem>>, vector<1x10x1x32xf32>,
    %c0_53 = arith.constant 0 : index
    %c1_54 = arith.constant 1 : index
    %c1_55 = arith.constant 1 : index
    %c0_56 = arith.constant 0 : index
    %54 = vector.load %arg12[%c0_53, %c1_54, %c1_55, %c0_56] : memref<1x10x10x32xf32, #tpu.memory_space<vmem>>, vector<1x8x8x32xf32>
    tpu.vector_store %arg12[%c0_53, %c1_54, %c1_55, %c0_56], %47 {strides = array<i32>} : memref<1x10x10x32xf32, #tpu.memory_space<vmem>>, vector<1x8x8x32xf32>,
    %c0_57 = arith.constant 0 : index
    %c0_58 = arith.constant 0 : index
    %c0_59 = arith.constant 0 : index
    %c0_60 = arith.constant 0 : index
    %55 = vector.load %arg12[%c0_57, %c0_58, %c0_59, %c0_60] : memref<1x10x10x32xf32, #tpu.memory_space<vmem>>, vector<1x10x10x32xf32>
    %56 = vector.extract_strided_slice %55 {offsets = [0, 0, 0, 0], sizes = [1, 8, 8, 32], strides = [1, 1, 1, 1]} : vector<1x10x10x32xf32> to vector<1x8x8x32xf32>
    %57 = vector.shape_cast %56 : vector<1x8x8x32xf32> to vector<64x32xf32>
    %58 = vector.extract_strided_slice %55 {offsets = [0, 0, 1, 0], sizes = [1, 8, 8, 32], strides = [1, 1, 1, 1]} : vector<1x10x10x32xf32> to vector<1x8x8x32xf32>
    %59 = vector.shape_cast %58 : vector<1x8x8x32xf32> to vector<64x32xf32>
    %60 = vector.extract_strided_slice %55 {offsets = [0, 0, 2, 0], sizes = [1, 8, 8, 32], strides = [1, 1, 1, 1]} : vector<1x10x10x32xf32> to vector<1x8x8x32xf32>
    %61 = vector.shape_cast %60 : vector<1x8x8x32xf32> to vector<64x32xf32>
    %62 = vector.extract_strided_slice %55 {offsets = [0, 1, 0, 0], sizes = [1, 8, 8, 32], strides = [1, 1, 1, 1]} : vector<1x10x10x32xf32> to vector<1x8x8x32xf32>
    %63 = vector.shape_cast %62 : vector<1x8x8x32xf32> to vector<64x32xf32>
    %64 = vector.extract_strided_slice %55 {offsets = [0, 1, 1, 0], sizes = [1, 8, 8, 32], strides = [1, 1, 1, 1]} : vector<1x10x10x32xf32> to vector<1x8x8x32xf32>
    %65 = vector.shape_cast %64 : vector<1x8x8x32xf32> to vector<64x32xf32>
    %66 = vector.extract_strided_slice %55 {offsets = [0, 1, 2, 0], sizes = [1, 8, 8, 32], strides = [1, 1, 1, 1]} : vector<1x10x10x32xf32> to vector<1x8x8x32xf32>
    %67 = vector.shape_cast %66 : vector<1x8x8x32xf32> to vector<64x32xf32>
    %68 = vector.extract_strided_slice %55 {offsets = [0, 2, 0, 0], sizes = [1, 8, 8, 32], strides = [1, 1, 1, 1]} : vector<1x10x10x32xf32> to vector<1x8x8x32xf32>
    %69 = vector.shape_cast %68 : vector<1x8x8x32xf32> to vector<64x32xf32>
    %70 = vector.extract_strided_slice %55 {offsets = [0, 2, 1, 0], sizes = [1, 8, 8, 32], strides = [1, 1, 1, 1]} : vector<1x10x10x32xf32> to vector<1x8x8x32xf32>
    %71 = vector.shape_cast %70 : vector<1x8x8x32xf32> to vector<64x32xf32>
    %72 = vector.extract_strided_slice %55 {offsets = [0, 2, 2, 0], sizes = [1, 8, 8, 32], strides = [1, 1, 1, 1]} : vector<1x10x10x32xf32> to vector<1x8x8x32xf32>
    %73 = vector.shape_cast %72 : vector<1x8x8x32xf32> to vector<64x32xf32>
    %74 = tpu.concatenate %57, %59, %61, %63, %65, %67, %69, %71, %73 in 1 : vector<64x32xf32>, vector<64x32xf32>, vector<64x32xf32>, vector<64x32xf32>, vector<64x32xf32>, vector<64x32xf32>, vector<64x32xf32>, vector<64x32xf32>, vector<64x32xf32> -> vector<64x288xf32>
    %75 = arith.truncf %74 : vector<64x288xf32> to vector<64x288xbf16>
    %c0_61 = arith.constant 0 : index
    %c0_62 = arith.constant 0 : index
    %76 = vector.load %arg3[%c0_61, %c0_62] : memref<288x32xbf16, #tpu.memory_space<vmem>>, vector<288x32xbf16>
    %cst_63 = arith.constant dense<0.000000e+00> : vector<64x32xf32>
    %77 = tpu.matmul %75, %76, %cst_63 {dimension_numbers = #tpu.dot_dimension_numbers<[1], [0], [0], [1], [0, 0, 1, 1], [], []>} : vector<64x288xbf16>, vector<288x32xbf16>, vector<64x32xf32> -> vector<64x32xf32>
    %c0_64 = arith.constant 0 : index
    %c0_65 = arith.constant 0 : index
    %78 = vector.load %arg7[%c0_64, %c0_65] : memref<2x32xf32, #tpu.memory_space<vmem>>, vector<1x32xf32>
    %79 = vector.shape_cast %78 : vector<1x32xf32> to vector<32xf32>
    %c1_66 = arith.constant 1 : index
    %c0_67 = arith.constant 0 : index
    %80 = vector.load %arg7[%c1_66, %c0_67] : memref<2x32xf32, #tpu.memory_space<vmem>>, vector<1x32xf32>
    %81 = vector.shape_cast %80 : vector<1x32xf32> to vector<32xf32>
    %82 = vector.shape_cast %79 : vector<32xf32> to vector<1x32xf32>
    %83 = vector.broadcast %82 : vector<1x32xf32> to vector<64x32xf32>
    %84 = arith.mulf %77, %83 : vector<64x32xf32>
    %85 = vector.shape_cast %81 : vector<32xf32> to vector<1x32xf32>
    %86 = vector.broadcast %85 : vector<1x32xf32> to vector<64x32xf32>
    %87 = arith.addf %84, %86 : vector<64x32xf32>
    %cst_68 = arith.constant 0.000000e+00 : f32
    %88 = vector.broadcast %cst_68 : f32 to vector<64x32xf32>
    %89 = arith.maximumf %87, %88 : vector<64x32xf32>
    %90 = vector.shape_cast %89 : vector<64x32xf32> to vector<1x8x8x32xf32>
    %91 = vector.shape_cast %90 : vector<1x8x8x32xf32> to vector<1x4x2x8x32xf32>
    %cst_69 = arith.constant dense<0xFF800000> : vector<1x4x8x32xf32>
    %92 = vector.multi_reduction <maximumf>, %91, %cst_69 [2] : vector<1x4x2x8x32xf32> to vector<1x4x8x32xf32>
    %93 = vector.shape_cast %92 : vector<1x4x8x32xf32> to vector<1x4x4x2x32xf32>
    %cst_70 = arith.constant dense<0xFF800000> : vector<1x4x4x32xf32>
    %94 = vector.multi_reduction <maximumf>, %93, %cst_70 [3] : vector<1x4x4x2x32xf32> to vector<1x4x4x32xf32>
    %cst_71 = arith.constant 0.000000e+00 : f32
    %95 = vector.broadcast %cst_71 : f32 to vector<1x1x6x32xf32>
    %cst_72 = arith.constant 0.000000e+00 : f32
    %96 = vector.broadcast %cst_72 : f32 to vector<1x6x1x32xf32>
    %c0_73 = arith.constant 0 : index
    %c0_74 = arith.constant 0 : index
    %c0_75 = arith.constant 0 : index
    %c0_76 = arith.constant 0 : index
    %97 = vector.load %arg13[%c0_73, %c0_74, %c0_75, %c0_76] : memref<1x6x6x32xf32, #tpu.memory_space<vmem>>, vector<1x1x6x32xf32>
    tpu.vector_store %arg13[%c0_73, %c0_74, %c0_75, %c0_76], %95 {strides = array<i32>} : memref<1x6x6x32xf32, #tpu.memory_space<vmem>>, vector<1x1x6x32xf32>,
    %c0_77 = arith.constant 0 : index
    %c5 = arith.constant 5 : index
    %c0_78 = arith.constant 0 : index
    %c0_79 = arith.constant 0 : index
    %98 = vector.load %arg13[%c0_77, %c5, %c0_78, %c0_79] : memref<1x6x6x32xf32, #tpu.memory_space<vmem>>, vector<1x1x6x32xf32>
    tpu.vector_store %arg13[%c0_77, %c5, %c0_78, %c0_79], %95 {strides = array<i32>} : memref<1x6x6x32xf32, #tpu.memory_space<vmem>>, vector<1x1x6x32xf32>,
    %c0_80 = arith.constant 0 : index
    %c0_81 = arith.constant 0 : index
    %c0_82 = arith.constant 0 : index
    %c0_83 = arith.constant 0 : index
    %99 = vector.load %arg13[%c0_80, %c0_81, %c0_82, %c0_83] : memref<1x6x6x32xf32, #tpu.memory_space<vmem>>, vector<1x6x1x32xf32>
    tpu.vector_store %arg13[%c0_80, %c0_81, %c0_82, %c0_83], %96 {strides = array<i32>} : memref<1x6x6x32xf32, #tpu.memory_space<vmem>>, vector<1x6x1x32xf32>,
    %c0_84 = arith.constant 0 : index
    %c0_85 = arith.constant 0 : index
    %c5_86 = arith.constant 5 : index
    %c0_87 = arith.constant 0 : index
    %100 = vector.load %arg13[%c0_84, %c0_85, %c5_86, %c0_87] : memref<1x6x6x32xf32, #tpu.memory_space<vmem>>, vector<1x6x1x32xf32>
    tpu.vector_store %arg13[%c0_84, %c0_85, %c5_86, %c0_87], %96 {strides = array<i32>} : memref<1x6x6x32xf32, #tpu.memory_space<vmem>>, vector<1x6x1x32xf32>,
    %c0_88 = arith.constant 0 : index
    %c1_89 = arith.constant 1 : index
    %c1_90 = arith.constant 1 : index
    %c0_91 = arith.constant 0 : index
    %101 = vector.load %arg13[%c0_88, %c1_89, %c1_90, %c0_91] : memref<1x6x6x32xf32, #tpu.memory_space<vmem>>, vector<1x4x4x32xf32>
    tpu.vector_store %arg13[%c0_88, %c1_89, %c1_90, %c0_91], %94 {strides = array<i32>} : memref<1x6x6x32xf32, #tpu.memory_space<vmem>>, vector<1x4x4x32xf32>,
    %c0_92 = arith.constant 0 : index
    %c0_93 = arith.constant 0 : index
    %c0_94 = arith.constant 0 : index
    %c0_95 = arith.constant 0 : index
    %102 = vector.load %arg13[%c0_92, %c0_93, %c0_94, %c0_95] : memref<1x6x6x32xf32, #tpu.memory_space<vmem>>, vector<1x6x6x32xf32>
    %103 = vector.extract_strided_slice %102 {offsets = [0, 0, 0, 0], sizes = [1, 4, 4, 32], strides = [1, 1, 1, 1]} : vector<1x6x6x32xf32> to vector<1x4x4x32xf32>
    %104 = vector.shape_cast %103 : vector<1x4x4x32xf32> to vector<16x32xf32>
    %105 = vector.extract_strided_slice %102 {offsets = [0, 0, 1, 0], sizes = [1, 4, 4, 32], strides = [1, 1, 1, 1]} : vector<1x6x6x32xf32> to vector<1x4x4x32xf32>
    %106 = vector.shape_cast %105 : vector<1x4x4x32xf32> to vector<16x32xf32>
    %107 = vector.extract_strided_slice %102 {offsets = [0, 0, 2, 0], sizes = [1, 4, 4, 32], strides = [1, 1, 1, 1]} : vector<1x6x6x32xf32> to vector<1x4x4x32xf32>
    %108 = vector.shape_cast %107 : vector<1x4x4x32xf32> to vector<16x32xf32>
    %109 = vector.extract_strided_slice %102 {offsets = [0, 1, 0, 0], sizes = [1, 4, 4, 32], strides = [1, 1, 1, 1]} : vector<1x6x6x32xf32> to vector<1x4x4x32xf32>
    %110 = vector.shape_cast %109 : vector<1x4x4x32xf32> to vector<16x32xf32>
    %111 = vector.extract_strided_slice %102 {offsets = [0, 1, 1, 0], sizes = [1, 4, 4, 32], strides = [1, 1, 1, 1]} : vector<1x6x6x32xf32> to vector<1x4x4x32xf32>
    %112 = vector.shape_cast %111 : vector<1x4x4x32xf32> to vector<16x32xf32>
    %113 = vector.extract_strided_slice %102 {offsets = [0, 1, 2, 0], sizes = [1, 4, 4, 32], strides = [1, 1, 1, 1]} : vector<1x6x6x32xf32> to vector<1x4x4x32xf32>
    %114 = vector.shape_cast %113 : vector<1x4x4x32xf32> to vector<16x32xf32>
    %115 = vector.extract_strided_slice %102 {offsets = [0, 2, 0, 0], sizes = [1, 4, 4, 32], strides = [1, 1, 1, 1]} : vector<1x6x6x32xf32> to vector<1x4x4x32xf32>
    %116 = vector.shape_cast %115 : vector<1x4x4x32xf32> to vector<16x32xf32>
    %117 = vector.extract_strided_slice %102 {offsets = [0, 2, 1, 0], sizes = [1, 4, 4, 32], strides = [1, 1, 1, 1]} : vector<1x6x6x32xf32> to vector<1x4x4x32xf32>
    %118 = vector.shape_cast %117 : vector<1x4x4x32xf32> to vector<16x32xf32>
    %119 = vector.extract_strided_slice %102 {offsets = [0, 2, 2, 0], sizes = [1, 4, 4, 32], strides = [1, 1, 1, 1]} : vector<1x6x6x32xf32> to vector<1x4x4x32xf32>
    %120 = vector.shape_cast %119 : vector<1x4x4x32xf32> to vector<16x32xf32>
    %121 = tpu.concatenate %104, %106, %108, %110, %112, %114, %116, %118, %120 in 1 : vector<16x32xf32>, vector<16x32xf32>, vector<16x32xf32>, vector<16x32xf32>, vector<16x32xf32>, vector<16x32xf32>, vector<16x32xf32>, vector<16x32xf32>, vector<16x32xf32> -> vector<16x288xf32>
    %122 = arith.truncf %121 : vector<16x288xf32> to vector<16x288xbf16>
    %c0_96 = arith.constant 0 : index
    %c0_97 = arith.constant 0 : index
    %123 = vector.load %arg4[%c0_96, %c0_97] : memref<288x32xbf16, #tpu.memory_space<vmem>>, vector<288x32xbf16>
    %cst_98 = arith.constant dense<0.000000e+00> : vector<16x32xf32>
    %124 = tpu.matmul %122, %123, %cst_98 {dimension_numbers = #tpu.dot_dimension_numbers<[1], [0], [0], [1], [0, 0, 1, 1], [], []>} : vector<16x288xbf16>, vector<288x32xbf16>, vector<16x32xf32> -> vector<16x32xf32>
    %c0_99 = arith.constant 0 : index
    %c0_100 = arith.constant 0 : index
    %125 = vector.load %arg8[%c0_99, %c0_100] : memref<2x32xf32, #tpu.memory_space<vmem>>, vector<1x32xf32>
    %126 = vector.shape_cast %125 : vector<1x32xf32> to vector<32xf32>
    %c1_101 = arith.constant 1 : index
    %c0_102 = arith.constant 0 : index
    %127 = vector.load %arg8[%c1_101, %c0_102] : memref<2x32xf32, #tpu.memory_space<vmem>>, vector<1x32xf32>
    %128 = vector.shape_cast %127 : vector<1x32xf32> to vector<32xf32>
    %129 = vector.shape_cast %126 : vector<32xf32> to vector<1x32xf32>
    %130 = vector.broadcast %129 : vector<1x32xf32> to vector<16x32xf32>
    %131 = arith.mulf %124, %130 : vector<16x32xf32>
    %132 = vector.shape_cast %128 : vector<32xf32> to vector<1x32xf32>
    %133 = vector.broadcast %132 : vector<1x32xf32> to vector<16x32xf32>
    %134 = arith.addf %131, %133 : vector<16x32xf32>
    %cst_103 = arith.constant 0.000000e+00 : f32
    %135 = vector.broadcast %cst_103 : f32 to vector<16x32xf32>
    %136 = arith.maximumf %134, %135 : vector<16x32xf32>
    %137 = vector.shape_cast %136 : vector<16x32xf32> to vector<1x4x4x32xf32>
    %138 = vector.shape_cast %137 : vector<1x4x4x32xf32> to vector<1x2x2x4x32xf32>
    %cst_104 = arith.constant dense<0xFF800000> : vector<1x2x4x32xf32>
    %139 = vector.multi_reduction <maximumf>, %138, %cst_104 [2] : vector<1x2x2x4x32xf32> to vector<1x2x4x32xf32>
    %140 = vector.shape_cast %139 : vector<1x2x4x32xf32> to vector<1x2x2x2x32xf32>
    %cst_105 = arith.constant dense<0xFF800000> : vector<1x2x2x32xf32>
    %141 = vector.multi_reduction <maximumf>, %140, %cst_105 [3] : vector<1x2x2x2x32xf32> to vector<1x2x2x32xf32>
    %cst_106 = arith.constant 0.000000e+00 : f32
    %142 = vector.broadcast %cst_106 : f32 to vector<1x1x4x32xf32>
    %cst_107 = arith.constant 0.000000e+00 : f32
    %143 = vector.broadcast %cst_107 : f32 to vector<1x4x1x32xf32>
    %c0_108 = arith.constant 0 : index
    %c0_109 = arith.constant 0 : index
    %c0_110 = arith.constant 0 : index
    %c0_111 = arith.constant 0 : index
    %144 = vector.load %arg14[%c0_108, %c0_109, %c0_110, %c0_111] : memref<1x4x4x32xf32, #tpu.memory_space<vmem>>, vector<1x1x4x32xf32>
    tpu.vector_store %arg14[%c0_108, %c0_109, %c0_110, %c0_111], %142 {strides = array<i32>} : memref<1x4x4x32xf32, #tpu.memory_space<vmem>>, vector<1x1x4x32xf32>,
    %c0_112 = arith.constant 0 : index
    %c3 = arith.constant 3 : index
    %c0_113 = arith.constant 0 : index
    %c0_114 = arith.constant 0 : index
    %145 = vector.load %arg14[%c0_112, %c3, %c0_113, %c0_114] : memref<1x4x4x32xf32, #tpu.memory_space<vmem>>, vector<1x1x4x32xf32>
    tpu.vector_store %arg14[%c0_112, %c3, %c0_113, %c0_114], %142 {strides = array<i32>} : memref<1x4x4x32xf32, #tpu.memory_space<vmem>>, vector<1x1x4x32xf32>,
    %c0_115 = arith.constant 0 : index
    %c0_116 = arith.constant 0 : index
    %c0_117 = arith.constant 0 : index
    %c0_118 = arith.constant 0 : index
    %146 = vector.load %arg14[%c0_115, %c0_116, %c0_117, %c0_118] : memref<1x4x4x32xf32, #tpu.memory_space<vmem>>, vector<1x4x1x32xf32>
    tpu.vector_store %arg14[%c0_115, %c0_116, %c0_117, %c0_118], %143 {strides = array<i32>} : memref<1x4x4x32xf32, #tpu.memory_space<vmem>>, vector<1x4x1x32xf32>,
    %c0_119 = arith.constant 0 : index
    %c0_120 = arith.constant 0 : index
    %c3_121 = arith.constant 3 : index
    %c0_122 = arith.constant 0 : index
    %147 = vector.load %arg14[%c0_119, %c0_120, %c3_121, %c0_122] : memref<1x4x4x32xf32, #tpu.memory_space<vmem>>, vector<1x4x1x32xf32>
    tpu.vector_store %arg14[%c0_119, %c0_120, %c3_121, %c0_122], %143 {strides = array<i32>} : memref<1x4x4x32xf32, #tpu.memory_space<vmem>>, vector<1x4x1x32xf32>,
    %c0_123 = arith.constant 0 : index
    %c1_124 = arith.constant 1 : index
    %c1_125 = arith.constant 1 : index
    %c0_126 = arith.constant 0 : index
    %148 = vector.load %arg14[%c0_123, %c1_124, %c1_125, %c0_126] : memref<1x4x4x32xf32, #tpu.memory_space<vmem>>, vector<1x2x2x32xf32>
    tpu.vector_store %arg14[%c0_123, %c1_124, %c1_125, %c0_126], %141 {strides = array<i32>} : memref<1x4x4x32xf32, #tpu.memory_space<vmem>>, vector<1x2x2x32xf32>,
    %c0_127 = arith.constant 0 : index
    %c0_128 = arith.constant 0 : index
    %c0_129 = arith.constant 0 : index
    %c0_130 = arith.constant 0 : index
    %149 = vector.load %arg14[%c0_127, %c0_128, %c0_129, %c0_130] : memref<1x4x4x32xf32, #tpu.memory_space<vmem>>, vector<1x4x4x32xf32>
    %150 = vector.extract_strided_slice %149 {offsets = [0, 0, 0, 0], sizes = [1, 2, 2, 32], strides = [1, 1, 1, 1]} : vector<1x4x4x32xf32> to vector<1x2x2x32xf32>
    %151 = vector.shape_cast %150 : vector<1x2x2x32xf32> to vector<4x32xf32>
    %152 = vector.extract_strided_slice %149 {offsets = [0, 0, 1, 0], sizes = [1, 2, 2, 32], strides = [1, 1, 1, 1]} : vector<1x4x4x32xf32> to vector<1x2x2x32xf32>
    %153 = vector.shape_cast %152 : vector<1x2x2x32xf32> to vector<4x32xf32>
    %154 = vector.extract_strided_slice %149 {offsets = [0, 0, 2, 0], sizes = [1, 2, 2, 32], strides = [1, 1, 1, 1]} : vector<1x4x4x32xf32> to vector<1x2x2x32xf32>
    %155 = vector.shape_cast %154 : vector<1x2x2x32xf32> to vector<4x32xf32>
    %156 = vector.extract_strided_slice %149 {offsets = [0, 1, 0, 0], sizes = [1, 2, 2, 32], strides = [1, 1, 1, 1]} : vector<1x4x4x32xf32> to vector<1x2x2x32xf32>
    %157 = vector.shape_cast %156 : vector<1x2x2x32xf32> to vector<4x32xf32>
    %158 = vector.extract_strided_slice %149 {offsets = [0, 1, 1, 0], sizes = [1, 2, 2, 32], strides = [1, 1, 1, 1]} : vector<1x4x4x32xf32> to vector<1x2x2x32xf32>
    %159 = vector.shape_cast %158 : vector<1x2x2x32xf32> to vector<4x32xf32>
    %160 = vector.extract_strided_slice %149 {offsets = [0, 1, 2, 0], sizes = [1, 2, 2, 32], strides = [1, 1, 1, 1]} : vector<1x4x4x32xf32> to vector<1x2x2x32xf32>
    %161 = vector.shape_cast %160 : vector<1x2x2x32xf32> to vector<4x32xf32>
    %162 = vector.extract_strided_slice %149 {offsets = [0, 2, 0, 0], sizes = [1, 2, 2, 32], strides = [1, 1, 1, 1]} : vector<1x4x4x32xf32> to vector<1x2x2x32xf32>
    %163 = vector.shape_cast %162 : vector<1x2x2x32xf32> to vector<4x32xf32>
    %164 = vector.extract_strided_slice %149 {offsets = [0, 2, 1, 0], sizes = [1, 2, 2, 32], strides = [1, 1, 1, 1]} : vector<1x4x4x32xf32> to vector<1x2x2x32xf32>
    %165 = vector.shape_cast %164 : vector<1x2x2x32xf32> to vector<4x32xf32>
    %166 = vector.extract_strided_slice %149 {offsets = [0, 2, 2, 0], sizes = [1, 2, 2, 32], strides = [1, 1, 1, 1]} : vector<1x4x4x32xf32> to vector<1x2x2x32xf32>
    %167 = vector.shape_cast %166 : vector<1x2x2x32xf32> to vector<4x32xf32>
    %168 = tpu.concatenate %151, %153, %155, %157, %159, %161, %163, %165, %167 in 1 : vector<4x32xf32>, vector<4x32xf32>, vector<4x32xf32>, vector<4x32xf32>, vector<4x32xf32>, vector<4x32xf32>, vector<4x32xf32>, vector<4x32xf32>, vector<4x32xf32> -> vector<4x288xf32>
    %169 = arith.truncf %168 : vector<4x288xf32> to vector<4x288xbf16>
    %c0_131 = arith.constant 0 : index
    %c0_132 = arith.constant 0 : index
    %170 = vector.load %arg5[%c0_131, %c0_132] : memref<288x32xbf16, #tpu.memory_space<vmem>>, vector<288x32xbf16>
    %cst_133 = arith.constant dense<0.000000e+00> : vector<4x32xf32>
    %171 = tpu.matmul %169, %170, %cst_133 {dimension_numbers = #tpu.dot_dimension_numbers<[1], [0], [0], [1], [0, 0, 1, 1], [], []>} : vector<4x288xbf16>, vector<288x32xbf16>, vector<4x32xf32> -> vector<4x32xf32>
    %c0_134 = arith.constant 0 : index
    %c0_135 = arith.constant 0 : index
    %172 = vector.load %arg9[%c0_134, %c0_135] : memref<2x32xf32, #tpu.memory_space<vmem>>, vector<1x32xf32>
    %173 = vector.shape_cast %172 : vector<1x32xf32> to vector<32xf32>
    %c1_136 = arith.constant 1 : index
    %c0_137 = arith.constant 0 : index
    %174 = vector.load %arg9[%c1_136, %c0_137] : memref<2x32xf32, #tpu.memory_space<vmem>>, vector<1x32xf32>
    %175 = vector.shape_cast %174 : vector<1x32xf32> to vector<32xf32>
    %176 = vector.shape_cast %173 : vector<32xf32> to vector<1x32xf32>
    %177 = vector.broadcast %176 : vector<1x32xf32> to vector<4x32xf32>
    %178 = arith.mulf %171, %177 : vector<4x32xf32>
    %179 = vector.shape_cast %175 : vector<32xf32> to vector<1x32xf32>
    %180 = vector.broadcast %179 : vector<1x32xf32> to vector<4x32xf32>
    %181 = arith.addf %178, %180 : vector<4x32xf32>
    %cst_138 = arith.constant 0.000000e+00 : f32
    %182 = vector.broadcast %cst_138 : f32 to vector<4x32xf32>
    %183 = arith.maximumf %181, %182 : vector<4x32xf32>
    %184 = vector.shape_cast %183 : vector<4x32xf32> to vector<1x2x2x32xf32>
    %185 = vector.shape_cast %184 : vector<1x2x2x32xf32> to vector<1x1x2x2x32xf32>
    %cst_139 = arith.constant dense<0xFF800000> : vector<1x1x2x32xf32>
    %186 = vector.multi_reduction <maximumf>, %185, %cst_139 [2] : vector<1x1x2x2x32xf32> to vector<1x1x2x32xf32>
    %187 = vector.shape_cast %186 : vector<1x1x2x32xf32> to vector<1x1x1x2x32xf32>
    %cst_140 = arith.constant dense<0xFF800000> : vector<1x1x1x32xf32>
    %188 = vector.multi_reduction <maximumf>, %187, %cst_140 [3] : vector<1x1x1x2x32xf32> to vector<1x1x1x32xf32>
    %c0_141 = arith.constant 0 : index
    %c0_142 = arith.constant 0 : index
    %c0_143 = arith.constant 0 : index
    %c0_144 = arith.constant 0 : index
    %189 = vector.load %arg10[%c0_141, %c0_142, %c0_143, %c0_144] : memref<1x1x1x32xf32, #tpu.memory_space<vmem>>, vector<1x1x1x32xf32>
    tpu.vector_store %arg10[%c0_141, %c0_142, %c0_143, %c0_144], %188 {strides = array<i32>} : memref<1x1x1x32xf32, #tpu.memory_space<vmem>>, vector<1x1x1x32xf32>,
    return
  }
  func.func @transform_0(%arg0: i32) -> (i32, i32, i32, i32) {
    %c0_i32 = arith.constant 0 : i32
    %c0_i32_0 = arith.constant 0 : i32
    %c0_i32_1 = arith.constant 0 : i32
    %c0_i32_2 = arith.constant 0 : i32
    return %arg0, %c0_i32, %c0_i32_0, %c0_i32_1 : i32, i32, i32, i32
  }
  func.func @transform_1(%arg0: i32) -> (i32, i32) {
    %c0_i32 = arith.constant 0 : i32
    %c0_i32_0 = arith.constant 0 : i32
    %c0_i32_1 = arith.constant 0 : i32
    return %c0_i32, %c0_i32_0 : i32, i32
  }
  func.func @transform_2(%arg0: i32) -> (i32, i32) {
    %c0_i32 = arith.constant 0 : i32
    %c0_i32_0 = arith.constant 0 : i32
    %c0_i32_1 = arith.constant 0 : i32
    return %c0_i32, %c0_i32_0 : i32, i32
  }
  func.func @transform_3(%arg0: i32) -> (i32, i32) {
    %c0_i32 = arith.constant 0 : i32
    %c0_i32_0 = arith.constant 0 : i32
    %c0_i32_1 = arith.constant 0 : i32
    return %c0_i32, %c0_i32_0 : i32, i32
  }
  func.func @transform_4(%arg0: i32) -> (i32, i32) {
    %c0_i32 = arith.constant 0 : i32
    %c0_i32_0 = arith.constant 0 : i32
    %c0_i32_1 = arith.constant 0 : i32
    return %c0_i32, %c0_i32_0 : i32, i32
  }
  func.func @transform_5(%arg0: i32) -> (i32, i32) {
    %c0_i32 = arith.constant 0 : i32
    %c0_i32_0 = arith.constant 0 : i32
    %c0_i32_1 = arith.constant 0 : i32
    return %c0_i32, %c0_i32_0 : i32, i32
  }
  func.func @transform_6(%arg0: i32) -> (i32, i32) {
    %c0_i32 = arith.constant 0 : i32
    %c0_i32_0 = arith.constant 0 : i32
    %c0_i32_1 = arith.constant 0 : i32
    return %c0_i32, %c0_i32_0 : i32, i32
  }
  func.func @transform_7(%arg0: i32) -> (i32, i32) {
    %c0_i32 = arith.constant 0 : i32
    %c0_i32_0 = arith.constant 0 : i32
    %c0_i32_1 = arith.constant 0 : i32
    return %c0_i32, %c0_i32_0 : i32, i32
  }
  func.func @transform_8(%arg0: i32) -> (i32, i32) {
    %c0_i32 = arith.constant 0 : i32
    %c0_i32_0 = arith.constant 0 : i32
    %c0_i32_1 = arith.constant 0 : i32
    return %c0_i32, %c0_i32_0 : i32, i32
  }
  func.func @transform_9(%arg0: i32) -> (i32, i32, i32, i32) {
    %c0_i32 = arith.constant 0 : i32
    %c0_i32_0 = arith.constant 0 : i32
    %c0_i32_1 = arith.constant 0 : i32
    %c0_i32_2 = arith.constant 0 : i32
    return %arg0, %c0_i32, %c0_i32_0, %c0_i32_1 : i32, i32, i32, i32
  }
}

</mosaic_0001>

<bundles_post_ra>
// kernel: convnet4_forward.1
= control target key start
LH: loop header
LB: loop body
LE: loop exit
PB: predicated region body
PF: predicated region fallthrough
CT: control target
= control target key end

     0   :  { %14 = vsyncpa [#allocation7], 0  ;;  %s8665_s0 = inlined_call_operand.vmem [shape: f32[2,16,16,8], index: 0, kind: input, shape index: {}]   ;;  %s8666_s1 = inlined_call_operand.vmem [shape: bf16[72,32], index: 1, kind: input, shape index: {}]   ;;  %s8667_s2 = inlined_call_operand.vmem [shape: bf16[288,32], index: 2, kind: input, shape index: {}]   ;;  %s8668_s3 = inlined_call_operand.vmem [shape: bf16[288,32], index: 3, kind: input, shape index: {}]   ;;  %s8669_s4 = inlined_call_operand.vmem [shape: bf16[288,32], index: 4, kind: input, shape index: {}]   ;;  %s8670_s5 = inlined_call_operand.vmem [shape: f32[2,32], index: 5, kind: input, shape index: {}]   ;;  %s8671_s6 = inlined_call_operand.vmem [shape: f32[2,32], index: 6, kind: input, shape index: {}]   ;;  %s8672_s7 = inlined_call_operand.vmem [shape: f32[2,32], index: 7, kind: input, shape index: {}]   ;;  %s8673_s8 = inlined_call_operand.vmem [shape: f32[2,32], index: 8, kind: input, shape index: {}]   ;;  %s8674_s9 = inlined_call_operand.hbm [shape: f32[2,1,1,32], index: 9, kind: output, shape index: {}]  }
   0x1   :  { %16 = vsyncpa [#allocation7 + $0x1], 0  ;;  %s6421_s30 = smov 0   ;;  %s6423_s10 = smov 0  }
   0x2   :  { %s6425_s11 = smov 0   ;;  %s6427_s12 = smov 0  }
   0x3 LB: > { %s6442_s13 = sadd.s32 4294967295, %s6356_s12   ;;  %s5026_s14 = sadd.s32 4294967294, %s6356_s12   ;;  %s6356_s12 = sphi %s6427_s12, %s8691_s12   ;;  %s6352_s11 = sphi %s6425_s11, %s8690_s11   ;;  %s6348_s10 = sphi %s6423_s10, %s8689_s10   ;;  %s6344_s30 = sphi %s6421_s30, %s8688_s30  }
   0x4   : > { %s6446_s15 = sadd.s32 1, %s6356_s12   ;;  %s223_s16 = sadd.s32 1, %s6352_s11 }
   0x5   : > { %s220_s17 = ssub.s32 %s6356_s12, %s6446_s15  ;;  %p233_p0 = scmp.ne.s32.totalorder %s6352_s11, %s6348_s10 }
   0x6   : > { %p221_p1 = scmp.eq.s32.totalorder %s220_s17, 0  ;;  %p234_p2 = scmp.eq.s32.totalorder %s6442_s13, 1 }
   0x7   : > { %p239_p3 = scmp.ne.s32.totalorder %s6348_s10, %s6344_s30  ;;  %p240_p4 = scmp.eq.s32.totalorder %s5026_s14, 1 }
   0x8   : > { %s6457_s18 = scalar_select %p221_p1, %s6352_s11, %s223_s16  }
   0x9   : > { %p6459_p5 = por %p234_p2, %p233_p0  ;;  %p6463_p6 = por %p240_p4, %p239_p3 }
   0xa   : > { %p5029_p7 = scmp.ge.s32.totalorder %s6356_s12, 1  ;;  %p290_p8 = scmp.lt.s32.totalorder %s6356_s12, 3 }
   0xc   : > { %p291_p9 = pnand %p5029_p7, %p290_p8 }
   0xd   : > { %p325_p10 = scmp.lt.s32.totalorder (!%p291_p9), %s6442_s13, 1  ;;  %s6359_s26 = smov (!%p291_p9), 16  }
   0xe   : > { %294 = sbr.rel (%p291_p9) target bundleno = 1833 (0x729), region = 56  ;;  %s6360_s27 = smov (!%p291_p9), 8  }
   0xf   : > { %s6361_s28 = smov (!%p291_p9), 24   ;;  %s6362_s29 = smov (!%p291_p9), 32  }
  0x10   : > { %s6363_s14 = smov (!%p291_p9), 40   ;;  %s6364_s16 = smov (!%p291_p9), 48  }
  0x11   : > { %s6365_s17 = smov (!%p291_p9), 56   ;;  %s8680_s23 = smov (!%p291_p9), 64  }
  0x12   : > { %s323_s24 = sand.u32 (!%p291_p9), 1, %s6348_s10  }
  0x13   : > { %vm331_vm0 = vcmask 64512   ;;  %vm334_vm1 = vcmask 58368   ;;  %vm340_vm2 = vcmask 57344   ;;  %v6358_v0 = vmov 0.0   ;;  %s326_s21 = scalar_select %p325_p10, %s6442_s13, 1 }
  0x14   : > { %332 = vst.msk [vmem:[#allocation2] sm:$0xff] %vm331_vm0, %v6358_v0  ;;  %333 = vst.msk [vmem:[#allocation2 + $0x8] sm:$0xff] %vm331_vm0, %v6358_v0  ;;  %vm625_vm3 = vcmask 1045504   ;;  %vm544_vm4 = vcmask 1046528   ;;  %vm1598_vm5 = vcmask 261120   ;;  %vm1864_vm6 = vcmask 1043456  }
  0x15   : > { %335 = vst.msk [vmem:[#allocation2 + $0x10] sm:$0x3] %vm334_vm1, %v6358_v0  ;;  %339 = vst.msk [vmem:[#allocation2 + $0x1a8] sm:$0x3] %vm334_vm1, %v6358_v0  ;;  %s5143_s22 = sshll.u32 %s326_s21, 8  ;;  %s8675_s21 = smov 64  }
  0x16   : > { %337 = vst.msk [vmem:[#allocation2 + $0x198] sm:$0xff] %vm331_vm0, %v6358_v0  ;;  %338 = vst.msk [vmem:[#allocation2 + $0x1a0] sm:$0xff] %vm331_vm0, %v6358_v0  ;;  %s6556_s25 = scalar_lea.vmem %s8665_s0, %s5143_s22  ;;  %vm1532_vm7 = vcmask 130048   ;;  %vm1565_vm8 = vcmask 195584   ;;  %vm1631_vm9 = vcmask 326656   ;;  %vm1664_vm10 = vcmask 392192  }
  0x17   : > { %342 = vst.msk [vmem:[#allocation2 + $0x18] sm:$0x1] %vm340_vm2, %v6358_v0  ;;  %343 = vst.msk [vmem:[#allocation2 + $0x30] sm:$0x1] %vm340_vm2, %v6358_v0  ;;  %v379_v1 = vld [vmem:[%s6556_s25 + $0x10] sm:$0xff]  ;;  %v380_v2 = vld [vmem:[%s6556_s25 + $0x18] sm:$0xff] }
  0x18   : > { %344 = vst.msk [vmem:[#allocation2 + $0x48] sm:$0x1] %vm340_vm2, %v6358_v0  ;;  %345 = vst.msk [vmem:[#allocation2 + $0x60] sm:$0x1] %vm340_vm2, %v6358_v0  ;;  %v377_v3 = vld [vmem:[%s6556_s25] sm:$0xff]  ;;  %v378_v5 = vld [vmem:[%s6556_s25 + $0x8] sm:$0xff] }
  0x19   : > { %346 = vst.msk [vmem:[#allocation2 + $0x78] sm:$0x1] %vm340_vm2, %v6358_v0  ;;  %347 = vst.msk [vmem:[#allocation2 + $0x90] sm:$0x1] %vm340_vm2, %v6358_v0  ;;  %v381_v6 = vld [vmem:[%s6556_s25 + $0x20] sm:$0xff]  ;;  %v382_v11 = vld [vmem:[%s6556_s25 + $0x28] sm:$0xff] }
  0x1a   : > { %348 = vst.msk [vmem:[#allocation2 + $0xa8] sm:$0x1] %vm340_vm2, %v6358_v0  ;;  %349 = vst.msk [vmem:[#allocation2 + $0xc0] sm:$0x1] %vm340_vm2, %v6358_v0  ;;  %v383_v16 = vld [vmem:[%s6556_s25 + $0x30] sm:$0xff]  ;;  %v384_v17 = vld [vmem:[%s6556_s25 + $0x38] sm:$0xff] }
  0x1b   : > { %350 = vst.msk [vmem:[#allocation2 + $0xd8] sm:$0x1] %vm340_vm2, %v6358_v0  ;;  %351 = vst.msk [vmem:[#allocation2 + $0xf0] sm:$0x1] %vm340_vm2, %v6358_v0  ;;  %v6561_v4 = vld [vmem:[#allocation2 + $0x8] sm:$0xff]  ;;  %v385_v18 = vld [vmem:[%s6556_s25 + $0x40] sm:$0xff] }
  0x1c   : > { %352 = vst.msk [vmem:[#allocation2 + $0x108] sm:$0x1] %vm340_vm2, %v6358_v0  ;;  %353 = vst.msk [vmem:[#allocation2 + $0x120] sm:$0x1] %vm340_vm2, %v6358_v0  ;;  %v627_v9 = vrot.slane %v6561_v4, 2  ;;  %v546_v10 = vrot.slane %v6561_v4, 1 }
  0x1d   : > { %354 = vst.msk [vmem:[#allocation2 + $0x138] sm:$0x1] %vm340_vm2, %v6358_v0  ;;  %355 = vst.msk [vmem:[#allocation2 + $0x150] sm:$0x1] %vm340_vm2, %v6358_v0  ;;  %v386_v19 = vld [vmem:[%s6556_s25 + $0x48] sm:$0xff]  ;;  %v387_v20 = vld [vmem:[%s6556_s25 + $0x50] sm:$0xff] }
  0x1e   : > { %356 = vst.msk [vmem:[#allocation2 + $0x168] sm:$0x1] %vm340_vm2, %v6358_v0  ;;  %357 = vst.msk [vmem:[#allocation2 + $0x180] sm:$0x1] %vm340_vm2, %v6358_v0  ;;  %v388_v25 = vld [vmem:[%s6556_s25 + $0x58] sm:$0xff]  ;;  %v389_v26 = vld [vmem:[%s6556_s25 + $0x60] sm:$0xff] }
  0x1f   : > { %360 = vst.msk [vmem:[#allocation2 + $0x29] sm:$0x1] %vm340_vm2, %v6358_v0  ;;  %361 = vst.msk [vmem:[#allocation2 + $0x41] sm:$0x1] %vm340_vm2, %v6358_v0  ;;  %v390_v27 = vld [vmem:[%s6556_s25 + $0x68] sm:$0xff]  ;;  %v391_v30 = vld [vmem:[%s6556_s25 + $0x70] sm:$0xff] }
  0x20   : > { %362 = vst.msk [vmem:[#allocation2 + $0x59] sm:$0x1] %vm340_vm2, %v6358_v0  ;;  %363 = vst.msk [vmem:[#allocation2 + $0x71] sm:$0x1] %vm340_vm2, %v6358_v0  ;;  %v392_v31 = vld [vmem:[%s6556_s25 + $0x78] sm:$0xff]  ;;  %v393_v32 = vld [vmem:[%s6556_s25 + $0x80] sm:$0xff] }
  0x21   : > { %364 = vst.msk [vmem:[#allocation2 + $0x89] sm:$0x1] %vm340_vm2, %v6358_v0  ;;  %365 = vst.msk [vmem:[#allocation2 + $0xa1] sm:$0x1] %vm340_vm2, %v6358_v0  ;;  %v394_v33 = vld [vmem:[%s6556_s25 + $0x88] sm:$0xff]  ;;  %v395_v34 = vld [vmem:[%s6556_s25 + $0x90] sm:$0xff] }
  0x22   : > { %366 = vst.msk [vmem:[#allocation2 + $0xb9] sm:$0x1] %vm340_vm2, %v6358_v0  ;;  %367 = vst.msk [vmem:[#allocation2 + $0xd1] sm:$0x1] %vm340_vm2, %v6358_v0  ;;  %v396_v35 = vld [vmem:[%s6556_s25 + $0x98] sm:$0xff]  ;;  %vm1697_vm11 = vcmask 457728  }
  0x23   : > { %368 = vst.msk [vmem:[#allocation2 + $0xe9] sm:$0x1] %vm340_vm2, %v6358_v0  ;;  %369 = vst.msk [vmem:[#allocation2 + $0x101] sm:$0x1] %vm340_vm2, %v6358_v0  ;;  %vm1730_vm12 = vcmask 523264   ;;  %vm1815_vm13 = vcmask 588800  }
  0x24   : > { %370 = vst.msk [vmem:[#allocation2 + $0x119] sm:$0x1] %vm340_vm2, %v6358_v0  ;;  %371 = vst.msk [vmem:[#allocation2 + $0x131] sm:$0x1] %vm340_vm2, %v6358_v0  ;;  %vm2535_vm14 = vcmask 254976   ;;  %vm2989_vm15 = vcmask 253952  }
  0x25   : > { %372 = vst.msk [vmem:[#allocation2 + $0x149] sm:$0x1] %vm340_vm2, %v6358_v0  ;;  %373 = vst.msk [vmem:[#allocation2 + $0x161] sm:$0x1] %vm340_vm2, %v6358_v0  ;;  %vm3076_vm1 = vcmask 1042434   ;;  %s324_s22 = scalar_lea.vmem [#allocation6], %s323_s24 }
  0x26   : > { %374 = vst.msk [vmem:[#allocation2 + $0x179] sm:$0x1] %vm340_vm2, %v6358_v0  ;;  %375 = vst.msk [vmem:[#allocation2 + $0x191] sm:$0x1] %vm340_vm2, %v6358_v0 }
  0x27   : > { %341 = vst.msk [vmem:[#allocation2] sm:$0x1] %vm340_vm2, %v6358_v0  ;;  %359 = vst.msk [vmem:[#allocation2 + $0x11] sm:$0x1] %vm340_vm2, %v6358_v0 }
  0x28   : > { %376 = vst.msk [vmem:[#allocation2 + $0x1a9] sm:$0x1] %vm340_vm2, %v6358_v0  ;;  %358 = vst.msk [vmem:[#allocation2 + $0x198] sm:$0x1] %vm340_vm2, %v6358_v0  ;;  %vm3078_vm2 = vcmask 1043459  }
  0x29   : > { %412 = vst.msk [vmem:[#allocation2 + $0x31] sm:$0xff] %vm331_vm0, %v379_v1  ;;  %413 = vst.msk [vmem:[#allocation2 + $0x39] sm:$0xff] %vm331_vm0, %v380_v2 }
  0x2a   : > { %410 = vst.msk [vmem:[#allocation2 + $0x19] sm:$0xff] %vm331_vm0, %v377_v3  ;;  %411 = vst.msk [vmem:[#allocation2 + $0x21] sm:$0xff] %vm331_vm0, %v378_v5 }
  0x2b   : > { %414 = vst.msk [vmem:[#allocation2 + $0x49] sm:$0xff] %vm331_vm0, %v381_v6  ;;  %415 = vst.msk [vmem:[#allocation2 + $0x51] sm:$0xff] %vm331_vm0, %v382_v11  ;;  %v397_v11 = vld [vmem:[%s6556_s25 + $0xa0] sm:$0xff] }
  0x2c   : > { %416 = vst.msk [vmem:[#allocation2 + $0x61] sm:$0xff] %vm331_vm0, %v383_v16  ;;  %417 = vst.msk [vmem:[#allocation2 + $0x69] sm:$0xff] %vm331_vm0, %v384_v17 }
  0x2d   : > { %418 = vst.msk [vmem:[#allocation2 + $0x79] sm:$0xff] %vm331_vm0, %v385_v18  ;;  %419 = vst.msk [vmem:[#allocation2 + $0x81] sm:$0xff] %vm331_vm0, %v386_v19 }
  0x2e   : > { %v6568_v7 = vld [vmem:[#allocation2] sm:$0xff]  ;;  %v444_v8 = vld [vmem:[#allocation2 + $0x10] sm:$0x3]  ;;  %420 = vst.msk [vmem:[#allocation2 + $0x91] sm:$0xff] %vm331_vm0, %v387_v20  ;;  %421 = vst.msk [vmem:[#allocation2 + $0x99] sm:$0xff] %vm331_vm0, %v388_v25 }
  0x2f   : > { %v626_v12 = vrot.slane %v6568_v7, 2  ;;  %v629_v13 = vrot.slane %v444_v8, 2  ;;  %v545_v14 = vrot.slane %v6568_v7, 1  ;;  %v548_v15 = vrot.slane %v444_v8, 1  ;;  %422 = vst.msk [vmem:[#allocation2 + $0xa9] sm:$0xff] %vm331_vm0, %v389_v26  ;;  %423 = vst.msk [vmem:[#allocation2 + $0xb1] sm:$0xff] %vm331_vm0, %v390_v27 }
  0x30   : > { %424 = vst.msk [vmem:[#allocation2 + $0xc1] sm:$0xff] %vm331_vm0, %v391_v30  ;;  %425 = vst.msk [vmem:[#allocation2 + $0xc9] sm:$0xff] %vm331_vm0, %v392_v31  ;;  %v448_v36 = vld [vmem:[#allocation2 + $0x30] sm:$0xff]  ;;  %v449_v37 = vld [vmem:[#allocation2 + $0x38] sm:$0xff] }
  0x31   : > { %v628_v21 = vsel %vm625_vm3, %v626_v12, %v627_v9  ;;  %v630_v22 = vsel %vm625_vm3, %v627_v9, %v629_v13  ;;  %v547_v23 = vsel %vm544_vm4, %v545_v14, %v546_v10  ;;  %v549_v24 = vsel %vm544_vm4, %v546_v10, %v548_v15  ;;  %426 = vst.msk [vmem:[#allocation2 + $0xd9] sm:$0xff] %vm331_vm0, %v393_v32  ;;  %v6613_v38 = vld [vmem:[#allocation2 + $0x18] sm:$0xff]  ;;  %v6618_v40 = vld [vmem:[#allocation2 + $0x20] sm:$0xff]  ;;  %v447_v41 = vld [vmem:[#allocation2 + $0x28] sm:$0x3] }
  0x32   : > { %v5388_v28 = vpack.i.bf16 %v630_v22, %v628_v21  ;;  %v5383_v29 = vpack.i.bf16 %v549_v24, %v547_v23  ;;  %2984 = vst.msk [vmem:[#allocation3] sm:$0xff] %vm1598_vm5, %v6358_v0  ;;  %2987 = vst.msk [vmem:[#allocation3 + $0x90] sm:$0xff] %vm1598_vm5, %v6358_v0  ;;  %v5398_v39 = vpack.i.bf16 %v449_v37, %v448_v36  ;;  %v631_v42 = vrot.slane %v6613_v38, 2  ;;  %v450_v49 = vld [vmem:[#allocation2 + $0x40] sm:$0x3]  ;;  %v451_v5 = vld [vmem:[#allocation2 + $0x48] sm:$0xff] }
  0x33   : > { %427 = vst.msk [vmem:[#allocation2 + $0xe1] sm:$0xff] %vm331_vm0, %v394_v33  ;;  %428 = vst.msk [vmem:[#allocation2 + $0xf1] sm:$0xff] %vm331_vm0, %v395_v34  ;;  %v550_v43 = vrot.slane %v6613_v38, 1  ;;  %v555_v44 = vrot.slane %v448_v36, 1  ;;  %v5393_v45 = vpack.i.bf16 %v6618_v40, %v6613_v38  ;;  %v632_v46 = vrot.slane %v6618_v40, 2  ;;  %v452_v6 = vld [vmem:[#allocation2 + $0x50] sm:$0xff] }
  0x34   : > { %5389 = vrot.lane.b32.xlu1 %v5388_v28, %s6359_s26  ;;  %5384 = vrot.lane.b32.xlu0 %v5383_v29, %s6360_s27  ;;  %429 = vst.msk [vmem:[#allocation2 + $0xf9] sm:$0xff] %vm331_vm0, %v396_v35  ;;  %v634_v47 = vrot.slane %v447_v41, 2  ;;  %v551_v48 = vrot.slane %v6618_v40, 1  ;;  %v553_v50 = vrot.slane %v447_v41, 1  ;;  %v556_v51 = vrot.slane %v449_v37, 1  ;;  %v398_v12 = vld [vmem:[%s6556_s25 + $0xa8] sm:$0xff] }
  0x35   : > { %v558_v52 = vrot.slane %v450_v49, 1  ;;  %v636_v53 = vrot.slane %v448_v36, 2  ;;  %v633_v54 = vsel %vm625_vm3, %v631_v42, %v632_v46  ;;  %v637_v57 = vrot.slane %v449_v37, 2  ;;  %v453_v8 = vld [vmem:[#allocation2 + $0x58] sm:$0x3]  ;;  %430 = vst.msk [vmem:[#allocation2 + $0x109] sm:$0xff] %vm331_vm0, %v397_v11 }
  0x36   : > { %v635_v55 = vsel %vm625_vm3, %v632_v46, %v634_v47  ;;  %v552_v56 = vsel %vm544_vm4, %v550_v43, %v551_v48  ;;  %v554_v59 = vsel %vm544_vm4, %v551_v48, %v553_v50  ;;  %v557_v60 = vsel %vm544_vm4, %v555_v44, %v556_v51  ;;  %431 = vst.msk [vmem:[#allocation2 + $0x111] sm:$0xff] %vm331_vm0, %v398_v12  ;;  %v454_v24 = vld [vmem:[#allocation2 + $0x60] sm:$0xff]  ;;  %v455_v26 = vld [vmem:[#allocation2 + $0x68] sm:$0xff]  ;;  %v456_v27 = vld [vmem:[#allocation2 + $0x70] sm:$0x3] }
  0x37   : > { %v5408_v58 = vpack.i.bf16 %v635_v55, %v633_v54  ;;  %v559_v61 = vsel %vm544_vm4, %v556_v51, %v558_v52  ;;  %v5403_v62 = vpack.i.bf16 %v554_v59, %v552_v56  ;;  %v639_v63 = vrot.slane %v450_v49, 2  ;;  %v399_v28 = vld [vmem:[%s6556_s25 + $0xb0] sm:$0xff]  ;;  %v400_v29 = vld [vmem:[%s6556_s25 + $0xb8] sm:$0xff]  ;;  %v6188_v33 = vld [vmem:[%s8666_s1 + $0x20] ss:$0 sps:$4 sm:$0xff]  }
  0x38   : > { %5399 = vrot.lane.b32.xlu1 %v5398_v39, %s6361_s28  ;;  %5394 = vrot.lane.b32.xlu0 %v5393_v45, %s6361_s28  ;;  %v5418_v1 = vpack.i.bf16 %v559_v61, %v557_v60  ;;  %v638_v2 = vsel %vm625_vm3, %v636_v53, %v637_v57  ;;  %v560_v10 = vrot.slane %v451_v5, 1  ;;  %v561_v13 = vrot.slane %v452_v6, 1  ;;  %432 = vst.msk [vmem:[#allocation2 + $0x121] sm:$0xff] %vm331_vm0, %v399_v28  ;;  %v457_v42 = vld [vmem:[#allocation2 + $0x78] sm:$0xff]  ;;  %v458_v45 = vld [vmem:[#allocation2 + $0x80] sm:$0xff]  ;;  %v402_v51 = vld [vmem:[%s6556_s25 + $0xc8] sm:$0xff] }
  0x39   : > { %v640_v3 = vsel %vm625_vm3, %v637_v57, %v639_v63  ;;  %v563_v14 = vrot.slane %v453_v8, 1  ;;  %v5438_v15 = vpack.i.bf16 %v452_v6, %v451_v5  ;;  %v641_v19 = vrot.slane %v451_v5, 2  ;;  %433 = vst.msk [vmem:[#allocation2 + $0x129] sm:$0xff] %vm331_vm0, %v400_v29  ;;  %v6189_v43 = vld [vmem:[%s8666_s1 + $0x18] sm:$0xff]   ;;  %v459_v49 = vld [vmem:[#allocation2 + $0x88] sm:$0x3]  ;;  %5331 = vmatprep.subr.msk.bf16.mxu0 %vm1864_vm6, %v6188_v33 }
  0x3a   : > { %v5433_v9 = vpack.i.bf16 %v640_v3, %v638_v2  ;;  %v562_v16 = vsel %vm544_vm4, %v560_v10, %v561_v13  ;;  %v642_v20 = vrot.slane %v452_v6, 2  ;;  %v644_v21 = vrot.slane %v453_v8, 2  ;;  %v401_v50 = vld [vmem:[%s6556_s25 + $0xc0] sm:$0xff]  ;;  %v6190_v53 = vld [vmem:[%s8666_s1 + $0x10] sm:$0xff]   ;;  %435 = vst.msk [vmem:[#allocation2 + $0x141] sm:$0xff] %vm331_vm0, %v402_v51  ;;  %v6191_v57 = vld [vmem:[%s8666_s1 + $0x8] sm:$0xff]  }
  0x3b   : > { %v564_v17 = vsel %vm544_vm4, %v561_v13, %v563_v14  ;;  %v565_v30 = vrot.slane %v454_v24, 1  ;;  %v566_v31 = vrot.slane %v455_v26, 1  ;;  %v568_v32 = vrot.slane %v456_v27, 1  ;;  %434 = vst.msk [vmem:[#allocation2 + $0x139] sm:$0xff] %vm331_vm0, %v401_v50  ;;  %v6192_v61 = vld [vmem:[%s8666_s1] sm:$0xff]   ;;  %v460_v6 = vld [vmem:[#allocation2 + $0x90] sm:$0xff] }
  0x3c   : > { %5409 = vrot.lane.b32.xlu1 %v5408_v58, %s6359_s26  ;;  %5404 = vrot.lane.b32.xlu0 %v5403_v62, %s6360_s27  ;;  %v5448_v18 = vpack.i.bf16 %v564_v17, %v562_v16  ;;  %v643_v22 = vsel %vm625_vm3, %v641_v19, %v642_v20  ;;  %v645_v23 = vsel %vm625_vm3, %v642_v20, %v644_v21  ;;  %v646_v35 = vrot.slane %v454_v24, 2  ;;  %v462_v10 = vld [vmem:[#allocation2 + $0xa0] sm:$0x3]  ;;  %v403_v12 = vld [vmem:[%s6556_s25 + $0xd0] sm:$0xff]  ;;  %v404_v13 = vld [vmem:[%s6556_s25 + $0xd8] sm:$0xff] }
  0x3d   : > { %v5463_v25 = vpack.i.bf16 %v645_v23, %v643_v22  ;;  %v5488_v34 = vpack.i.bf16 %v455_v26, %v454_v24  ;;  %v567_v36 = vsel %vm544_vm4, %v565_v30, %v566_v31  ;;  %v569_v37 = vsel %vm544_vm4, %v566_v31, %v568_v32  ;;  %436 = vst.msk [vmem:[#allocation2 + $0x151] sm:$0xff] %vm331_vm0, %v403_v12  ;;  %v405_v28 = vld [vmem:[%s6556_s25 + $0xe0] sm:$0xff]  ;;  %v406_v29 = vld [vmem:[%s6556_s25 + $0xe8] sm:$0xff]  ;;  %v408_v50 = vld [vmem:[%s6556_s25 + $0xf8] sm:$0xff] }
  0x3e   : > { %v649_v41 = vrot.slane %v456_v27, 2  ;;  %v5498_v44 = vpack.i.bf16 %v569_v37, %v567_v36  ;;  %v1866_v46 = vsel %vm1864_vm6, %v6188_v33, 0  ;;  %v570_v52 = vrot.slane %v457_v42, 1  ;;  %437 = vst.msk [vmem:[#allocation2 + $0x159] sm:$0xff] %vm331_vm0, %v404_v13  ;;  %v465_v27 = vld [vmem:[#allocation2 + $0xb8] sm:$0x3] }
  0x3f   : > { %5262 = vmatpush3.bf16.msra.mxu0 %v1866_v46  ;;  %v571_v55 = vrot.slane %v458_v45, 1  ;;  %v573_v56 = vrot.slane %v459_v49, 1  ;;  %v651_v63 = vrot.slane %v457_v42, 2  ;;  %v654_v2 = vrot.slane %v459_v49, 2  ;;  %438 = vst.msk [vmem:[#allocation2 + $0x169] sm:$0xff] %vm331_vm0, %v405_v28  ;;  %439 = vst.msk [vmem:[#allocation2 + $0x171] sm:$0xff] %vm331_vm0, %v406_v29 }
  0x40   : > { %5419 = vrot.lane.b32.xlu1 %v5418_v1, %s6362_s29  ;;  %5414 = vrot.lane.b32.xlu0 %v5403_v62, %s6362_s29  ;;  %v575_v11 = vrot.slane %v460_v6, 1  ;;  %v656_v17 = vrot.slane %v460_v6, 2  ;;  %v659_v21 = vrot.slane %v462_v10, 2  ;;  %v583_v33 = vrot.slane %v465_v27, 1  ;;  %v466_v46 = vld [vmem:[#allocation2 + $0xc0] sm:$0xff]  ;;  %v407_v49 = vld [vmem:[%s6556_s25 + $0xf0] sm:$0xff] }
  0x41   : > { %5263 = vmatprep.subr.bf16.mxu0 %v6189_v43  ;;  %v572_v59 = vsel %vm544_vm4, %v570_v52, %v571_v55  ;;  %v574_v60 = vsel %vm544_vm4, %v571_v55, %v573_v56  ;;  %440 = vst.msk [vmem:[#allocation2 + $0x181] sm:$0xff] %vm331_vm0, %v407_v49  ;;  %441 = vst.msk [vmem:[#allocation2 + $0x189] sm:$0xff] %vm331_vm0, %v408_v50  ;;  %v585_v51 = vrot.slane %v466_v46, 1  ;;  %v666_v55 = vrot.slane %v466_v46, 2  ;;  %s4971_s25 = sshll.u32 %s324_s22, 4  ;;  %s4972_s25 = int_to_ptr.vmem [resolvable:$true] %s4971_s25 }
  0x42   : > { %v5528_v62 = vpack.i.bf16 %v574_v60, %v572_v59  ;;  %2985 = vst.msk [vmem:[#allocation3 + $0x8] sm:$0x3] %vm2535_vm14, %v6358_v0  ;;  %2988 = vst.msk [vmem:[#allocation3 + $0x98] sm:$0x3] %vm2535_vm14, %v6358_v0  ;;  %vm3080_vm6 = vcmask 1044484  }
  0x43   : > { %5264 = vmatpush3.bf16.msra.mxu0 %v6189_v43  ;;  %2990 = vst.msk [vmem:[#allocation3] sm:$0x1] %vm2989_vm15, %v6358_v0  ;;  %2991 = vst.msk [vmem:[#allocation3 + $0x10] sm:$0x1] %vm2989_vm15, %v6358_v0 }
  0x44   : > { %5434 = vrot.lane.b32.xlu1 %v5433_v9, %s6363_s14  ;;  %5424 = vrot.lane.b32.xlu0 %v5408_v58, %s6363_s14  ;;  %v5518_v58 = vpack.i.bf16 %v458_v45, %v457_v42  ;;  %v664_v42 = vrot.slane %v465_v27, 2  ;;  %3000 = vst.msk [vmem:[#allocation3 + $0x9] sm:$0x1] %vm2989_vm15, %v6358_v0  ;;  %3001 = vst.msk [vmem:[#allocation3 + $0x19] sm:$0x1] %vm2989_vm15, %v6358_v0 }
  0x45   : > { %5265 = vmatprep.subr.bf16.mxu0 %v6190_v53  ;;  %2992 = vst.msk [vmem:[#allocation3 + $0x20] sm:$0x1] %vm2989_vm15, %v6358_v0  ;;  %2993 = vst.msk [vmem:[#allocation3 + $0x30] sm:$0x1] %vm2989_vm15, %v6358_v0 }
  0x46   : > { %2994 = vst.msk [vmem:[#allocation3 + $0x40] sm:$0x1] %vm2989_vm15, %v6358_v0  ;;  %2995 = vst.msk [vmem:[#allocation3 + $0x50] sm:$0x1] %vm2989_vm15, %v6358_v0 }
  0x47   : > { %5266 = vmatpush3.bf16.msra.mxu0 %v6190_v53  ;;  %2996 = vst.msk [vmem:[#allocation3 + $0x60] sm:$0x1] %vm2989_vm15, %v6358_v0  ;;  %2997 = vst.msk [vmem:[#allocation3 + $0x70] sm:$0x1] %vm2989_vm15, %v6358_v0 }
  0x48   : > { %5439 = vrot.lane.b32.xlu1 %v5438_v15, %s6364_s16  ;;  %5429 = vrot.lane.b32.xlu0 %v5398_v39, %s6364_s16  ;;  %v647_v39 = vrot.slane %v455_v26, 2  ;;  %v464_v26 = vld [vmem:[#allocation2 + $0xb0] sm:$0xff]  ;;  %2998 = vst.msk [vmem:[#allocation3 + $0x80] sm:$0x1] %vm2989_vm15, %v6358_v0  ;;  %2999 = vst.msk [vmem:[#allocation3 + $0x90] sm:$0x1] %vm2989_vm15, %v6358_v0 }
  0x49   : > { %5267 = vmatprep.subr.bf16.mxu0 %v6191_v57  ;;  %v581_v32 = vrot.slane %v464_v26, 1  ;;  %3002 = vst.msk [vmem:[#allocation3 + $0x29] sm:$0x1] %vm2989_vm15, %v6358_v0  ;;  %3003 = vst.msk [vmem:[#allocation3 + $0x39] sm:$0x1] %vm2989_vm15, %v6358_v0 }
  0x4a   : > { %v648_v47 = vsel %vm625_vm3, %v646_v35, %v647_v39  ;;  %v650_v48 = vsel %vm625_vm3, %v647_v39, %v649_v41  ;;  %v662_v41 = vrot.slane %v464_v26, 2  ;;  %3004 = vst.msk [vmem:[#allocation3 + $0x49] sm:$0x1] %vm2989_vm15, %v6358_v0  ;;  %3005 = vst.msk [vmem:[#allocation3 + $0x59] sm:$0x1] %vm2989_vm15, %v6358_v0 }
  0x4b   : > { %v5508_v54 = vpack.i.bf16 %v650_v48, %v648_v47  ;;  %5268 = vmatpush3.bf16.msra.mxu0 %v6191_v57  ;;  %v584_v36 = vsel %vm544_vm4, %v581_v32, %v583_v33  ;;  %v467_v47 = vld [vmem:[#allocation2 + $0xc8] sm:$0xff]  ;;  %v468_v48 = vld [vmem:[#allocation2 + $0xd0] sm:$0x3]  ;;  %3006 = vst.msk [vmem:[#allocation3 + $0x69] sm:$0x1] %vm2989_vm15, %v6358_v0 }
  0x4c   : > { %5449 = vrot.lane.b32.xlu1 %v5448_v18, %s6365_s17  ;;  %5444 = vrot.lane.b32.xlu0 %v5418_v1, %s6365_s17  ;;  %v586_v52 = vrot.slane %v467_v47, 1  ;;  %v588_v53 = vrot.slane %v468_v48, 1  ;;  %v669_v59 = vrot.slane %v468_v48, 2  ;;  %3007 = vst.msk [vmem:[#allocation3 + $0x79] sm:$0x1] %vm2989_vm15, %v6358_v0 }
  0x4d   : > { %5269 = vmatprep.subr.bf16.mxu0 %v6192_v61  ;;  %3008 = vst.msk [vmem:[#allocation3 + $0x89] sm:$0x1] %vm2989_vm15, %v6358_v0  ;;  %3009 = vst.msk [vmem:[#allocation3 + $0x99] sm:$0x1] %vm2989_vm15, %v6358_v0 }
  0x4e   : > { %v587_v56 = vsel %vm544_vm4, %v585_v51, %v586_v52  ;;  %v589_v57 = vsel %vm544_vm4, %v586_v52, %v588_v53  ;;  %4012 = vst.msk [vmem:[#allocation4 + $0x8] sm:$0x1] %vm2989_vm15, %v6358_v0  ;;  %4013 = vst.msk [vmem:[#allocation4 + $0x10] sm:$0x1] %vm2989_vm15, %v6358_v0 }
  0x4f   : > { %5270 = vmatpush3.bf16.msra.mxu0 %v6192_v61  ;;  %v5658_v60 = vpack.i.bf16 %v589_v57, %v587_v56  ;;  %4014 = vst.msk [vmem:[#allocation4 + $0x18] sm:$0x1] %vm2989_vm15, %v6358_v0  ;;  %4015 = vst.msk [vmem:[#allocation4 + $0x20] sm:$0x1] %vm2989_vm15, %v6358_v0 }
  0x50   : > { %5459 = vrot.lane.b32.xlu1 %v5418_v1, %s6360_s27  ;;  %5454 = vrot.lane.b32.xlu0 %v5433_v9, %s8675_s21  ;;  %v652_v1 = vrot.slane %v458_v45, 2  ;;  %4018 = vst.msk [vmem:[#allocation4 + $0xd] sm:$0x1] %vm2989_vm15, %v6358_v0  ;;  %4019 = vst.msk [vmem:[#allocation4 + $0x15] sm:$0x1] %vm2989_vm15, %v6358_v0 }
  0x51   : > { %4020 = vst.msk [vmem:[#allocation4 + $0x1d] sm:$0x1] %vm2989_vm15, %v6358_v0  ;;  %4021 = vst.msk [vmem:[#allocation4 + $0x25] sm:$0x1] %vm2989_vm15, %v6358_v0 }
  0x52   : > { %v653_v3 = vsel %vm625_vm3, %v651_v63, %v652_v1  ;;  %v655_v5 = vsel %vm625_vm3, %v652_v1, %v654_v2  ;;  %v469_v63 = vld [vmem:[#allocation2 + $0xd8] sm:$0xff]  ;;  %v470_v1 = vld [vmem:[#allocation2 + $0xe0] sm:$0xff]  ;;  %v471_v2 = vld [vmem:[#allocation2 + $0xe8] sm:$0x3]  ;;  %4516 = vst.msk [vmem:[#allocation5 + $0x4] sm:$0x1] %vm2989_vm15, %v6358_v0 }
  0x53   : > { %v5543_v8 = vpack.i.bf16 %v655_v5, %v653_v3  ;;  %v590_v5 = vrot.slane %v469_v63, 1  ;;  %4517 = vst.msk [vmem:[#allocation5 + $0x8] sm:$0x1] %vm2989_vm15, %v6358_v0  ;;  %4520 = vst.msk [vmem:[#allocation5 + $0x7] sm:$0x1] %vm2989_vm15, %v6358_v0 }
  0x54   : > { %5469 = vrot.lane.b32.xlu1 %v5448_v18, %s6360_s27  ;;  %5464 = vrot.lane.b32.xlu0 %v5463_v25, %s8675_s21  ;;  %4521 = vst.msk [vmem:[#allocation5 + $0xb] sm:$0x1] %vm2989_vm15, %v6358_v0  ;;  %s5140_s21 = sshll.u32 %s6442_s13, 4 }
  0x58   : > { %5479 = vrot.lane.b32.xlu1 %v5463_v25, %s6359_s26  ;;  %5474 = vrot.lane.b32.xlu0 %v5433_v9, %s6359_s26  ;;  %v461_v9 = vld [vmem:[#allocation2 + $0x98] sm:$0xff] }
  0x59   : > { %v576_v14 = vrot.slane %v461_v9, 1  ;;  %v5568_v16 = vpack.i.bf16 %v461_v9, %v460_v6  ;;  %v657_v20 = vrot.slane %v461_v9, 2  ;;  %v591_v6 = vrot.slane %v470_v1, 1 }
  0x5a   : > { %v6756_v9 = vpack.i.bf16 %v470_v1, %v469_v63 }
  0x5b   : > { %v658_v23 = vsel %vm625_vm3, %v656_v17, %v657_v20  ;;  %v660_v24 = vsel %vm625_vm3, %v657_v20, %v659_v21  ;;  %v674_v17 = vrot.slane %v471_v2, 2 }
  0x5c   : > { %5489 = vrot.lane.b32.xlu1 %v5488_v34, %s6361_s28  ;;  %5484 = vrot.lane.b32.xlu0 %v5438_v15, %s6361_s28  ;;  %v578_v15 = vrot.slane %v462_v10, 1  ;;  %v5588_v30 = vpack.i.bf16 %v660_v24, %v658_v23  ;;  %v592_v10 = vsel %vm544_vm4, %v590_v5, %v591_v6  ;;  %v473_v23 = vld [vmem:[#allocation2 + $0xf8] sm:$0xff]  ;;  %v474_v24 = vld [vmem:[#allocation2 + $0x100] sm:$0x3] }
  0x5d   : > { %v596_v29 = vrot.slane %v473_v23, 1 }
  0x5e   : > { %v579_v19 = vsel %vm544_vm4, %v576_v14, %v578_v15  ;;  %v671_v15 = vrot.slane %v469_v63, 2 }
  0x60   : > { %5499 = vrot.lane.b32.xlu1 %v5498_v44, %s6362_s29  ;;  %5494 = vrot.lane.b32.xlu0 %v5448_v18, %s6362_s29  ;;  %v577_v18 = vsel %vm544_vm4, %v575_v11, %v576_v14 }
  0x61   : > { %v5578_v22 = vpack.i.bf16 %v579_v19, %v577_v18 }
  0x64   : > { %5509 = vrot.lane.b32.xlu1 %v5508_v54, %s6363_s14  ;;  %5504 = vrot.lane.b32.xlu0 %v5463_v25, %s6363_s14  ;;  %v463_v25 = vld [vmem:[#allocation2 + $0xa8] sm:$0xff] }
  0x65   : > { %v580_v31 = vrot.slane %v463_v25, 1  ;;  %v661_v39 = vrot.slane %v463_v25, 2 }
  0x67   : > { %v582_v35 = vsel %vm544_vm4, %v580_v31, %v581_v32  ;;  %v663_v43 = vsel %vm625_vm3, %v661_v39, %v662_v41 }
  0x68   : > { %5519 = vrot.lane.b32.xlu1 %v5518_v58, %s6364_s16  ;;  %5514 = vrot.lane.b32.xlu0 %v5488_v34, %s6364_s16  ;;  %v5598_v34 = vpack.i.bf16 %v464_v26, %v463_v25  ;;  %v5608_v37 = vpack.i.bf16 %v584_v36, %v582_v35  ;;  %v6789_v35 = vld [vmem:[#allocation2 + $0x108] sm:$0xff]  ;;  %v6791_v36 = vld [vmem:[#allocation2 + $0x110] sm:$0xff] }
  0x69   : > { %v6807_v50 = vpack.i.bf16 %v6791_v36, %v6789_v35  ;;  %v600_v52 = vrot.slane %v6789_v35, 1  ;;  %v601_v53 = vrot.slane %v6791_v36, 1 }
  0x6c   : > { %5529 = vrot.lane.b32.xlu1 %v5528_v62, %s6365_s17  ;;  %5524 = vrot.lane.b32.xlu0 %v5498_v44, %s6365_s17 }
  0x70   : > { %5539 = vrot.lane.b32.xlu1 %v5498_v44, %s6360_s27  ;;  %5534 = vrot.lane.b32.xlu0 %v5508_v54, %s8680_s23  ;;  %v665_v44 = vsel %vm625_vm3, %v662_v41, %v664_v42  ;;  %v677_v41 = vrot.slane %v473_v23, 2  ;;  %v679_v42 = vrot.slane %v474_v24, 2 }
  0x71   : > { %v5623_v45 = vpack.i.bf16 %v665_v44, %v663_v43  ;;  %v6799_v43 = vld [vmem:[#allocation2 + $0x118] sm:$0x3] }
  0x74   : > { %5549 = vrot.lane.b32.xlu1 %v5528_v62, %s6360_s27  ;;  %5544 = vrot.lane.b32.xlu0 %v5543_v8, %s8680_s23 }
  0x78   : > { %5559 = vrot.lane.b32.xlu1 %v5543_v8, %s6359_s26  ;;  %5554 = vrot.lane.b32.xlu0 %v5508_v54, %s6359_s26  ;;  %v5648_v54 = vpack.i.bf16 %v467_v47, %v466_v46 }
  0x7c   : > { %5569 = vrot.lane.b32.xlu1 %v5568_v16, %s6361_s28  ;;  %5564 = vrot.lane.b32.xlu0 %v5518_v58, %s6361_s28  ;;  %v667_v58 = vrot.slane %v467_v47, 2 }
  0x7e   : > { %v668_v61 = vsel %vm625_vm3, %v666_v55, %v667_v58 }
  0x80   : > { %5579 = vrot.lane.b32.xlu1 %v5578_v22, %s6362_s29  ;;  %5574 = vrot.lane.b32.xlu0 %v5528_v62, %s6362_s29  ;;  %v670_v62 = vsel %vm625_vm3, %v667_v58, %v669_v59  ;;  %v680_v58 = vsel %vm625_vm3, %v677_v41, %v679_v42 }
  0x81   : > { %v6751_v3 = vpack.i.bf16 %v670_v62, %v668_v61 }
  0x84   : > { %5589 = vrot.lane.b32.xlu1 %v5588_v30, %s6363_s14  ;;  %5584 = vrot.lane.b32.xlu0 %v5543_v8, %s6363_s14  ;;  %v593_v8 = vrot.slane %v471_v2, 1 }
  0x86   : > { %v594_v11 = vsel %vm544_vm4, %v591_v6, %v593_v8  ;;  %v6839_v6 = vsel %vm544_vm4, %v600_v52, %v601_v53 }
  0x87   : > { %v6765_v14 = vpack.i.bf16 %v594_v11, %v592_v10 }
  0x88   : > { %5599 = vrot.lane.b32.xlu1 %v5598_v34, %s6364_s16  ;;  %5594 = vrot.lane.b32.xlu0 %v5568_v16, %s6364_s16  ;;  %v672_v16 = vrot.slane %v470_v1, 2 }
  0x8a   : > { %v673_v20 = vsel %vm625_vm3, %v671_v15, %v672_v16  ;;  %v675_v21 = vsel %vm625_vm3, %v672_v16, %v674_v17 }
  0x8b   : > { %v6781_v27 = vpack.i.bf16 %v675_v21, %v673_v20 }
  0x8c   : > { %5609 = vrot.lane.b32.xlu1 %v5608_v37, %s6365_s17  ;;  %5604 = vrot.lane.b32.xlu0 %v5578_v22, %s6365_s17 }
  0x90   : > { %5619 = vrot.lane.b32.xlu1 %v5578_v22, %s6360_s27  ;;  %5614 = vrot.lane.b32.xlu0 %v5588_v30, %s8680_s23  ;;  %v472_v22 = vld [vmem:[#allocation2 + $0xf0] sm:$0xff] }
  0x91   : > { %v595_v28 = vrot.slane %v472_v22, 1  ;;  %v6787_v33 = vpack.i.bf16 %v473_v23, %v472_v22 }
  0x94   : > { %5629 = vrot.lane.b32.xlu1 %v5608_v37, %s6360_s27  ;;  %5624 = vrot.lane.b32.xlu0 %v5623_v45, %s8680_s23 }
  0x98   : > { %5639 = vrot.lane.b32.xlu1 %v5623_v45, %s6359_s26  ;;  %5634 = vrot.lane.b32.xlu0 %v5588_v30, %s6359_s26  ;;  %v598_v30 = vrot.slane %v474_v24, 1 }
  0x9a   : > { %v599_v39 = vsel %vm544_vm4, %v596_v29, %v598_v30 }
  0x9c   : > { %5649 = vrot.lane.b32.xlu1 %v5648_v54, %s6361_s28  ;;  %5644 = vrot.lane.b32.xlu0 %v5598_v34, %s6361_s28  ;;  %v676_v34 = vrot.slane %v472_v22, 2 }
  0x9e   : > { %v678_v57 = vsel %vm625_vm3, %v676_v34, %v677_v41 }
  0xa0   : > { %5659 = vrot.lane.b32.xlu1 %v5658_v60, %s6362_s29  ;;  %5654 = vrot.lane.b32.xlu0 %v5608_v37, %s6362_s29  ;;  %v597_v37 = vsel %vm544_vm4, %v595_v28, %v596_v29 }
  0xa1   : > { %v6809_v51 = vpack.i.bf16 %v599_v39, %v597_v37 }
  0xa4   : > { %5669 = vrot.lane.b32.xlu1 %v6751_v3, %s6363_s14  ;;  %5664 = vrot.lane.b32.xlu0 %v5623_v45, %s6363_s14 }
  0xa6   : > { %v6760_v12 = vpop.permute.xlu1 %5389  ;;  %v5385_v13 = vpop.permute.xlu0 %5384 }
  0xa7   : > { %v5387_v44 = vunpack.i.h.bf16 %v5385_v13  ;;  %v5386_v45 = vunpack.i.l.bf16 %v5385_v13  ;;  %v5392_v55 = vunpack.i.h.bf16 %v6760_v12  ;;  %v5391_v56 = vunpack.i.l.bf16 %v6760_v12 }
  0xa8   : > { %5679 = vrot.lane.b32.xlu1 %v6756_v9, %s6364_s16  ;;  %5674 = vrot.lane.b32.xlu0 %v5648_v54, %s6364_s16  ;;  %v603_v54 = vrot.slane %v6799_v43, 1 }
  0xa9   : > { %v1501_v59 = vsel %vm331_vm0, %v6561_v4, %v5387_v44 }
  0xaa   : > { %v6767_v18 = vpop.permute.xlu1 %5399  ;;  %v6769_v19 = vpop.permute.xlu0 %5394  ;;  %v6842_v8 = vsel %vm544_vm4, %v601_v53, %v603_v54 }
  0xab   : > { %v5397_v63 = vunpack.i.h.bf16 %v6769_v19  ;;  %v5396_v1 = vunpack.i.l.bf16 %v6769_v19  ;;  %v5402_v10 = vunpack.i.h.bf16 %v6767_v18  ;;  %v5401_v11 = vunpack.i.l.bf16 %v6767_v18 }
  0xac   : > { %5689 = vrot.lane.b32.xlu1 %v6765_v14, %s6365_s17  ;;  %5684 = vrot.lane.b32.xlu0 %v5658_v60, %s6365_s17 }
  0xae   : > { %v6776_v25 = vpop.permute.xlu1 %5409  ;;  %v5405_v26 = vpop.permute.xlu0 %5404 }
  0xaf   : > { %v5407_v46 = vunpack.i.h.bf16 %v5405_v26  ;;  %v5406_v47 = vunpack.i.l.bf16 %v5405_v26  ;;  %v5412_v61 = vunpack.i.h.bf16 %v6776_v25  ;;  %v5411_v62 = vunpack.i.l.bf16 %v6776_v25 }
  0xb0   : > { %5699 = vrot.lane.b32.xlu1 %v5658_v60, %s6360_s27  ;;  %5694 = vrot.lane.b32.xlu0 %v6751_v3, %s8680_s23  ;;  %v1500_v60 = vsel %vm331_vm0, %v6568_v7, %v5386_v45  ;;  %v6836_v7 = vpack.i.bf16 %v680_v58, %v678_v57 }
  0xb1   : > { %v1503_v2 = vsel %vm331_vm0, %v6618_v40, %v5407_v46  ;;  %v1533_v40 = vsel %vm1532_vm7, %v1500_v60, %v5391_v56 }
  0xb2   : > { %v6783_v31 = vpop.permute.xlu1 %5419  ;;  %v6785_v32 = vpop.permute.xlu0 %5414  ;;  %v1536_v12 = vsel %vm1532_vm7, %v1503_v2, %v5412_v61  ;;  %v1566_v18 = vsel %vm1565_vm8, %v1533_v40, %v5396_v1  ;;  %v681_v40 = vrot.slane %v6789_v35, 2 }
  0xb3   : > { %v5417_v15 = vunpack.i.h.bf16 %v6785_v32  ;;  %v5416_v16 = vunpack.i.l.bf16 %v6785_v32  ;;  %v5421_v23 = vunpack.i.l.bf16 %v6783_v31  ;;  %v1569_v28 = vsel %vm1565_vm8, %v1536_v12, %v5402_v10 }
  0xb4   : > { %5709 = vrot.lane.b32.xlu1 %v6765_v14, %s6360_s27  ;;  %5704 = vrot.lane.b32.xlu0 %v6781_v27, %s8680_s23 }
  0xb5   : > { %v1599_v34 = vsel %vm1598_vm5, %v1566_v18, %v5416_v16 }
  0xb6   : > { %v6801_v48 = vpop.permute.xlu1 %5434  ;;  %v6803_v49 = vpop.permute.xlu0 %5424 }
  0xb7   : > { %v5427_v19 = vunpack.i.h.bf16 %v6803_v49  ;;  %v5426_v20 = vunpack.i.l.bf16 %v6803_v49  ;;  %v5436_v37 = vunpack.i.l.bf16 %v6801_v48 }
  0xb8   : > { %5719 = vrot.lane.b32.xlu1 %v6781_v27, %s6359_s26  ;;  %5714 = vrot.lane.b32.xlu0 %v6751_v3, %s6359_s26  ;;  %v1502_v3 = vsel %vm331_vm0, %v6613_v38, %v5406_v47  ;;  %v1534_v38 = vsel %vm1532_vm7, %v1501_v59, %v5392_v55 }
  0xb9   : > { %v1535_v13 = vsel %vm1532_vm7, %v1502_v3, %v5411_v62  ;;  %v1567_v17 = vsel %vm1565_vm8, %v1534_v38, %v5397_v63  ;;  %v1632_v39 = vsel %vm1631_vm9, %v1599_v34, %v5426_v20 }
  0xba   : > { %v6834_v5 = vpop.permute.xlu1 %5439  ;;  %v5430_v4 = vpop.permute.xlu0 %5429  ;;  %v1568_v26 = vsel %vm1565_vm8, %v1535_v13, %v5401_v11  ;;  %v1600_v32 = vsel %vm1598_vm5, %v1567_v17, %v5417_v15  ;;  %v6904_v11 = vpack.i.bf16 %v6842_v8, %v6839_v6  ;;  %v682_v13 = vrot.slane %v6791_v36, 2  ;;  %v478_v36 = vld [vmem:[#allocation2 + $0x120] sm:$0xff]  ;;  %v479_v8 = vld [vmem:[#allocation2 + $0x128] sm:$0xff] }
  0xbb   : > { %v5432_v24 = vunpack.i.h.bf16 %v5430_v4  ;;  %v5431_v25 = vunpack.i.l.bf16 %v5430_v4  ;;  %v1633_v41 = vsel %vm1631_vm9, %v1600_v32, %v5427_v19  ;;  %v5442_v42 = vunpack.i.h.bf16 %v6834_v5  ;;  %v6943_v32 = vld [vmem:[#allocation2 + $0x148] sm:$0x3] }
  0xbc   : > { %5729 = vrot.lane.b32.xlu1 %v6787_v33, %s6361_s28  ;;  %5724 = vrot.lane.b32.xlu0 %v6756_v9, %s6361_s28  ;;  %v5422_v9 = vunpack.i.h.bf16 %v6783_v31  ;;  %v5437_v31 = vunpack.i.h.bf16 %v6801_v48  ;;  %v5441_v44 = vunpack.i.l.bf16 %v6834_v5  ;;  %v1601_v56 = vsel %vm1598_vm5, %v1568_v26, %v5421_v23 }
  0xbd   : > { %v1665_v49 = vsel %vm1664_vm10, %v1632_v39, %v5431_v25  ;;  %v1666_v52 = vsel %vm1664_vm10, %v1633_v41, %v5432_v24  ;;  %v1634_v60 = vsel %vm1631_vm9, %v1601_v56, %v5436_v37  ;;  %v684_v15 = vrot.slane %v6799_v43, 2  ;;  %v480_v43 = vld [vmem:[#allocation2 + $0x130] sm:$0x3] }
  0xbe   : > { %v5450_v21 = vpop.permute.xlu1 %5449  ;;  %v5445_v22 = vpop.permute.xlu0 %5444  ;;  %v1602_v57 = vsel %vm1598_vm5, %v1569_v28, %v5422_v9  ;;  %v1667_v1 = vsel %vm1664_vm10, %v1634_v60, %v5441_v44  ;;  %v683_v35 = vsel %vm625_vm3, %v681_v40, %v682_v13  ;;  %v608_v9 = vrot.slane %v480_v43, 1 }
  0xbf   : > { %v5447_v29 = vunpack.i.h.bf16 %v5445_v22  ;;  %v5446_v30 = vunpack.i.l.bf16 %v5445_v22  ;;  %v5452_v53 = vunpack.i.h.bf16 %v5450_v21  ;;  %v5451_v54 = vunpack.i.l.bf16 %v5450_v21 }
  0xc0   : > { %5739 = vrot.lane.b32.xlu1 %v6809_v51, %s6362_s29  ;;  %5734 = vrot.lane.b32.xlu0 %v6765_v14, %s6362_s29  ;;  %v1635_v61 = vsel %vm1631_vm9, %v1602_v57, %v5437_v31  ;;  %v685_v6 = vsel %vm625_vm3, %v682_v13, %v684_v15  ;;  %v605_v21 = vrot.slane %v478_v36, 1  ;;  %v606_v22 = vrot.slane %v479_v8, 1 }
  0xc1   : > { %v1698_v48 = vsel %vm1697_vm11, %v1665_v49, %v5446_v30  ;;  %v1699_v55 = vsel %vm1697_vm11, %v1666_v52, %v5447_v29  ;;  %v1668_v2 = vsel %vm1664_vm10, %v1635_v61, %v5442_v42  ;;  %v1700_v4 = vsel %vm1697_vm11, %v1667_v1, %v5451_v54  ;;  %v6937_v29 = vld [vmem:[#allocation2 + $0x138] sm:$0xff]  ;;  %v6939_v30 = vld [vmem:[#allocation2 + $0x140] sm:$0xff] }
  0xc2   : > { %v6876_v45 = vpop.permute.xlu1 %5459  ;;  %v5455_v46 = vpop.permute.xlu0 %5454  ;;  %v1701_v10 = vsel %vm1697_vm11, %v1668_v2, %v5452_v53  ;;  %v6931_v20 = vpack.i.bf16 %v685_v6, %v683_v35  ;;  %v686_v25 = vrot.slane %v478_v36, 2  ;;  %v687_v26 = vrot.slane %v479_v8, 2  ;;  %v6262_v2 = vld [vmem:[#allocation2 + $0x50] sm:$0xff] }
  0xc3   : > { %v5457_v14 = vunpack.i.h.bf16 %v5455_v46  ;;  %v5456_v47 = vunpack.i.l.bf16 %v5455_v46  ;;  %v689_v28 = vrot.slane %v480_v43, 2  ;;  %v607_v34 = vsel %vm544_vm4, %v605_v21, %v606_v22 }
  0xc4   : > { %5749 = vrot.lane.b32.xlu1 %v6836_v7, %s6363_s14  ;;  %5744 = vrot.lane.b32.xlu0 %v6781_v27, %s6363_s14  ;;  %v609_v31 = vsel %vm544_vm4, %v606_v22, %v608_v9  ;;  %v610_v37 = vrot.slane %v6937_v29, 1  ;;  %v611_v39 = vrot.slane %v6939_v30, 1  ;;  %v5462_v41 = vunpack.i.h.bf16 %v6876_v45 }
  0xc5   : > { %v1731_v58 = vsel %vm1730_vm12, %v1698_v48, %v5456_v47  ;;  %v1732_v59 = vsel %vm1730_vm12, %v1699_v55, %v5457_v14  ;;  %v688_v46 = vsel %vm625_vm3, %v686_v25, %v687_v26  ;;  %v690_v14 = vsel %vm625_vm3, %v687_v26, %v689_v28 }
  0xc6   : > { %v6892_v62 = vpop.permute.xlu1 %5469  ;;  %v5465_v63 = vpop.permute.xlu0 %5464  ;;  %v1763_v27 = vpack.c.bf16 %v1732_v59, %v1731_v58  ;;  %v613_v47 = vrot.slane %v6943_v32, 1  ;;  %v6963_v53 = vpack.i.bf16 %v609_v31, %v607_v34  ;;  %v6967_v54 = vpack.i.bf16 %v6939_v30, %v6937_v29 }
  0xc7   : > { %v5467_v3 = vunpack.i.h.bf16 %v5465_v63  ;;  %v5466_v5 = vunpack.i.l.bf16 %v5465_v63  ;;  %v5472_v49 = vunpack.i.h.bf16 %v6892_v62  ;;  %v5471_v52 = vunpack.i.l.bf16 %v6892_v62 }
  0xc8   : > { %5759 = vrot.lane.b32.xlu1 %v6807_v50, %s6364_s16  ;;  %5754 = vrot.lane.b32.xlu0 %v6787_v33, %s6364_s16  ;;  %v5461_v48 = vunpack.i.l.bf16 %v6876_v45  ;;  %v6978_v59 = vpack.i.bf16 %v690_v14, %v688_v46  ;;  %v6981_v60 = vsel %vm544_vm4, %v610_v37, %v611_v39  ;;  %v6261_v45 = vld [vmem:[#allocation2 + $0x38] sm:$0xff] }
  0xc9   : > { %v1733_v38 = vsel %vm1730_vm12, %v1700_v4, %v5466_v5  ;;  %v1734_v12 = vsel %vm1730_vm12, %v1701_v10, %v5467_v3  ;;  %5271 = vmatprep.mubr.msk.bf16.mxu0 %vm1815_vm13, %v1763_v27  ;;  %v1505_v61 = vsel %vm331_vm0, %v6261_v45, %v5462_v41  ;;  %v1507_v3 = vsel %vm331_vm0, %v6262_v2, %v5472_v49  ;;  %v6263_v5 = vld [vmem:[#allocation2 + $0x48] sm:$0xff] }
  0xca   : > { %v6912_v16 = vpop.permute.xlu1 %5479  ;;  %v6914_v17 = vpop.permute.xlu0 %5474  ;;  %v1764_v33 = vpack.c.bf16 %v1734_v12, %v1733_v38  ;;  %v1506_v4 = vsel %vm331_vm0, %v6263_v5, %v5471_v52  ;;  %v6264_v38 = vld [vmem:[#allocation2 + $0x30] sm:$0xff] }
  0xcb   : > { %v5482_v55 = vunpack.i.h.bf16 %v6912_v16  ;;  %v5481_v56 = vunpack.i.l.bf16 %v6912_v16  ;;  %v5477_v57 = vunpack.i.h.bf16 %v6914_v17  ;;  %v5476_v58 = vunpack.i.l.bf16 %v6914_v17 }
  0xcc   : > { %5769 = vrot.lane.b32.xlu1 %v6904_v11, %s6365_s17  ;;  %5764 = vrot.lane.b32.xlu0 %v6809_v51, %s6365_s17  ;;  %v1504_v12 = vsel %vm331_vm0, %v6264_v38, %v5461_v48 }
  0xcd   : > { %5272 = vmatmul.mubr.msk.bf16.vlgmr.msra.gmra.mxu0 %vm1815_vm13, %v1764_v33  ;;  %v1539_v13 = vsel %vm1532_vm7, %v1506_v4, %v5481_v56  ;;  %v1540_v15 = vsel %vm1532_vm7, %v1507_v3, %v5482_v55  ;;  %v1538_v16 = vsel %vm1532_vm7, %v1505_v61, %v5477_v57  ;;  %v1537_v17 = vsel %vm1532_vm7, %v1504_v12, %v5476_v58 }
  0xce   : > { %v6923_v18 = vpop.permute.xlu1 %5489  ;;  %v6925_v19 = vpop.permute.xlu0 %5484 }
  0xcf   : > { %v5492_v62 = vunpack.i.h.bf16 %v6923_v18  ;;  %v5491_v63 = vunpack.i.l.bf16 %v6923_v18  ;;  %v5487_v10 = vunpack.i.h.bf16 %v6925_v19  ;;  %v5486_v40 = vunpack.i.l.bf16 %v6925_v19 }
  0xd0   : > { %5779 = vrot.lane.b32.xlu1 %v6809_v51, %s6360_s27  ;;  %5774 = vrot.lane.b32.xlu0 %v6836_v7, %s8680_s23  ;;  %v6941_v51 = vpack.i.bf16 %v479_v8, %v478_v36 }
  0xd1   : > { %v1572_v6 = vsel %vm1565_vm8, %v1539_v13, %v5491_v63  ;;  %v1573_v36 = vsel %vm1565_vm8, %v1540_v15, %v5492_v62  ;;  %v1571_v21 = vsel %vm1565_vm8, %v1538_v16, %v5487_v10  ;;  %v691_v13 = vrot.slane %v6937_v29, 2 }
  0xd2   : > { %v6933_v23 = vpop.permute.xlu1 %5499  ;;  %v6935_v24 = vpop.permute.xlu0 %5494 }
  0xd3   : > { %v5497_v33 = vunpack.i.h.bf16 %v6935_v24  ;;  %v5496_v35 = vunpack.i.l.bf16 %v6935_v24  ;;  %v5502_v25 = vunpack.i.h.bf16 %v6933_v23  ;;  %v5501_v24 = vunpack.i.l.bf16 %v6933_v23 }
  0xd4   : > { %5789 = vrot.lane.b32.xlu1 %v6904_v11, %s6360_s27  ;;  %5784 = vrot.lane.b32.xlu0 %v6931_v20, %s8680_s23 }
  0xd5   : > { %v1604_v31 = vsel %vm1598_vm5, %v1571_v21, %v5497_v33  ;;  %v1605_v58 = vsel %vm1598_vm5, %v1572_v6, %v5501_v24  ;;  %v1606_v45 = vsel %vm1598_vm5, %v1573_v36, %v5502_v25  ;;  %v694_v33 = vrot.slane %v6943_v32, 2  ;;  %v484_v36 = vld [vmem:[#allocation2 + $0x150] sm:$0xff]  ;;  %v7083_v25 = vld [vmem:[#allocation2 + $0x168] sm:$0xff] }
  0xd6   : > { %v6954_v42 = vpop.permute.xlu1 %5509  ;;  %v6956_v44 = vpop.permute.xlu0 %5504  ;;  %v615_v32 = vrot.slane %v484_v36, 1  ;;  %v7085_v24 = vld [vmem:[#allocation2 + $0x170] sm:$0xff] }
  0xd7   : > { %v5507_v8 = vunpack.i.h.bf16 %v6956_v44  ;;  %v5506_v43 = vunpack.i.l.bf16 %v6956_v44  ;;  %v5512_v37 = vunpack.i.h.bf16 %v6954_v42 }
  0xd8   : > { %5799 = vrot.lane.b32.xlu1 %v6931_v20, %s6359_s26  ;;  %5794 = vrot.lane.b32.xlu0 %v6836_v7, %s6359_s26  ;;  %v6989_v7 = vsel %vm544_vm4, %v611_v39, %v613_v47  ;;  %v5511_v39 = vunpack.i.l.bf16 %v6954_v42 }
  0xd9   : > { %v1637_v23 = vsel %vm1631_vm9, %v1604_v31, %v5507_v8  ;;  %v7054_v12 = vpack.i.bf16 %v6989_v7, %v6981_v60  ;;  %v485_v60 = vld [vmem:[#allocation2 + $0x158] sm:$0xff]  ;;  %v486_v7 = vld [vmem:[#allocation2 + $0x160] sm:$0x3] }
  0xda   : > { %v6986_v27 = vpop.permute.xlu1 %5519  ;;  %v5515_v1 = vpop.permute.xlu0 %5514  ;;  %v1638_v63 = vsel %vm1631_vm9, %v1605_v58, %v5511_v39  ;;  %v697_v21 = vrot.slane %v485_v60, 2 }
  0xdb   : > { %v5517_v22 = vunpack.i.h.bf16 %v5515_v1  ;;  %v5516_v9 = vunpack.i.l.bf16 %v5515_v1  ;;  %v5522_v44 = vunpack.i.h.bf16 %v6986_v27  ;;  %v5521_v46 = vunpack.i.l.bf16 %v6986_v27 }
  0xdc   : > { %5809 = vrot.lane.b32.xlu1 %v6941_v51, %s6361_s28  ;;  %5804 = vrot.lane.b32.xlu0 %v6807_v50, %s6361_s28  ;;  %v1570_v50 = vsel %vm1565_vm8, %v1537_v17, %v5486_v40  ;;  %v1639_v27 = vsel %vm1631_vm9, %v1606_v45, %v5512_v37  ;;  %v692_v17 = vrot.slane %v6939_v30, 2 }
  0xdd   : > { %v1603_v34 = vsel %vm1598_vm5, %v1570_v50, %v5496_v35  ;;  %v1670_v49 = vsel %vm1664_vm10, %v1637_v23, %v5517_v22  ;;  %v1671_v5 = vsel %vm1664_vm10, %v1638_v63, %v5521_v46  ;;  %v696_v50 = vrot.slane %v484_v36, 2 }
  0xde   : > { %v5530_v18 = vpop.permute.xlu1 %5529  ;;  %v5525_v19 = vpop.permute.xlu0 %5524  ;;  %v1636_v41 = vsel %vm1631_vm9, %v1603_v34, %v5506_v43  ;;  %v693_v29 = vsel %vm625_vm3, %v691_v13, %v692_v17  ;;  %v695_v30 = vsel %vm625_vm3, %v692_v17, %v694_v33  ;;  %v699_v22 = vrot.slane %v486_v7, 2 }
  0xdf   : > { %v5527_v26 = vunpack.i.h.bf16 %v5525_v19  ;;  %v5526_v28 = vunpack.i.l.bf16 %v5525_v19  ;;  %v5532_v55 = vunpack.i.h.bf16 %v5530_v18  ;;  %v5531_v56 = vunpack.i.l.bf16 %v5530_v18 }
  0xe0   : > { %5819 = vrot.lane.b32.xlu1 %v6963_v53, %s6362_s29  ;;  %5814 = vrot.lane.b32.xlu0 %v6904_v11, %s6362_s29  ;;  %v1669_v11 = vsel %vm1664_vm10, %v1636_v41, %v5516_v9  ;;  %v616_v18 = vrot.slane %v485_v60, 1  ;;  %v618_v19 = vrot.slane %v486_v7, 1  ;;  %v7081_v9 = vpack.i.bf16 %v695_v30, %v693_v29 }
  0xe1   : > { %v1702_v42 = vsel %vm1697_vm11, %v1669_v11, %v5526_v28  ;;  %v1703_v57 = vsel %vm1697_vm11, %v1670_v49, %v5527_v26  ;;  %v1704_v40 = vsel %vm1697_vm11, %v1671_v5, %v5531_v56  ;;  %v7087_v26 = vld [vmem:[#allocation2 + $0x178] sm:$0x3]  ;;  %v700_v39 = vsel %vm625_vm3, %v697_v21, %v699_v22 }
  0xe2   : > { %v7026_v14 = vpop.permute.xlu1 %5539  ;;  %v5535_v47 = vpop.permute.xlu0 %5534  ;;  %v617_v31 = vsel %vm544_vm4, %v615_v32, %v616_v18  ;;  %v619_v37 = vsel %vm544_vm4, %v616_v18, %v618_v19  ;;  %v620_v41 = vrot.slane %v7083_v25, 1  ;;  %v621_v23 = vrot.slane %v7085_v24, 1 }
  0xe3   : > { %v5537_v52 = vunpack.i.h.bf16 %v5535_v47  ;;  %v5536_v48 = vunpack.i.l.bf16 %v5535_v47  ;;  %v7104_v46 = vpack.i.bf16 %v485_v60, %v484_v36  ;;  %v5542_v47 = vunpack.i.h.bf16 %v7026_v14 }
  0xe4   : > { %5829 = vrot.lane.b32.xlu1 %v6978_v59, %s6363_s14  ;;  %5824 = vrot.lane.b32.xlu0 %v6931_v20, %s6363_s14  ;;  %v1672_v20 = vsel %vm1664_vm10, %v1639_v27, %v5522_v44  ;;  %v623_v44 = vrot.slane %v7087_v26, 1  ;;  %v5541_v58 = vunpack.i.l.bf16 %v7026_v14  ;;  %v7128_v27 = vpack.i.bf16 %v7085_v24, %v7083_v25 }
  0xe5   : > { %v1735_v61 = vsel %vm1730_vm12, %v1702_v42, %v5536_v48  ;;  %v1736_v62 = vsel %vm1730_vm12, %v1703_v57, %v5537_v52  ;;  %v1705_v38 = vsel %vm1697_vm11, %v1672_v20, %v5532_v55  ;;  %v7109_v52 = vpack.i.bf16 %v619_v37, %v617_v31 }
  0xe6   : > { %v7042_v1 = vpop.permute.xlu1 %5549  ;;  %v5545_v2 = vpop.permute.xlu0 %5544  ;;  %v1765_v3 = vpack.c.bf16 %v1736_v62, %v1735_v61  ;;  %v622_v42 = vsel %vm544_vm4, %v620_v41, %v621_v23  ;;  %v624_v57 = vsel %vm544_vm4, %v621_v23, %v623_v44 }
  0xe7   : > { %v5547_v4 = vunpack.i.h.bf16 %v5545_v2  ;;  %v5546_v10 = vunpack.i.l.bf16 %v5545_v2  ;;  %v5552_v55 = vunpack.i.h.bf16 %v7042_v1  ;;  %v5551_v56 = vunpack.i.l.bf16 %v7042_v1  ;;  %v6265_v1 = vld [vmem:[#allocation2 + $0x68] sm:$0xff] }
  0xe8   : > { %5839 = vrot.lane.b32.xlu1 %v6967_v54, %s6364_s16  ;;  %5834 = vrot.lane.b32.xlu0 %v6941_v51, %s6364_s16  ;;  %v1509_v14 = vsel %vm331_vm0, %v6265_v1, %v5542_v47 }
  0xe9   : > { %v1738_v15 = vsel %vm1730_vm12, %v1705_v38, %v5547_v4  ;;  %v1737_v16 = vsel %vm1730_vm12, %v1704_v40, %v5546_v10  ;;  %5275 = vmatprep.mubr.msk.bf16.mxu0 %vm1815_vm13, %v1765_v3  ;;  %v7135_v4 = vpack.i.bf16 %v624_v57, %v622_v42  ;;  %v6267_v40 = vld [vmem:[#allocation2 + $0x78] sm:$0xff] }
  0xea   : > { %v7062_v35 = vpop.permute.xlu1 %5559  ;;  %v7064_v6 = vpop.permute.xlu0 %5554  ;;  %v1766_v51 = vpack.c.bf16 %v1738_v15, %v1737_v16  ;;  %v1510_v38 = vsel %vm331_vm0, %v6267_v40, %v5551_v56  ;;  %v6268_v16 = vld [vmem:[#allocation2 + $0x60] sm:$0xff] }
  0xeb   : > { %v5562_v45 = vunpack.i.h.bf16 %v7062_v35  ;;  %v5561_v61 = vunpack.i.l.bf16 %v7062_v35  ;;  %v5557_v62 = vunpack.i.h.bf16 %v7064_v6  ;;  %v5556_v63 = vunpack.i.l.bf16 %v7064_v6 }
  0xec   : > { %5849 = vrot.lane.b32.xlu1 %v7054_v12, %s6365_s17  ;;  %5844 = vrot.lane.b32.xlu0 %v6963_v53, %s6365_s17  ;;  %v1508_v17 = vsel %vm331_vm0, %v6268_v16, %v5541_v58  ;;  %v701_v16 = vrot.slane %v7083_v25, 2 }
  0xed   : > { %5276 = vmatmul.mubr.msk.bf16.gmra.mxu0 %vm1815_vm13, %v1766_v51  ;;  %v1543_v33 = vsel %vm1532_vm7, %v1510_v38, %v5561_v61  ;;  %v1542_v6 = vsel %vm1532_vm7, %v1509_v14, %v5557_v62  ;;  %v1541_v51 = vsel %vm1532_vm7, %v1508_v17, %v5556_v63  ;;  %v702_v17 = vrot.slane %v7085_v24, 2 }
  0xee   : > { %v7073_v8 = vpop.permute.xlu1 %5569  ;;  %v7075_v43 = vpop.permute.xlu0 %5564 }
  0xef   : > { %v5572_v2 = vunpack.i.h.bf16 %v7073_v8  ;;  %v5571_v3 = vunpack.i.l.bf16 %v7073_v8  ;;  %v5567_v13 = vunpack.i.h.bf16 %v7075_v43  ;;  %v5566_v15 = vunpack.i.l.bf16 %v7075_v43 }
  0xf0   : > { %5859 = vrot.lane.b32.xlu1 %v6963_v53, %s6360_s27  ;;  %5854 = vrot.lane.b32.xlu0 %v6978_v59, %s8680_s23  ;;  %v698_v53 = vsel %vm625_vm3, %v696_v50, %v697_v21  ;;  %v703_v25 = vsel %vm625_vm3, %v701_v16, %v702_v17 }
  0xf1   : > { %v7111_v48 = vpack.i.bf16 %v700_v39, %v698_v53  ;;  %v1576_v7 = vsel %vm1565_vm8, %v1543_v33, %v5571_v3  ;;  %v1574_v18 = vsel %vm1565_vm8, %v1541_v51, %v5566_v15 }
  0xf2   : > { %v7089_v28 = vpop.permute.xlu1 %5579  ;;  %v7091_v34 = vpop.permute.xlu0 %5574 }
  0xf3   : > { %v5577_v36 = vunpack.i.h.bf16 %v7091_v34  ;;  %v5576_v60 = vunpack.i.l.bf16 %v7091_v34  ;;  %v5582_v21 = vunpack.i.h.bf16 %v7089_v28  ;;  %v5581_v22 = vunpack.i.l.bf16 %v7089_v28 }
  0xf4   : > { %5869 = vrot.lane.b32.xlu1 %v7054_v12, %s6360_s27  ;;  %5864 = vrot.lane.b32.xlu0 %v7081_v9, %s8680_s23 }
  0xf5   : > { %v1607_v37 = vsel %vm1598_vm5, %v1574_v18, %v5576_v60  ;;  %v1609_v62 = vsel %vm1598_vm5, %v1576_v7, %v5581_v22  ;;  %v490_v7 = vld [vmem:[#allocation2 + $0x180] sm:$0xff] }
  0xf6   : > { %v7107_v11 = vpop.permute.xlu1 %5589  ;;  %v5585_v49 = vpop.permute.xlu0 %5584  ;;  %v714_v18 = vrot.slane %v490_v7, 2 }
  0xf7   : > { %v5587_v30 = vunpack.i.h.bf16 %v5585_v49  ;;  %v5586_v32 = vunpack.i.l.bf16 %v5585_v49  ;;  %v5592_v39 = vunpack.i.h.bf16 %v7107_v11  ;;  %v5591_v41 = vunpack.i.l.bf16 %v7107_v11 }
  0xf8   : > { %5879 = vrot.lane.b32.xlu1 %v7081_v9, %s6359_s26  ;;  %5874 = vrot.lane.b32.xlu0 %v6978_v59, %s6359_s26  ;;  %v6266_v59 = vld [vmem:[#allocation2 + $0x80] sm:$0xff] }
  0xf9   : > { %v1511_v10 = vsel %vm331_vm0, %v6266_v59, %v5552_v55  ;;  %v1640_v23 = vsel %vm1631_vm9, %v1607_v37, %v5586_v32  ;;  %v7229_v37 = vld [vmem:[#allocation2 + $0x198] sm:$0xff] }
  0xfa   : > { %v7133_v5 = vpop.permute.xlu1 %5599  ;;  %v5595_v20 = vpop.permute.xlu0 %5594  ;;  %v1544_v35 = vsel %vm1532_vm7, %v1511_v10, %v5562_v45 }
  0xfb   : > { %v1577_v29 = vsel %vm1565_vm8, %v1544_v35, %v5572_v2  ;;  %v5597_v19 = vunpack.i.h.bf16 %v5595_v20  ;;  %v5596_v50 = vunpack.i.l.bf16 %v5595_v20  ;;  %v5602_v44 = vunpack.i.h.bf16 %v7133_v5 }
  0xfc   : > { %5889 = vrot.lane.b32.xlu1 %v7104_v46, %s6361_s28  ;;  %5884 = vrot.lane.b32.xlu0 %v6967_v54, %s6361_s28  ;;  %v1575_v54 = vsel %vm1565_vm8, %v1542_v6, %v5567_v13  ;;  %v5601_v47 = vunpack.i.l.bf16 %v7133_v5  ;;  %v1610_v63 = vsel %vm1598_vm5, %v1577_v29, %v5582_v21  ;;  %v1642_v2 = vsel %vm1631_vm9, %v1609_v62, %v5591_v41  ;;  %v491_v29 = vld [vmem:[#allocation2 + $0x188] sm:$0xff] }
  0xfd   : > { %v1608_v53 = vsel %vm1598_vm5, %v1575_v54, %v5577_v36  ;;  %v1643_v3 = vsel %vm1631_vm9, %v1610_v63, %v5592_v39  ;;  %v704_v6 = vrot.slane %v7087_v26, 2  ;;  %v709_v26 = vrot.slane %v490_v7, 1  ;;  %v7233_v39 = vld [vmem:[#allocation2 + $0x1a8] sm:$0x3] }
  0xfe   : > { %v5610_v8 = vpop.permute.xlu1 %5609  ;;  %v5605_v43 = vpop.permute.xlu0 %5604  ;;  %v1641_v28 = vsel %vm1631_vm9, %v1608_v53, %v5587_v30  ;;  %v1675_v10 = vsel %vm1664_vm10, %v1642_v2, %v5601_v47  ;;  %v710_v30 = vrot.slane %v491_v29, 1  ;;  %v715_v54 = vrot.slane %v491_v29, 2  ;;  %v7231_v53 = vld [vmem:[#allocation2 + $0x1a0] sm:$0xff] }
  0xff   : > { %v5607_v31 = vunpack.i.h.bf16 %v5605_v43  ;;  %v5606_v34 = vunpack.i.l.bf16 %v5605_v43  ;;  %v1674_v56 = vsel %vm1664_vm10, %v1641_v28, %v5597_v19  ;;  %v5612_v58 = vunpack.i.h.bf16 %v5610_v8 }
 0x100   : > { %5899 = vrot.lane.b32.xlu1 %v7109_v52, %s6362_s29  ;;  %5894 = vrot.lane.b32.xlu0 %v7054_v12, %s6362_s29  ;;  %v1673_v12 = vsel %vm1664_vm10, %v1640_v23, %v5596_v50  ;;  %v5611_v45 = vunpack.i.l.bf16 %v5610_v8  ;;  %v705_v24 = vsel %vm625_vm3, %v702_v17, %v704_v6  ;;  %v711_v21 = vsel %vm544_vm4, %v709_v26, %v710_v30 }
 0x101   : > { %v1706_v11 = vsel %vm1697_vm11, %v1673_v12, %v5606_v34  ;;  %v1707_v61 = vsel %vm1697_vm11, %v1674_v56, %v5607_v31  ;;  %v7221_v50 = vpack.i.bf16 %v705_v24, %v703_v25  ;;  %v7241_v23 = vpack.i.bf16 %v491_v29, %v490_v7 }
 0x102   : > { %v7170_v49 = vpop.permute.xlu1 %5619  ;;  %v5615_v55 = vpop.permute.xlu0 %5614  ;;  %v1708_v13 = vsel %vm1697_vm11, %v1675_v10, %v5611_v45  ;;  %v722_v47 = vrot.slane %v7229_v37, 1 }
 0x103   : > { %v5617_v42 = vunpack.i.h.bf16 %v5615_v55  ;;  %v5616_v57 = vunpack.i.l.bf16 %v5615_v55  ;;  %v725_v55 = vrot.slane %v7233_v39, 1  ;;  %v5622_v12 = vunpack.i.h.bf16 %v7170_v49 }
 0x104   : > { %5909 = vrot.lane.b32.xlu1 %v7111_v48, %s6363_s14  ;;  %5904 = vrot.lane.b32.xlu0 %v7081_v9, %s6363_s14  ;;  %v1676_v9 = vsel %vm1664_vm10, %v1643_v3, %v5602_v44  ;;  %v723_v44 = vrot.slane %v7231_v53, 1  ;;  %v5621_v62 = vunpack.i.l.bf16 %v7170_v49 }
 0x105   : > { %v1739_v1 = vsel %vm1730_vm12, %v1706_v11, %v5616_v57  ;;  %v1740_v14 = vsel %vm1730_vm12, %v1707_v61, %v5617_v42  ;;  %v1709_v15 = vsel %vm1697_vm11, %v1676_v9, %v5612_v58  ;;  %v5998_v58 = vpack.i.bf16 %v7231_v53, %v7229_v37 }
 0x106   : > { %v7186_v5 = vpop.permute.xlu1 %5629  ;;  %v5625_v20 = vpop.permute.xlu0 %5624  ;;  %v1767_v59 = vpack.c.bf16 %v1740_v14, %v1739_v1  ;;  %v728_v61 = vrot.slane %v7231_v53, 2  ;;  %v727_v14 = vrot.slane %v7229_v37, 2  ;;  %v7274_v49 = vsel %vm544_vm4, %v723_v44, %v725_v55 }
 0x107   : > { %v5627_v40 = vunpack.i.h.bf16 %v5625_v20  ;;  %v5626_v38 = vunpack.i.l.bf16 %v5625_v20  ;;  %v5632_v45 = vunpack.i.h.bf16 %v7186_v5  ;;  %v5631_v11 = vunpack.i.l.bf16 %v7186_v5  ;;  %v6269_v20 = vld [vmem:[#allocation2 + $0x98] sm:$0xff] }
 0x108   : > { %5919 = vrot.lane.b32.xlu1 %v7128_v27, %s6364_s16  ;;  %5914 = vrot.lane.b32.xlu0 %v7104_v46, %s6364_s16  ;;  %v492_v46 = vld [vmem:[#allocation2 + $0x190] sm:$0x3]  ;;  %v7271_v5 = vsel %vm544_vm4, %v722_v47, %v723_v44 }
 0x109   : > { %v1742_v33 = vsel %vm1730_vm12, %v1709_v15, %v5627_v40  ;;  %v1741_v35 = vsel %vm1730_vm12, %v1708_v13, %v5626_v38  ;;  %5279 = vmatprep.mubr.msk.bf16.mxu0 %vm1815_vm13, %v1767_v59  ;;  %v712_v32 = vrot.slane %v492_v46, 1  ;;  %v717_v19 = vrot.slane %v492_v46, 2  ;;  %v6270_v38 = vld [vmem:[#allocation2 + $0xb0] sm:$0xff]  ;;  %v6271_v15 = vld [vmem:[#allocation2 + $0xa8] sm:$0xff] }
 0x10a   : > { %v7202_v51 = vpop.permute.xlu1 %5639  ;;  %v7204_v36 = vpop.permute.xlu0 %5634  ;;  %v1768_v60 = vpack.c.bf16 %v1742_v33, %v1741_v35  ;;  %v1513_v59 = vsel %vm331_vm0, %v6269_v20, %v5622_v12  ;;  %v1515_v13 = vsel %vm331_vm0, %v6270_v38, %v5632_v45  ;;  %v1514_v16 = vsel %vm331_vm0, %v6271_v15, %v5631_v11  ;;  %v6272_v35 = vld [vmem:[#allocation2 + $0x90] sm:$0xff] }
 0x10b   : > { %v713_v22 = vsel %vm544_vm4, %v710_v30, %v712_v32  ;;  %v718_v41 = vsel %vm625_vm3, %v715_v54, %v717_v19  ;;  %v5642_v63 = vunpack.i.h.bf16 %v7202_v51  ;;  %v5641_v1 = vunpack.i.l.bf16 %v7202_v51 }
 0x10c   : > { %5929 = vrot.lane.b32.xlu1 %v7135_v4, %s6365_s17  ;;  %5924 = vrot.lane.b32.xlu0 %v7109_v52, %s6365_s17  ;;  %v7243_v28 = vpack.i.bf16 %v713_v22, %v711_v21  ;;  %v5637_v2 = vunpack.i.h.bf16 %v7204_v36  ;;  %v5636_v3 = vunpack.i.l.bf16 %v7204_v36  ;;  %v1512_v6 = vsel %vm331_vm0, %v6272_v35, %v5621_v62 }
 0x10d   : > { %5280 = vmatmul.mubr.msk.bf16.gmra.mxu0 %vm1815_vm13, %v1768_v60  ;;  %v1547_v51 = vsel %vm1532_vm7, %v1514_v16, %v5641_v1  ;;  %v1548_v36 = vsel %vm1532_vm7, %v1515_v13, %v5642_v63  ;;  %v730_v60 = vrot.slane %v7233_v39, 2 }
 0x10e   : > { %v7213_v8 = vpop.permute.xlu1 %5649  ;;  %v7215_v43 = vpop.permute.xlu0 %5644  ;;  %v1546_v7 = vsel %vm1532_vm7, %v1513_v59, %v5637_v2  ;;  %v1545_v29 = vsel %vm1532_vm7, %v1512_v6, %v5636_v3 }
 0x10f   : > { %v5652_v10 = vunpack.i.h.bf16 %v7213_v8  ;;  %v5651_v9 = vunpack.i.l.bf16 %v7213_v8  ;;  %v5647_v17 = vunpack.i.h.bf16 %v7215_v43  ;;  %v5646_v33 = vunpack.i.l.bf16 %v7215_v43 }
 0x110   : > { %5939 = vrot.lane.b32.xlu1 %v7109_v52, %s6360_s27  ;;  %5934 = vrot.lane.b32.xlu0 %v7111_v48, %s8680_s23  ;;  %v716_v52 = vsel %vm625_vm3, %v714_v18, %v715_v54 }
 0x111   : > { %v7253_v57 = vpack.i.bf16 %v718_v41, %v716_v52  ;;  %v1580_v24 = vsel %vm1565_vm8, %v1547_v51, %v5651_v9  ;;  %v1581_v26 = vsel %vm1565_vm8, %v1548_v36, %v5652_v10  ;;  %v1578_v43 = vsel %vm1565_vm8, %v1545_v29, %v5646_v33 }
 0x112   : > { %v7225_v31 = vpop.permute.xlu1 %5659  ;;  %v7227_v34 = vpop.permute.xlu0 %5654  ;;  %v1579_v18 = vsel %vm1565_vm8, %v1546_v7, %v5647_v17  ;;  %v6008_v7 = vpack.i.bf16 %v7274_v49, %v7271_v5 }
 0x113   : > { %v5657_v46 = vunpack.i.h.bf16 %v7227_v34  ;;  %v5656_v25 = vunpack.i.l.bf16 %v7227_v34  ;;  %v5662_v21 = vunpack.i.h.bf16 %v7225_v31  ;;  %v5661_v22 = vunpack.i.l.bf16 %v7225_v31 }
 0x114   : > { %5949 = vrot.lane.b32.xlu1 %v7135_v4, %s6360_s27  ;;  %5944 = vrot.lane.b32.xlu0 %v7221_v50, %s8680_s23  ;;  %s4969_s27 = scalar_lea.hbm %s8674_s9, %s5140_s21 }
 0x115   : > { %v1611_v41 = vsel %vm1598_vm5, %v1578_v43, %v5656_v25  ;;  %v1612_v44 = vsel %vm1598_vm5, %v1579_v18, %v5657_v46  ;;  %v1613_v10 = vsel %vm1598_vm5, %v1580_v24, %v5661_v22  ;;  %v1614_v9 = vsel %vm1598_vm5, %v1581_v26, %v5662_v21 }
 0x116   : > { %v7249_v56 = vpop.permute.xlu1 %5669  ;;  %v7251_v42 = vpop.permute.xlu0 %5664  ;;  %v729_v25 = vsel %vm625_vm3, %v727_v14, %v728_v61 }
 0x117   : > { %v5667_v30 = vunpack.i.h.bf16 %v7251_v42  ;;  %v5666_v32 = vunpack.i.l.bf16 %v7251_v42  ;;  %v5672_v47 = vunpack.i.h.bf16 %v7249_v56  ;;  %v5671_v55 = vunpack.i.l.bf16 %v7249_v56 }
 0x118   : > { %5959 = vrot.lane.b32.xlu1 %v7221_v50, %s6359_s26  ;;  %5954 = vrot.lane.b32.xlu0 %v7111_v48, %s6359_s26 }
 0x119   : > { %v1644_v12 = vsel %vm1631_vm9, %v1611_v41, %v5666_v32  ;;  %v1645_v31 = vsel %vm1631_vm9, %v1612_v44, %v5667_v30  ;;  %v1646_v38 = vsel %vm1631_vm9, %v1613_v10, %v5671_v55  ;;  %v1647_v13 = vsel %vm1631_vm9, %v1614_v9, %v5672_v47  ;;  %v6275_v44 = vld [vmem:[#allocation2 + $0xd8] sm:$0xff] }
 0x11a   : > { %v7279_v48 = vpop.permute.xlu1 %5679  ;;  %v5675_v40 = vpop.permute.xlu0 %5674 }
 0x11b   : > { %v5677_v54 = vunpack.i.h.bf16 %v5675_v40  ;;  %v5676_v19 = vunpack.i.l.bf16 %v5675_v40  ;;  %v5682_v42 = vunpack.i.h.bf16 %v7279_v48  ;;  %v5681_v45 = vunpack.i.l.bf16 %v7279_v48 }
 0x11c   : > { %5969 = vrot.lane.b32.xlu1 %v7241_v23, %s6361_s28  ;;  %5964 = vrot.lane.b32.xlu0 %v7128_v27, %s6361_s28  ;;  %s8687_s28 = smov 96  }
 0x11d   : > { %v1678_v63 = vsel %vm1664_vm10, %v1645_v31, %v5677_v54  ;;  %v1679_v33 = vsel %vm1664_vm10, %v1646_v38, %v5681_v45  ;;  %v1680_v35 = vsel %vm1664_vm10, %v1647_v13, %v5682_v42  ;;  %v6276_v31 = vld [vmem:[#allocation2 + $0xc0] sm:$0xff] }
 0x11e   : > { %v5690_v8 = vpop.permute.xlu1 %5689  ;;  %v5685_v27 = vpop.permute.xlu0 %5684 }
 0x11f   : > { %v5687_v34 = vunpack.i.h.bf16 %v5685_v27  ;;  %v5686_v52 = vunpack.i.l.bf16 %v5685_v27  ;;  %v5692_v3 = vunpack.i.h.bf16 %v5690_v8  ;;  %v5691_v20 = vunpack.i.l.bf16 %v5690_v8 }
 0x120   : > { %5979 = vrot.lane.b32.xlu1 %v7243_v28, %s6362_s29  ;;  %5974 = vrot.lane.b32.xlu0 %v7135_v4, %s6362_s29  ;;  %v1677_v4 = vsel %vm1664_vm10, %v1644_v12, %v5676_v19 }
 0x121   : > { %v1710_v56 = vsel %vm1697_vm11, %v1677_v4, %v5686_v52  ;;  %v1711_v59 = vsel %vm1697_vm11, %v1678_v63, %v5687_v34  ;;  %v1712_v51 = vsel %vm1697_vm11, %v1679_v33, %v5691_v20  ;;  %v1713_v36 = vsel %vm1697_vm11, %v1680_v35, %v5692_v3  ;;  %v6274_v52 = vld [vmem:[#allocation2 + $0xe0] sm:$0xff] }
 0x122   : > { %v7321_v11 = vpop.permute.xlu1 %5699  ;;  %v5695_v62 = vpop.permute.xlu0 %5694 }
 0x123   : > { %v5697_v1 = vunpack.i.h.bf16 %v5695_v62  ;;  %v5696_v2 = vunpack.i.l.bf16 %v5695_v62  ;;  %v5701_v32 = vunpack.i.l.bf16 %v7321_v11 }
 0x124   : > { %5989 = vrot.lane.b32.xlu1 %v7253_v57, %s6363_s14  ;;  %5984 = vrot.lane.b32.xlu0 %v7221_v50, %s6363_s14  ;;  %s8677_s14 = smov 96  }
 0x125   : > { %v1743_v48 = vsel %vm1730_vm12, %v1710_v56, %v5696_v2  ;;  %v1744_v40 = vsel %vm1730_vm12, %v1711_v59, %v5697_v1  ;;  %v1516_v42 = vsel %vm331_vm0, %v6276_v31, %v5701_v32 }
 0x126   : > { %v5710_v15 = vpop.permute.xlu1 %5709  ;;  %v5705_v16 = vpop.permute.xlu0 %5704  ;;  %v1769_v17 = vpack.c.bf16 %v1744_v40, %v1743_v48 }
 0x127   : > { %v5707_v50 = vunpack.i.h.bf16 %v5705_v16  ;;  %v5706_v6 = vunpack.i.l.bf16 %v5705_v16  ;;  %v5711_v30 = vunpack.i.l.bf16 %v5710_v15 }
 0x128   : > { %5999 = vrot.lane.b32.xlu1 %v5998_v58, %s6364_s16  ;;  %5994 = vrot.lane.b32.xlu0 %v7241_v23, %s6364_s16  ;;  %v731_v23 = vsel %vm625_vm3, %v728_v61, %v730_v60  ;;  %v5702_v61 = vunpack.i.h.bf16 %v7321_v11 }
 0x129   : > { %v1746_v29 = vsel %vm1730_vm12, %v1713_v36, %v5707_v50  ;;  %v1745_v46 = vsel %vm1730_vm12, %v1712_v51, %v5706_v6  ;;  %5283 = vmatprep.mubr.msk.bf16.mxu0 %vm1815_vm13, %v1769_v17  ;;  %v6018_v24 = vpack.i.bf16 %v731_v23, %v729_v25  ;;  %v1518_v47 = vsel %vm331_vm0, %v6275_v44, %v5711_v30 }
 0x12a   : > { %v1770_v58 = vpack.c.bf16 %v1746_v29, %v1745_v46  ;;  %v5720_v5 = vpop.permute.xlu1 %5719  ;;  %v5715_v49 = vpop.permute.xlu0 %5714 }
 0x12b   : > { %v5722_v8 = vunpack.i.h.bf16 %v5720_v5  ;;  %v5721_v27 = vunpack.i.l.bf16 %v5720_v5  ;;  %v5717_v43 = vunpack.i.h.bf16 %v5715_v49  ;;  %v5716_v18 = vunpack.i.l.bf16 %v5715_v49 }
 0x12c   : > { %6009 = vrot.lane.b32.xlu1 %v6008_v7, %s6365_s17  ;;  %6004 = vrot.lane.b32.xlu0 %v7243_v28, %s6365_s17  ;;  %v5712_v28 = vunpack.i.h.bf16 %v5710_v15 }
 0x12d   : > { %5284 = vmatmul.mubr.msk.bf16.gmra.mxu0 %vm1815_vm13, %v1770_v58  ;;  %v1551_v45 = vsel %vm1532_vm7, %v1518_v47, %v5721_v27  ;;  %v1549_v4 = vsel %vm1532_vm7, %v1516_v42, %v5716_v18 }
 0x12e   : > { %v5730_v37 = vpop.permute.xlu1 %5729  ;;  %v5725_v26 = vpop.permute.xlu0 %5724  ;;  %v1519_v41 = vsel %vm331_vm0, %v6274_v52, %v5712_v28 }
 0x12f   : > { %v5731_v54 = vunpack.i.l.bf16 %v5730_v37  ;;  %v5732_v21 = vunpack.i.h.bf16 %v5730_v37  ;;  %v5727_v55 = vunpack.i.h.bf16 %v5725_v26  ;;  %v5726_v12 = vunpack.i.l.bf16 %v5725_v26 }
 0x130   : > { %6019 = vrot.lane.b32.xlu1 %v6018_v24, %s8680_s23  ;;  %6014 = vrot.lane.b32.xlu0 %v7253_v57, %s8680_s23  ;;  %v6273_v57 = vld [vmem:[#allocation2 + $0xc8] sm:$0xff]  ;;  %v1552_v11 = vsel %vm1532_vm7, %v1519_v41, %v5722_v8 }
 0x131   : > { %v1517_v19 = vsel %vm331_vm0, %v6273_v57, %v5702_v61  ;;  %v7392_v63 = vsel %vm1565_vm8, %v1551_v45, %v5731_v54  ;;  %v7397_v3 = vsel %vm1565_vm8, %v1552_v11, %v5732_v21  ;;  %v1582_v9 = vsel %vm1565_vm8, %v1549_v4, %v5726_v12 }
 0x132   : > { %v7369_v53 = vpop.permute.xlu1 %5739  ;;  %v7371_v39 = vpop.permute.xlu0 %5734  ;;  %v1550_v62 = vsel %vm1532_vm7, %v1517_v19, %v5717_v43 }
 0x133   : > { %v5737_v1 = vunpack.i.h.bf16 %v7371_v39  ;;  %v5736_v2 = vunpack.i.l.bf16 %v7371_v39  ;;  %v1583_v48 = vsel %vm1565_vm8, %v1550_v62, %v5727_v55  ;;  %v5742_v13 = vunpack.i.h.bf16 %v7369_v53 }
 0x134   : > { %v5741_v15 = vunpack.i.l.bf16 %v7369_v53 }
 0x135   : > { %v1615_v33 = vsel %vm1598_vm5, %v1582_v9, %v5736_v2  ;;  %v1616_v35 = vsel %vm1598_vm5, %v1583_v48, %v5737_v1  ;;  %v1618_v61 = vsel %vm1598_vm5, %v7397_v3, %v5742_v13  ;;  %v6277_v48 = vld [vmem:[#allocation2 + $0x110] sm:$0xff] }
 0x136   : > { %v7374_v14 = vpop.permute.xlu1 %5749  ;;  %v7376_v60 = vpop.permute.xlu0 %5744  ;;  %v1617_v39 = vsel %vm1598_vm5, %v7392_v63, %v5741_v15 }
 0x137   : > { %v5747_v20 = vunpack.i.h.bf16 %v7376_v60  ;;  %v5746_v56 = vunpack.i.l.bf16 %v7376_v60  ;;  %v5752_v50 = vunpack.i.h.bf16 %v7374_v14  ;;  %v5751_v6 = vunpack.i.l.bf16 %v7374_v14 }
 0x139   : > { %v1648_v51 = vsel %vm1631_vm9, %v1615_v33, %v5746_v56  ;;  %v1649_v36 = vsel %vm1631_vm9, %v1616_v35, %v5747_v20  ;;  %v1650_v28 = vsel %vm1631_vm9, %v1617_v39, %v5751_v6  ;;  %v1651_v30 = vsel %vm1631_vm9, %v1618_v61, %v5752_v50  ;;  %v6280_v35 = vld [vmem:[#allocation2 + $0xf0] sm:$0xff] }
 0x13a   : > { %v7380_v22 = vpop.permute.xlu1 %5759  ;;  %v7382_v34 = vpop.permute.xlu0 %5754 }
 0x13b   : > { %v5757_v40 = vunpack.i.h.bf16 %v7382_v34  ;;  %v5756_v38 = vunpack.i.l.bf16 %v7382_v34  ;;  %v5762_v7 = vunpack.i.h.bf16 %v7380_v22  ;;  %v5761_v29 = vunpack.i.l.bf16 %v7380_v22 }
 0x13d   : > { %v1681_v23 = vsel %vm1664_vm10, %v1648_v51, %v5756_v38  ;;  %v1682_v58 = vsel %vm1664_vm10, %v1649_v36, %v5757_v40  ;;  %v1683_v43 = vsel %vm1664_vm10, %v1650_v28, %v5761_v29  ;;  %v1684_v18 = vsel %vm1664_vm10, %v1651_v30, %v5762_v7  ;;  %v6278_v38 = vld [vmem:[#allocation2 + $0x108] sm:$0xff] }
 0x13e   : > { %v7401_v59 = vpop.permute.xlu1 %5769  ;;  %v5765_v10 = vpop.permute.xlu0 %5764 }
 0x13f   : > { %v5767_v16 = vunpack.i.h.bf16 %v5765_v10  ;;  %v5766_v17 = vunpack.i.l.bf16 %v5765_v10  ;;  %v5772_v24 = vunpack.i.h.bf16 %v7401_v59  ;;  %v5771_v37 = vunpack.i.l.bf16 %v7401_v59 }
 0x141   : > { %v1714_v26 = vsel %vm1697_vm11, %v1681_v23, %v5766_v17  ;;  %v1715_v53 = vsel %vm1697_vm11, %v1682_v58, %v5767_v16  ;;  %v1716_v19 = vsel %vm1697_vm11, %v1683_v43, %v5771_v37  ;;  %v1717_v21 = vsel %vm1697_vm11, %v1684_v18, %v5772_v24  ;;  %v6279_v17 = vld [vmem:[#allocation2 + $0xf8] sm:$0xff] }
 0x142   : > { %v5780_v46 = vpop.permute.xlu1 %5779  ;;  %v5775_v25 = vpop.permute.xlu0 %5774 }
 0x143   : > { %v5777_v5 = vunpack.i.h.bf16 %v5775_v25  ;;  %v5776_v49 = vunpack.i.l.bf16 %v5775_v25  ;;  %v5782_v4 = vunpack.i.h.bf16 %v5780_v46  ;;  %v5781_v63 = vunpack.i.l.bf16 %v5780_v46 }
 0x145   : > { %v1747_v14 = vsel %vm1730_vm12, %v1714_v26, %v5776_v49  ;;  %v1748_v60 = vsel %vm1730_vm12, %v1715_v53, %v5777_v5  ;;  %v1521_v33 = vsel %vm331_vm0, %v6279_v17, %v5782_v4  ;;  %v1520_v50 = vsel %vm331_vm0, %v6280_v35, %v5781_v63 }
 0x146   : > { %v1771_v32 = vpack.c.bf16 %v1748_v60, %v1747_v14  ;;  %v5790_v8 = vpop.permute.xlu1 %5789  ;;  %v5785_v27 = vpop.permute.xlu0 %5784 }
 0x147   : > { %v5787_v54 = vunpack.i.h.bf16 %v5785_v27  ;;  %v5786_v57 = vunpack.i.l.bf16 %v5785_v27  ;;  %v5792_v11 = vunpack.i.h.bf16 %v5790_v8  ;;  %v5791_v62 = vunpack.i.l.bf16 %v5790_v8 }
 0x148   : > { %5287 = vmatprep.mubr.msk.bf16.mxu0 %vm1815_vm13, %v1771_v32 }
 0x149   : > { %v1750_v22 = vsel %vm1730_vm12, %v1717_v21, %v5787_v54  ;;  %v1749_v34 = vsel %vm1730_vm12, %v1716_v19, %v5786_v57  ;;  %v1523_v40 = vsel %vm331_vm0, %v6277_v48, %v5792_v11  ;;  %v1522_v13 = vsel %vm331_vm0, %v6278_v38, %v5791_v62 }
 0x14a   : > { %v1772_v52 = vpack.c.bf16 %v1750_v22, %v1749_v34  ;;  %v5800_v41 = vpop.permute.xlu1 %5799  ;;  %v5795_v44 = vpop.permute.xlu0 %5794 }
 0x14b   : > { %v5802_v1 = vunpack.i.h.bf16 %v5800_v41  ;;  %v5801_v2 = vunpack.i.l.bf16 %v5800_v41  ;;  %v5797_v3 = vunpack.i.h.bf16 %v5795_v44  ;;  %v5796_v20 = vunpack.i.l.bf16 %v5795_v44 }
 0x14c   : > { %5288 = vmatmul.mubr.msk.bf16.gmra.mxu0 %vm1815_vm13, %v1772_v52 }
 0x14d   : > { %v1555_v6 = vsel %vm1532_vm7, %v1522_v13, %v5801_v2  ;;  %v1556_v51 = vsel %vm1532_vm7, %v1523_v40, %v5802_v1  ;;  %v1554_v36 = vsel %vm1532_vm7, %v1521_v33, %v5797_v3  ;;  %v1553_v7 = vsel %vm1532_vm7, %v1520_v50, %v5796_v20 }
 0x14e   : > { %v5810_v47 = vpop.permute.xlu1 %5809  ;;  %v5805_v55 = vpop.permute.xlu0 %5804 }
 0x14f   : > { %v5812_v56 = vunpack.i.h.bf16 %v5810_v47  ;;  %v5811_v59 = vunpack.i.l.bf16 %v5810_v47  ;;  %v5807_v15 = vunpack.i.h.bf16 %v5805_v55  ;;  %v5806_v16 = vunpack.i.l.bf16 %v5805_v55 }
 0x151   : > { %v1588_v25 = vsel %vm1565_vm8, %v1555_v6, %v5811_v59  ;;  %v1589_v23 = vsel %vm1565_vm8, %v1556_v51, %v5812_v56  ;;  %v1586_v37 = vsel %vm1565_vm8, %v1553_v7, %v5806_v16  ;;  %v1587_v26 = vsel %vm1565_vm8, %v1554_v36, %v5807_v15 }
 0x152   : > { %v7503_v12 = vpop.permute.xlu1 %5819  ;;  %v5815_v31 = vpop.permute.xlu0 %5814 }
 0x153   : > { %v5817_v29 = vunpack.i.h.bf16 %v5815_v31  ;;  %v5816_v46 = vunpack.i.l.bf16 %v5815_v31  ;;  %v5822_v61 = vunpack.i.h.bf16 %v7503_v12  ;;  %v5821_v14 = vunpack.i.l.bf16 %v7503_v12 }
 0x155   : > { %v1619_v30 = vsel %vm1598_vm5, %v1586_v37, %v5816_v46  ;;  %v1620_v32 = vsel %vm1598_vm5, %v1587_v26, %v5817_v29  ;;  %v1621_v31 = vsel %vm1598_vm5, %v1588_v25, %v5821_v14  ;;  %v6367_v26 = vmov 1983009808   ;;  %v6282_v14 = vld [vmem:[#allocation2 + $0x138] sm:$0xff] }
 0x156   : > { %v7505_v42 = vpop.permute.xlu1 %5829  ;;  %v5825_v45 = vpop.permute.xlu0 %5824 }
 0x157   : > { %v5827_v58 = vunpack.i.h.bf16 %v5825_v45  ;;  %v5826_v5 = vunpack.i.l.bf16 %v5825_v45  ;;  %v5832_v8 = vunpack.i.h.bf16 %v7505_v42  ;;  %v5831_v27 = vunpack.i.l.bf16 %v7505_v42 }
 0x158   : > { %v1622_v42 = vsel %vm1598_vm5, %v1589_v23, %v5822_v61 }
 0x159   : > { %v1652_v43 = vsel %vm1631_vm9, %v1619_v30, %v5826_v5  ;;  %v1653_v18 = vsel %vm1631_vm9, %v1620_v32, %v5827_v58  ;;  %v1654_v62 = vsel %vm1631_vm9, %v1621_v31, %v5831_v27  ;;  %v1655_v4 = vsel %vm1631_vm9, %v1622_v42, %v5832_v8  ;;  %v6283_v32 = vld [vmem:[#allocation2 + $0x128] sm:$0xff]  ;;  %v6284_v27 = vld [vmem:[#allocation2 + $0x120] sm:$0xff] }
 0x15a   : > { %v5840_v10 = vpop.permute.xlu1 %5839  ;;  %v5835_v9 = vpop.permute.xlu0 %5834 }
 0x15b   : > { %v5837_v53 = vunpack.i.h.bf16 %v5835_v9  ;;  %v5836_v39 = vunpack.i.l.bf16 %v5835_v9  ;;  %v5842_v54 = vunpack.i.h.bf16 %v5840_v10  ;;  %v5841_v57 = vunpack.i.l.bf16 %v5840_v10 }
 0x15d   : > { %v1685_v22 = vsel %vm1664_vm10, %v1652_v43, %v5836_v39  ;;  %v1686_v34 = vsel %vm1664_vm10, %v1653_v18, %v5837_v53  ;;  %v1687_v3 = vsel %vm1664_vm10, %v1654_v62, %v5841_v57  ;;  %v1688_v20 = vsel %vm1664_vm10, %v1655_v4, %v5842_v54  ;;  %v6281_v39 = vld [vmem:[#allocation2 + $0x140] sm:$0xff] }
 0x15e   : > { %v5850_v49 = vpop.permute.xlu1 %5849  ;;  %v5845_v24 = vpop.permute.xlu0 %5844  ;;  %v7555_v53 = vunpack.c.l.s4 %v6367_v26 }
 0x15f   : > { %v5847_v60 = vunpack.i.h.bf16 %v5845_v24  ;;  %v5846_v28 = vunpack.i.l.bf16 %v5845_v24  ;;  %v5852_v44 = vunpack.i.h.bf16 %v5850_v49  ;;  %v5851_v47 = vunpack.i.l.bf16 %v5850_v49 }
 0x161   : > { %v1718_v55 = vsel %vm1697_vm11, %v1685_v22, %v5846_v28  ;;  %v1719_v12 = vsel %vm1697_vm11, %v1686_v34, %v5847_v60  ;;  %v1720_v10 = vsel %vm1697_vm11, %v1687_v3, %v5851_v47  ;;  %v1721_v9 = vsel %vm1697_vm11, %v1688_v20, %v5852_v44 }
 0x162   : > { %v7527_v19 = vpop.permute.xlu1 %5859  ;;  %v5855_v21 = vpop.permute.xlu0 %5854 }
 0x163   : > { %v5857_v52 = vunpack.i.h.bf16 %v5855_v21  ;;  %v5856_v41 = vunpack.i.l.bf16 %v5855_v21  ;;  %v5862_v7 = vunpack.i.h.bf16 %v7527_v19  ;;  %v5861_v29 = vunpack.i.l.bf16 %v7527_v19 }
 0x165   : > { %v1751_v45 = vsel %vm1730_vm12, %v1718_v55, %v5856_v41  ;;  %v1752_v11 = vsel %vm1730_vm12, %v1719_v12, %v5857_v52  ;;  %v1525_v8 = vsel %vm331_vm0, %v6283_v32, %v5862_v7  ;;  %v1524_v43 = vsel %vm331_vm0, %v6284_v27, %v5861_v29 }
 0x166   : > { %v1773_v63 = vpack.c.bf16 %v1752_v11, %v1751_v45  ;;  %v5870_v1 = vpop.permute.xlu1 %5869  ;;  %v5865_v2 = vpop.permute.xlu0 %5864 }
 0x167   : > { %v5867_v56 = vunpack.i.h.bf16 %v5865_v2  ;;  %v5866_v59 = vunpack.i.l.bf16 %v5865_v2  ;;  %v5872_v51 = vunpack.i.h.bf16 %v5870_v1  ;;  %v5871_v36 = vunpack.i.l.bf16 %v5870_v1 }
 0x168   : > { %5291 = vmatprep.mubr.msk.bf16.mxu0 %vm1815_vm13, %v1773_v63 }
 0x169   : > { %v1754_v48 = vsel %vm1730_vm12, %v1721_v9, %v5867_v56  ;;  %v1753_v40 = vsel %vm1730_vm12, %v1720_v10, %v5866_v59  ;;  %v1527_v61 = vsel %vm331_vm0, %v6281_v39, %v5872_v51  ;;  %v1526_v60 = vsel %vm331_vm0, %v6282_v14, %v5871_v36 }
 0x16a   : > { %v1774_v38 = vpack.c.bf16 %v1754_v48, %v1753_v40  ;;  %v5880_v13 = vpop.permute.xlu1 %5879  ;;  %v5875_v15 = vpop.permute.xlu0 %5874 }
 0x16b   : > { %v5882_v46 = vunpack.i.h.bf16 %v5880_v13  ;;  %v5881_v25 = vunpack.i.l.bf16 %v5880_v13  ;;  %v5877_v23 = vunpack.i.h.bf16 %v5875_v15  ;;  %v5876_v58 = vunpack.i.l.bf16 %v5875_v15 }
 0x16c   : > { %5292 = vmatmul.mubr.msk.bf16.gmra.mxu0 %vm1815_vm13, %v1774_v38 }
 0x16d   : > { %v1559_v18 = vsel %vm1532_vm7, %v1526_v60, %v5881_v25  ;;  %v1560_v54 = vsel %vm1532_vm7, %v1527_v61, %v5882_v46  ;;  %v1558_v57 = vsel %vm1532_vm7, %v1525_v8, %v5877_v23  ;;  %v1557_v19 = vsel %vm1532_vm7, %v1524_v43, %v5876_v58 }
 0x16e   : > { %v5890_v16 = vpop.permute.xlu1 %5889  ;;  %v5885_v17 = vpop.permute.xlu0 %5884 }
 0x16f   : > { %v5892_v5 = vunpack.i.h.bf16 %v5890_v16  ;;  %v5891_v49 = vunpack.i.l.bf16 %v5890_v16  ;;  %v5887_v28 = vunpack.i.h.bf16 %v5885_v17  ;;  %v5886_v30 = vunpack.i.l.bf16 %v5885_v17 }
 0x171   : > { %v1592_v34 = vsel %vm1565_vm8, %v1559_v18, %v5891_v49  ;;  %v1593_v52 = vsel %vm1565_vm8, %v1560_v54, %v5892_v5  ;;  %v1590_v12 = vsel %vm1565_vm8, %v1557_v19, %v5886_v30  ;;  %v1591_v31 = vsel %vm1565_vm8, %v1558_v57, %v5887_v28  ;;  %v7600_v19 = vld [vmem:[%s8670_s5] ss:$0 sm:$0xff] }
 0x172   : > { %v7547_v33 = vpop.permute.xlu1 %5899  ;;  %v5895_v35 = vpop.permute.xlu0 %5894  ;;  %v2203_v5 = vlaneseq  ;;  %v2202_v28 = vunpack.c.0.s8 %v7555_v53 }
 0x173   : > { %v5897_v21 = vunpack.i.h.bf16 %v5895_v35  ;;  %v5896_v22 = vunpack.i.l.bf16 %v5895_v35  ;;  %v5902_v11 = vunpack.i.h.bf16 %v7547_v33  ;;  %v5901_v62 = vunpack.i.l.bf16 %v7547_v33 }
 0x174   : > { %v2204_v18 = vshrl.u32 %v2203_v5, 7 }
 0x175   : > { %v1623_v1 = vsel %vm1598_vm5, %v1590_v12, %v5896_v22  ;;  %v1624_v2 = vsel %vm1598_vm5, %v1591_v31, %v5897_v21  ;;  %v1626_v51 = vsel %vm1598_vm5, %v1593_v52, %v5902_v11 }
 0x176   : > { %v7549_v50 = vpop.permute.xlu1 %5909  ;;  %v5905_v6 = vpop.permute.xlu0 %5904  ;;  %v7611_v11 = vsub.s32 %v2202_v28, %v2204_v18 }
 0x177   : > { %v5907_v41 = vunpack.i.h.bf16 %v5905_v6  ;;  %v5906_v44 = vunpack.i.l.bf16 %v5905_v6  ;;  %v5912_v3 = vunpack.i.h.bf16 %v7549_v50  ;;  %v5911_v20 = vunpack.i.l.bf16 %v7549_v50 }
 0x178   : > { %v1625_v6 = vsel %vm1598_vm5, %v1592_v34, %v5901_v62  ;;  %v6287_v62 = vld [vmem:[#allocation2 + $0x170] sm:$0xff] }
 0x179   : > { %v1656_v56 = vsel %vm1631_vm9, %v1623_v1, %v5906_v44  ;;  %v1657_v59 = vsel %vm1631_vm9, %v1624_v2, %v5907_v41  ;;  %v1658_v29 = vsel %vm1631_vm9, %v1625_v6, %v5911_v20  ;;  %v1659_v46 = vsel %vm1631_vm9, %v1626_v51, %v5912_v3  ;;  %v7606_v41 = vld [vmem:[%s8670_s5 + $0x1] ss:$0 sm:$0xff]  ;;  %v6285_v44 = vld [vmem:[#allocation2 + $0x158] sm:$0xff] }
 0x17a   : > { %v7553_v24 = vpop.permute.xlu1 %5919  ;;  %v5915_v37 = vpop.permute.xlu0 %5914 }
 0x17b   : > { %v5917_v42 = vunpack.i.h.bf16 %v5915_v37  ;;  %v5916_v45 = vunpack.i.l.bf16 %v5915_v37  ;;  %v5922_v10 = vunpack.i.h.bf16 %v7553_v24  ;;  %v5921_v9 = vunpack.i.l.bf16 %v7553_v24 }
 0x17d   : > { %v1689_v38 = vsel %vm1664_vm10, %v1656_v56, %v5916_v45  ;;  %v1690_v13 = vsel %vm1664_vm10, %v1657_v59, %v5917_v42  ;;  %v1691_v49 = vsel %vm1664_vm10, %v1658_v29, %v5921_v9  ;;  %v1692_v24 = vsel %vm1664_vm10, %v1659_v46, %v5922_v10 }
 0x17e   : > { %v5930_v47 = vpop.permute.xlu1 %5929  ;;  %v5925_v55 = vpop.permute.xlu0 %5924 }
 0x17f   : > { %v5927_v4 = vunpack.i.h.bf16 %v5925_v55  ;;  %v5926_v63 = vunpack.i.l.bf16 %v5925_v55  ;;  %v5932_v17 = vunpack.i.h.bf16 %v5930_v47  ;;  %v5931_v33 = vunpack.i.l.bf16 %v5930_v47  ;;  %v6286_v55 = vld [vmem:[#allocation2 + $0x150] sm:$0xff] }
 0x181   : > { %v1722_v35 = vsel %vm1697_vm11, %v1689_v38, %v5926_v63  ;;  %v1723_v50 = vsel %vm1697_vm11, %v1690_v13, %v5927_v4  ;;  %v1724_v39 = vsel %vm1697_vm11, %v1691_v49, %v5931_v33  ;;  %v1725_v61 = vsel %vm1697_vm11, %v1692_v24, %v5932_v17  ;;  %v6288_v63 = vld [vmem:[#allocation2 + $0x168] sm:$0xff] }
 0x182   : > { %v5940_v48 = vpop.permute.xlu1 %5939  ;;  %v5935_v40 = vpop.permute.xlu0 %5934 }
 0x183   : > { %v5937_v15 = vunpack.i.h.bf16 %v5935_v40  ;;  %v5936_v16 = vunpack.i.l.bf16 %v5935_v40  ;;  %v5942_v30 = vunpack.i.h.bf16 %v5940_v48  ;;  %v5941_v32 = vunpack.i.l.bf16 %v5940_v48 }
 0x185   : > { %v1755_v36 = vsel %vm1730_vm12, %v1722_v35, %v5936_v16  ;;  %v1756_v7 = vsel %vm1730_vm12, %v1723_v50, %v5937_v15  ;;  %v1529_v47 = vsel %vm331_vm0, %v6285_v44, %v5942_v30  ;;  %v1528_v12 = vsel %vm331_vm0, %v6286_v55, %v5941_v32 }
 0x186   : > { %v1775_v25 = vpack.c.bf16 %v1756_v7, %v1755_v36  ;;  %v5950_v23 = vpop.permute.xlu1 %5949  ;;  %v5945_v58 = vpop.permute.xlu0 %5944 }
 0x187   : > { %v5947_v37 = vunpack.i.h.bf16 %v5945_v58  ;;  %v5946_v26 = vunpack.i.l.bf16 %v5945_v58  ;;  %v5952_v54 = vunpack.i.h.bf16 %v5950_v23  ;;  %v5951_v57 = vunpack.i.l.bf16 %v5950_v23 }
 0x188   : > { %5295 = vmatprep.mubr.msk.bf16.mxu0 %vm1815_vm13, %v1775_v25 }
 0x189   : > { %v1758_v14 = vsel %vm1730_vm12, %v1725_v61, %v5947_v37  ;;  %v1757_v60 = vsel %vm1730_vm12, %v1724_v39, %v5946_v26  ;;  %v1531_v4 = vsel %vm331_vm0, %v6287_v62, %v5952_v54  ;;  %v1530_v1 = vsel %vm331_vm0, %v6288_v63, %v5951_v57 }
 0x18a   : > { %v1776_v8 = vpack.c.bf16 %v1758_v14, %v1757_v60  ;;  %v5960_v27 = vpop.permute.xlu1 %5959  ;;  %v5955_v43 = vpop.permute.xlu0 %5954  ;;  %vm3074_vm0 = vcmask 1041409  }
 0x18b   : > { %v5962_v21 = vunpack.i.h.bf16 %v5960_v27  ;;  %v5961_v22 = vunpack.i.l.bf16 %v5960_v27  ;;  %v5957_v34 = vunpack.i.h.bf16 %v5955_v43  ;;  %v5956_v52 = vunpack.i.l.bf16 %v5955_v43 }
 0x18c   : > { %5296 = vmatmul.mubr.msk.bf16.gmra.mxu0 %vm1815_vm13, %v1776_v8 }
 0x18d   : > { %v5273_v53 = vpop.f32.mrf.mxu0  ;;  %v1563_v56 = vsel %vm1532_vm7, %v1530_v1, %v5961_v22  ;;  %v1564_v59 = vsel %vm1532_vm7, %v1531_v4, %v5962_v21  ;;  %v1562_v48 = vsel %vm1532_vm7, %v1529_v47, %v5957_v34  ;;  %v1561_v40 = vsel %vm1532_vm7, %v1528_v12, %v5956_v52 }
 0x18e   : > { %v2037_v31 = vmul.f32 %v5273_v53, %v7600_v19  ;;  %v5970_v42 = vpop.permute.xlu1 %5969  ;;  %v5965_v45 = vpop.permute.xlu0 %5964  ;;  %vm3082_vm7 = vcmask 1045509  }
 0x18f   : > { %v5972_v2 = vunpack.i.h.bf16 %v5970_v42  ;;  %v5971_v3 = vunpack.i.l.bf16 %v5970_v42  ;;  %v1902_v20 = vpop.f32.mrf.mxu0  ;;  %v5967_v38 = vunpack.i.h.bf16 %v5965_v45  ;;  %v5966_v13 = vunpack.i.l.bf16 %v5965_v45 }
 0x190   : > { %v2073_v10 = vadd.f32 %v7606_v41, %v2037_v31  ;;  %v2035_v9 = vmul.f32 %v7600_v19, %v1902_v20 }
 0x191   : > { %v5274_v15 = vpop.f32.mrf.mxu0  ;;  %v1596_v17 = vsel %vm1565_vm8, %v1563_v56, %v5971_v3  ;;  %v1597_v51 = vsel %vm1565_vm8, %v1564_v59, %v5972_v2  ;;  %v1594_v24 = vsel %vm1565_vm8, %v1561_v40, %v5966_v13  ;;  %v1595_v37 = vsel %vm1565_vm8, %v1562_v48, %v5967_v38 }
 0x192   : > { %v2105_v16 = vmax.f32 %v2073_v10, 0.0  ;;  %v2071_v33 = vadd.f32 %v7606_v41, %v2035_v9  ;;  %v2038_v35 = vmul.f32 %v5274_v15, %v7600_v19  ;;  %v5980_v50 = vpop.permute.xlu1 %5979  ;;  %v5975_v6 = vpop.permute.xlu0 %5974  ;;  %vm3084_vm8 = vcmask 1046534  }
 0x193   : > { %v5982_v36 = vunpack.i.h.bf16 %v5980_v50  ;;  %v5981_v7 = vunpack.i.l.bf16 %v5980_v50  ;;  %v5977_v29 = vunpack.i.h.bf16 %v5975_v6  ;;  %v1905_v46 = vpop.f32.mrf.mxu0  ;;  %v5976_v58 = vunpack.i.l.bf16 %v5975_v6 }
 0x194   : > { %v2103_v25 = vmax.f32 %v2071_v33, 0.0  ;;  %v2074_v23 = vadd.f32 %v7606_v41, %v2038_v35  ;;  %v2036_v5 = vmul.f32 %v7600_v19, %v1905_v46  ;;  %v2136_v49 = vsel %vm1598_vm5, %v2105_v16, -inf }
 0x195   : > { %v1629_v26 = vsel %vm1598_vm5, %v1596_v17, %v5981_v7  ;;  %v1630_v14 = vsel %vm1598_vm5, %v1597_v51, %v5982_v36  ;;  %v1627_v18 = vsel %vm1598_vm5, %v1594_v24, %v5976_v58  ;;  %v1628_v54 = vsel %vm1598_vm5, %v1595_v37, %v5977_v29 }
 0x196   : > { %v2135_v39 = vsel %vm1598_vm5, %v2103_v25, -inf  ;;  %v2106_v61 = vmax.f32 %v2074_v23, 0.0  ;;  %v2072_v60 = vadd.f32 %v7606_v41, %v2036_v5  ;;  %v5990_v28 = vpop.permute.xlu1 %5989  ;;  %v5985_v30 = vpop.permute.xlu0 %5984 }
 0x197   : > { %v2137_v32 = vmax.f32 %v2135_v39, %v2136_v49  ;;  %v5992_v8 = vunpack.i.h.bf16 %v5990_v28  ;;  %v5991_v27 = vunpack.i.l.bf16 %v5990_v28  ;;  %v5987_v43 = vunpack.i.h.bf16 %v5985_v30 }
 0x198   : > { %v2104_v57 = vmax.f32 %v2072_v60, 0.0  ;;  %v5986_v21 = vunpack.i.l.bf16 %v5985_v30  ;;  %v2139_v52 = vsel %vm1598_vm5, %v2106_v61, -inf }
 0x199   : > { %v2199_v22 = vcombine.high %v2137_v32, %v2137_v32  ;;  %v2206_v34 = vrot.slane %v2137_v32, %v7611_v11  ;;  %v1662_v53 = vsel %vm1631_vm9, %v1629_v26, %v5991_v27  ;;  %v1663_v47 = vsel %vm1631_vm9, %v1630_v14, %v5992_v8 }
 0x19a   : > { %v2138_v44 = vsel %vm1598_vm5, %v2104_v57, -inf  ;;  %v7642_v55 = vsel %vm1631_vm9, %v1627_v18, %v5986_v21  ;;  %v7645_v12 = vsel %vm1631_vm9, %v1628_v54, %v5987_v43  ;;  %v6000_v31 = vpop.permute.xlu1 %5999  ;;  %v7647_v42 = vpop.permute.xlu0 %5994  ;;  %vm3086_vm9 = vcmask 1047559  }
 0x19b   : > { %v2213_v45 = vrot.slane %v2199_v22, %v7611_v11  ;;  %v2214_v62 = vcombine.high %v2206_v34, %v2206_v34  ;;  %v2536_v4 = vsel %vm2535_vm14, %v2206_v34, -inf  ;;  %v2140_v63 = vmax.f32 %v2138_v44, %v2139_v52 }
 0x19c   : > { %v2537_v1 = vrot.slane %v2536_v4, 4  ;;  %v6002_v2 = vunpack.i.h.bf16 %v6000_v31  ;;  %v6001_v3 = vunpack.i.l.bf16 %v6000_v31  ;;  %v5997_v20 = vunpack.i.h.bf16 %v7647_v42 }
 0x19d   : > { %v2215_v56 = vcombine.high %v2213_v45, %v2213_v45  ;;  %v2543_v59 = vsel %vm2535_vm14, %v2214_v62, -inf  ;;  %v2550_v10 = vsel %vm2535_vm14, %v2213_v45, -inf  ;;  %v2216_v9 = vcombine.high %v2140_v63, %v2140_v63 }
 0x19e   : > { %v2538_v48 = vmax.f32 %v2536_v4, %v2537_v1  ;;  %v2544_v40 = vrot.slane %v2543_v59, 4  ;;  %v2551_v38 = vrot.slane %v2550_v10, 4  ;;  %v2223_v13 = vrot.slane %v2140_v63, %v7611_v11  ;;  %v6010_v57 = vpop.permute.xlu1 %6009 }
 0x19f   : > { %v2557_v15 = vsel %vm2535_vm14, %v2215_v56, -inf  ;;  %v2230_v16 = vrot.slane %v2216_v9, %v7611_v11  ;;  %v7658_v17 = vsel %vm1664_vm10, %v1662_v53, %v6001_v3  ;;  %v7661_v33 = vsel %vm1664_vm10, %v1663_v47, %v6002_v2  ;;  %v6005_v53 = vpop.permute.xlu0 %6004 }
 0x1a0   : > { %v2539_v35 = vrot.slane %v2538_v48, 2  ;;  %v2545_v50 = vmax.f32 %v2543_v59, %v2544_v40  ;;  %v2552_v6 = vmax.f32 %v2550_v10, %v2551_v38  ;;  %v2558_v51 = vrot.slane %v2557_v15, 4 }
 0x1a1   : > { %v2231_v36 = vcombine.high %v2223_v13, %v2223_v13  ;;  %v2232_v7 = vcombine.high %v2230_v16, %v2230_v16  ;;  %v2564_v29 = vsel %vm2535_vm14, %v2223_v13, -inf  ;;  %v2578_v46 = vsel %vm2535_vm14, %v2230_v16, -inf }
 0x1a2   : > { %v2540_v25 = vmax.f32 %v2538_v48, %v2539_v35  ;;  %v2546_v23 = vrot.slane %v2545_v50, 2  ;;  %v2553_v58 = vrot.slane %v2552_v6, 2  ;;  %v2559_v5 = vmax.f32 %v2557_v15, %v2558_v51  ;;  %v6020_v35 = vpop.permute.xlu1 %6019 }
 0x1a3   : > { %v2565_v49 = vrot.slane %v2564_v29, 4  ;;  %v2571_v24 = vsel %vm2535_vm14, %v2231_v36, -inf  ;;  %v2579_v37 = vrot.slane %v2578_v46, 4  ;;  %v2585_v26 = vsel %vm2535_vm14, %v2232_v7, -inf  ;;  %v6015_v36 = vpop.permute.xlu0 %6014 }
 0x1a4   : > { %v2541_v39 = vrot.slane %v2540_v25, 1  ;;  %v2547_v61 = vmax.f32 %v2545_v50, %v2546_v23  ;;  %v2554_v14 = vmax.f32 %v2552_v6, %v2553_v58  ;;  %v2560_v60 = vrot.slane %v2559_v5, 2 }
 0x1a5   : > { %v2566_v28 = vmax.f32 %v2564_v29, %v2565_v49  ;;  %v2572_v30 = vrot.slane %v2571_v24, 4  ;;  %v2580_v32 = vmax.f32 %v2578_v46, %v2579_v37  ;;  %v2586_v8 = vrot.slane %v2585_v26, 4 }
 0x1a6   : > { %v2542_v27 = vmax.f32 %v2540_v25, %v2541_v39  ;;  %v2548_v43 = vrot.slane %v2547_v61, 1  ;;  %v2555_v18 = vrot.slane %v2554_v14, 1  ;;  %v2561_v54 = vmax.f32 %v2559_v5, %v2560_v60 }
 0x1a7   : > { %v2567_v21 = vrot.slane %v2566_v28, 2  ;;  %v2573_v22 = vmax.f32 %v2571_v24, %v2572_v30  ;;  %v2581_v34 = vrot.slane %v2580_v32, 2  ;;  %v2587_v52 = vmax.f32 %v2585_v26, %v2586_v8  ;;  %v3154_v8 = vld [vmem:[#allocation3] sm:$0xff] }
 0x1a8   : > { %v2549_v44 = vmax.f32 %v2547_v61, %v2548_v43  ;;  %v2556_v47 = vmax.f32 %v2554_v14, %v2555_v18  ;;  %v2562_v31 = vrot.slane %v2561_v54, 1  ;;  %v5996_v45 = vunpack.i.l.bf16 %v7647_v42 }
 0x1a9   : > { %v2568_v62 = vmax.f32 %v2566_v28, %v2567_v21  ;;  %v2574_v4 = vrot.slane %v2573_v22, 2  ;;  %v2582_v63 = vmax.f32 %v2580_v32, %v2581_v34  ;;  %v2588_v1 = vrot.slane %v2587_v52, 2  ;;  %v3155_v21 = vld [vmem:[#allocation3 + $0x8] sm:$0x3] }
 0x1aa   : > { %v2563_v2 = vmax.f32 %v2561_v54, %v2562_v31  ;;  %v3075_v3 = vsel %vm3074_vm0, %v2549_v44, %v2542_v27  ;;  %v1693_v56 = vsel %vm1664_vm10, %v7642_v55, %v5996_v45  ;;  %v1694_v59 = vsel %vm1664_vm10, %v7645_v12, %v5997_v20 }
 0x1ab   : > { %v3077_v10 = vsel %vm3076_vm1, %v2556_v47, %v3075_v3  ;;  %v2569_v9 = vrot.slane %v2568_v62, 1  ;;  %v2575_v48 = vmax.f32 %v2573_v22, %v2574_v4  ;;  %v2583_v40 = vrot.slane %v2582_v63, 1 }
 0x1ac   : > { %v2589_v38 = vmax.f32 %v2587_v52, %v2588_v1  ;;  %v3079_v13 = vsel %vm3078_vm2, %v2563_v2, %v3077_v10  ;;  %v6012_v15 = vunpack.i.h.bf16 %v6010_v57  ;;  %v6011_v16 = vunpack.i.l.bf16 %v6010_v57 }
 0x1ad   : > { %v2570_v50 = vmax.f32 %v2568_v62, %v2569_v9  ;;  %v2576_v6 = vrot.slane %v2575_v48, 1  ;;  %v2584_v51 = vmax.f32 %v2582_v63, %v2583_v40  ;;  %v6007_v55 = vunpack.i.h.bf16 %v6005_v53  ;;  %v5277_v42 = vpop.f32.mrf.mxu0 }
 0x1ae   : > { %v2590_v7 = vrot.slane %v2589_v38, 1  ;;  %v1728_v12 = vsel %vm1697_vm11, %v7658_v17, %v6011_v16  ;;  %v1729_v20 = vsel %vm1697_vm11, %v7661_v33, %v6012_v15  ;;  %v6006_v29 = vunpack.i.l.bf16 %v6005_v53 }
 0x1af   : > { %v2577_v46 = vmax.f32 %v2575_v48, %v2576_v6  ;;  %v3081_v25 = vsel %vm3080_vm6, %v2570_v50, %v3079_v13  ;;  %v1727_v23 = vsel %vm1697_vm11, %v1694_v59, %v6007_v55  ;;  %v6022_v58 = vunpack.i.h.bf16 %v6020_v35  ;;  %v1918_v5 = vpop.f32.mrf.mxu0 }
 0x1b0   : > { %v2591_v49 = vmax.f32 %v2589_v38, %v2590_v7  ;;  %v1726_v24 = vsel %vm1697_vm11, %v1693_v56, %v6006_v29  ;;  %v6021_v37 = vunpack.i.l.bf16 %v6020_v35  ;;  %v6017_v26 = vunpack.i.h.bf16 %v6015_v36 }
 0x1b1   : > { %v3083_v39 = vsel %vm3082_vm7, %v2577_v46, %v3081_v25  ;;  %v1762_v17 = vsel %vm1730_vm12, %v1729_v20, %v6022_v58  ;;  %v6016_v61 = vunpack.i.l.bf16 %v6015_v36  ;;  %v2041_v33 = vmul.f32 %v5277_v42, %v7600_v19  ;;  %v5278_v14 = vpop.f32.mrf.mxu0 }
 0x1b2   : > { %v3085_v60 = vsel %vm3084_vm8, %v2584_v51, %v3083_v39  ;;  %v1761_v28 = vsel %vm1730_vm12, %v1728_v12, %v6021_v37  ;;  %v1760_v30 = vsel %vm1730_vm12, %v1727_v23, %v6017_v26  ;;  %v2039_v32 = vmul.f32 %v7600_v19, %v1918_v5 }
 0x1b3   : > { %v3087_v27 = vsel %vm3086_vm9, %v2591_v49, %v3085_v60  ;;  %v1778_v43 = vpack.c.bf16 %v1762_v17, %v1761_v28  ;;  %v1759_v18 = vsel %vm1730_vm12, %v1726_v24, %v6016_v61  ;;  %v2077_v54 = vadd.f32 %v7606_v41, %v2041_v33  ;;  %v1921_v57 = vpop.f32.mrf.mxu0 }
 0x1b4   : > { %3146 = vst.msk [vmem:[#allocation3 + $0x11] sm:$0xff] %vm1598_vm5, %v3087_v27  ;;  %v1777_v22 = vpack.c.bf16 %v1760_v30, %v1759_v18  ;;  %v2075_v34 = vadd.f32 %v7606_v41, %v2039_v32  ;;  %v2042_v52 = vmul.f32 %v5278_v14, %v7600_v19  ;;  %v2040_v53 = vmul.f32 %v7600_v19, %v1921_v57 }
 0x1b5   : > { %v2109_v44 = vmax.f32 %v2077_v54, 0.0  ;;  %v3190_v47 = vrot.slane %v3154_v8, 1  ;;  %v3191_v4 = vrot.slane %v3155_v21, 1  ;;  %v3214_v63 = vrot.slane %v3154_v8, 2 }
 0x1b6   : > { %5299 = vmatprep.mubr.msk.bf16.mxu0 %vm1815_vm13, %v1777_v22  ;;  %v2107_v31 = vmax.f32 %v2075_v34, 0.0  ;;  %v2078_v45 = vadd.f32 %v7606_v41, %v2042_v52  ;;  %v2076_v62 = vadd.f32 %v7606_v41, %v2040_v53  ;;  %v3215_v1 = vrot.slane %v3155_v21, 2 }
 0x1b7   : > { %5300 = vmatmul.mubr.msk.bf16.gmra.mxu0 %vm1815_vm13, %v1778_v43  ;;  %v2142_v2 = vsel %vm1598_vm5, %v2109_v44, -inf  ;;  %v7707_v40 = vsel %vm544_vm4, %v3190_v47, %v3191_v4  ;;  %vm3430_vm10 = vcmask 785408   ;;  %vm4075_vm11 = vcmask 1042432  }
 0x1b8   : > { %v2141_v3 = vsel %vm1598_vm5, %v2107_v31, -inf  ;;  %v2110_v56 = vmax.f32 %v2078_v45, 0.0  ;;  %v2108_v59 = vmax.f32 %v2076_v62, 0.0  ;;  %v7713_v50 = vsel %vm625_vm3, %v3214_v63, %v3215_v1 }
 0x1b9   : > { %v2143_v10 = vmax.f32 %v2141_v3, %v2142_v2  ;;  %vm4076_vm13 = vcmask 1046532  }
 0x1ba   : > { %v2145_v9 = vsel %vm1598_vm5, %v2110_v56, -inf  ;;  %v2144_v48 = vsel %vm1598_vm5, %v2108_v59, -inf }
 0x1bb   : > { %v2233_v38 = vcombine.high %v2143_v10, %v2143_v10  ;;  %v2240_v13 = vrot.slane %v2143_v10, %v7611_v11  ;;  %v2146_v15 = vmax.f32 %v2144_v48, %v2145_v9  ;;  %v7710_v16 = vld [vmem:[#allocation3 + $0x10] sm:$0xff]  ;;  %v3157_v35 = vld [vmem:[#allocation3 + $0x18] sm:$0x3] }
 0x1bc   : > { %v3193_v6 = vrot.slane %v7710_v16, 1  ;;  %v3194_v51 = vrot.slane %v3157_v35, 1  ;;  %v3217_v55 = vrot.slane %v7710_v16, 2  ;;  %v3218_v36 = vrot.slane %v3157_v35, 2 }
 0x1bd   : > { %v2247_v42 = vrot.slane %v2233_v38, %v7611_v11  ;;  %v2248_v7 = vcombine.high %v2240_v13, %v2240_v13  ;;  %v2592_v12 = vsel %vm2535_vm14, %v2240_v13, -inf  ;;  %v2250_v20 = vcombine.high %v2146_v15, %v2146_v15 }
 0x1be   : > { %v2593_v29 = vrot.slane %v2592_v12, 4  ;;  %v2257_v46 = vrot.slane %v2146_v15, %v7611_v11  ;;  %v7721_v25 = vsel %vm544_vm4, %v3193_v6, %v3194_v51  ;;  %v7724_v23 = vsel %vm625_vm3, %v3217_v55, %v3218_v36 }
 0x1bf   : > { %v2249_v58 = vcombine.high %v2247_v42, %v2247_v42  ;;  %v2599_v5 = vsel %vm2535_vm14, %v2248_v7, -inf  ;;  %v2606_v49 = vsel %vm2535_vm14, %v2247_v42, -inf  ;;  %v2264_v24 = vrot.slane %v2250_v20, %v7611_v11 }
 0x1c0   : > { %v2594_v37 = vmax.f32 %v2592_v12, %v2593_v29  ;;  %v2600_v26 = vrot.slane %v2599_v5, 4  ;;  %v2607_v39 = vrot.slane %v2606_v49, 4  ;;  %v2265_v17 = vcombine.high %v2257_v46, %v2257_v46 }
 0x1c1   : > { %v2613_v61 = vsel %vm2535_vm14, %v2249_v58, -inf  ;;  %v2266_v33 = vcombine.high %v2264_v24, %v2264_v24  ;;  %v2620_v14 = vsel %vm2535_vm14, %v2257_v46, -inf  ;;  %v2634_v60 = vsel %vm2535_vm14, %v2264_v24, -inf }
 0x1c2   : > { %v2595_v28 = vrot.slane %v2594_v37, 2  ;;  %v2601_v30 = vmax.f32 %v2599_v5, %v2600_v26  ;;  %v2608_v32 = vmax.f32 %v2606_v49, %v2607_v39  ;;  %v2614_v8 = vrot.slane %v2613_v61, 4 }
 0x1c3   : > { %v2621_v27 = vrot.slane %v2620_v14, 4  ;;  %v2627_v43 = vsel %vm2535_vm14, %v2265_v17, -inf  ;;  %v2635_v18 = vrot.slane %v2634_v60, 4  ;;  %v2641_v54 = vsel %vm2535_vm14, %v2266_v33, -inf }
 0x1c4   : > { %v2596_v57 = vmax.f32 %v2594_v37, %v2595_v28  ;;  %v2602_v21 = vrot.slane %v2601_v30, 2  ;;  %v2609_v22 = vrot.slane %v2608_v32, 2  ;;  %v2615_v34 = vmax.f32 %v2613_v61, %v2614_v8 }
 0x1c5   : > { %v2622_v52 = vmax.f32 %v2620_v14, %v2621_v27  ;;  %v2628_v53 = vrot.slane %v2627_v43, 4  ;;  %v2636_v44 = vmax.f32 %v2634_v60, %v2635_v18  ;;  %v2642_v47 = vrot.slane %v2641_v54, 4 }
 0x1c6   : > { %v2597_v31 = vrot.slane %v2596_v57, 1  ;;  %v2603_v45 = vmax.f32 %v2601_v30, %v2602_v21  ;;  %v2610_v62 = vmax.f32 %v2608_v32, %v2609_v22  ;;  %v2616_v4 = vrot.slane %v2615_v34, 2 }
 0x1c7   : > { %v2623_v63 = vrot.slane %v2622_v52, 2  ;;  %v2629_v1 = vmax.f32 %v2627_v43, %v2628_v53  ;;  %v2637_v2 = vrot.slane %v2636_v44, 2  ;;  %v2643_v3 = vmax.f32 %v2641_v54, %v2642_v47 }
 0x1c8   : > { %v2598_v56 = vmax.f32 %v2596_v57, %v2597_v31  ;;  %v2604_v59 = vrot.slane %v2603_v45, 1  ;;  %v2611_v10 = vrot.slane %v2610_v62, 1  ;;  %v2617_v9 = vmax.f32 %v2615_v34, %v2616_v4 }
 0x1c9   : > { %v2624_v48 = vmax.f32 %v2622_v52, %v2623_v63  ;;  %v2630_v38 = vrot.slane %v2629_v1, 2  ;;  %v2638_v13 = vmax.f32 %v2636_v44, %v2637_v2  ;;  %v2644_v15 = vrot.slane %v2643_v3, 2 }
 0x1ca   : > { %v2605_v35 = vmax.f32 %v2603_v45, %v2604_v59  ;;  %v2612_v6 = vmax.f32 %v2610_v62, %v2611_v10  ;;  %v2618_v51 = vrot.slane %v2617_v9, 1  ;;  %v6023_v55 = vpack.i.bf16 %v7721_v25, %v7707_v40 }
 0x1cb   : > { %v2625_v36 = vrot.slane %v2624_v48, 1  ;;  %v2631_v42 = vmax.f32 %v2629_v1, %v2630_v38  ;;  %v2639_v7 = vrot.slane %v2638_v13, 1  ;;  %v2645_v12 = vmax.f32 %v2643_v3, %v2644_v15 }
 0x1cc   : > { %v2619_v20 = vmax.f32 %v2617_v9, %v2618_v51  ;;  %v3088_v29 = vsel %vm3074_vm0, %v2605_v35, %v2598_v56  ;;  %6024 = vrot.lane.b32.xlu1 %v6023_v55, %s6362_s29  ;;  %v6028_v49 = vpack.i.bf16 %v7724_v23, %v7713_v50 }
 0x1cd   : > { %v3089_v46 = vsel %vm3076_vm1, %v2612_v6, %v3088_v29  ;;  %v2626_v58 = vmax.f32 %v2624_v48, %v2625_v36  ;;  %v2632_v5 = vrot.slane %v2631_v42, 1  ;;  %v5281_v24 = vpop.f32.mrf.mxu0  ;;  %v2640_v37 = vmax.f32 %v2638_v13, %v2639_v7 }
 0x1ce   : > { %v2646_v26 = vrot.slane %v2645_v12, 1  ;;  %v3090_v40 = vsel %vm3078_vm2, %v2619_v20, %v3089_v46  ;;  %v2045_v39 = vmul.f32 %v5281_v24, %v7600_v19 }
 0x1cf   : > { %v2633_v17 = vmax.f32 %v2631_v42, %v2632_v5  ;;  %v3091_v61 = vsel %vm3080_vm6, %v2626_v58, %v3090_v40  ;;  %v1934_v33 = vpop.f32.mrf.mxu0 }
 0x1d0   : > { %v2647_v14 = vmax.f32 %v2645_v12, %v2646_v26  ;;  %6029 = vrot.lane.b32.xlu1 %v6028_v49, %s8680_s23  ;;  %v2081_v60 = vadd.f32 %v7606_v41, %v2045_v39  ;;  %v2043_v28 = vmul.f32 %v7600_v19, %v1934_v33 }
 0x1d1   : > { %v3092_v50 = vsel %vm3082_vm7, %v2633_v17, %v3091_v61  ;;  %v5282_v30 = vpop.f32.mrf.mxu0 }
 0x1d2   : > { %v3093_v32 = vsel %vm3084_vm8, %v2640_v37, %v3092_v50  ;;  %v2113_v8 = vmax.f32 %v2081_v60, 0.0  ;;  %v2079_v27 = vadd.f32 %v7606_v41, %v2043_v28  ;;  %v2046_v43 = vmul.f32 %v5282_v30, %v7600_v19 }
 0x1d3   : > { %v3094_v18 = vsel %vm3086_vm9, %v2647_v14, %v3093_v32  ;;  %v1937_v54 = vpop.f32.mrf.mxu0 }
 0x1d4   : > { %3147 = vst.msk [vmem:[#allocation3 + $0x21] sm:$0xff] %vm1598_vm5, %v3094_v18  ;;  %v2111_v57 = vmax.f32 %v2079_v27, 0.0  ;;  %v2082_v21 = vadd.f32 %v7606_v41, %v2046_v43  ;;  %v2044_v22 = vmul.f32 %v7600_v19, %v1937_v54  ;;  %v2148_v34 = vsel %vm1598_vm5, %v2113_v8, -inf }
 0x1d6   : > { %v2147_v52 = vsel %vm1598_vm5, %v2111_v57, -inf  ;;  %v2114_v53 = vmax.f32 %v2082_v21, 0.0  ;;  %v2080_v44 = vadd.f32 %v7606_v41, %v2044_v22 }
 0x1d7   : > { %v2149_v47 = vmax.f32 %v2147_v52, %v2148_v34 }
 0x1d8   : > { %v2112_v31 = vmax.f32 %v2080_v44, 0.0  ;;  %v2151_v4 = vsel %vm1598_vm5, %v2114_v53, -inf }
 0x1d9   : > { %v2267_v45 = vcombine.high %v2149_v47, %v2149_v47  ;;  %v2274_v62 = vrot.slane %v2149_v47, %v7611_v11 }
 0x1da   : > { %v2150_v63 = vsel %vm1598_vm5, %v2112_v31, -inf }
 0x1db   : > { %v2281_v1 = vrot.slane %v2267_v45, %v7611_v11  ;;  %v2282_v2 = vcombine.high %v2274_v62, %v2274_v62  ;;  %v2648_v3 = vsel %vm2535_vm14, %v2274_v62, -inf  ;;  %v2152_v56 = vmax.f32 %v2150_v63, %v2151_v4  ;;  %v7763_v59 = vld [vmem:[#allocation3 + $0x20] sm:$0xff]  ;;  %v7765_v10 = vld [vmem:[#allocation3 + $0x28] sm:$0x3] }
 0x1dc   : > { %v2649_v9 = vrot.slane %v2648_v3, 4  ;;  %v6033_v48 = vpack.i.bf16 %v7763_v59, %v7710_v16  ;;  %v3220_v38 = vrot.slane %v7763_v59, 2  ;;  %v3221_v13 = vrot.slane %v7765_v10, 2 }
 0x1dd   : > { %v2283_v15 = vcombine.high %v2281_v1, %v2281_v1  ;;  %v2655_v35 = vsel %vm2535_vm14, %v2282_v2, -inf  ;;  %v2662_v6 = vsel %vm2535_vm14, %v2281_v1, -inf  ;;  %v2284_v51 = vcombine.high %v2152_v56, %v2152_v56 }
 0x1de   : > { %v2650_v55 = vmax.f32 %v2648_v3, %v2649_v9  ;;  %v2656_v36 = vrot.slane %v2655_v35, 4  ;;  %v2663_v42 = vrot.slane %v2662_v6, 4  ;;  %v2291_v7 = vrot.slane %v2152_v56, %v7611_v11  ;;  %6034 = vrot.lane.b32.xlu1 %v6033_v48, %s8677_s14  ;;  %v6193_v48 = vld [vmem:[%s8667_s2 + $0x78] sm:$0xff]  }
 0x1df   : > { %v2669_v16 = vsel %vm2535_vm14, %v2283_v15, -inf  ;;  %v2298_v12 = vrot.slane %v2284_v51, %v7611_v11  ;;  %v7778_v20 = vsel %vm625_vm3, %v3220_v38, %v3221_v13  ;;  %5165 = vmatprep.subr.bf16.mxu1 %v6193_v48 }
 0x1e0   : > { %v2651_v29 = vrot.slane %v2650_v55, 2  ;;  %v2657_v46 = vmax.f32 %v2655_v35, %v2656_v36  ;;  %v2664_v58 = vmax.f32 %v2662_v6, %v2663_v42  ;;  %v2670_v5 = vrot.slane %v2669_v16, 4 }
 0x1e1   : > { %v2299_v49 = vcombine.high %v2291_v7, %v2291_v7  ;;  %v2300_v24 = vcombine.high %v2298_v12, %v2298_v12  ;;  %v2676_v37 = vsel %vm2535_vm14, %v2291_v7, -inf  ;;  %v2690_v26 = vsel %vm2535_vm14, %v2298_v12, -inf }
 0x1e2   : > { %v2652_v40 = vmax.f32 %v2650_v55, %v2651_v29  ;;  %v2658_v39 = vrot.slane %v2657_v46, 2  ;;  %v2665_v17 = vrot.slane %v2664_v58, 2  ;;  %v2671_v61 = vmax.f32 %v2669_v16, %v2670_v5  ;;  %v6195_v29 = vld [vmem:[%s8667_s2 + $0x70] sm:$0xff]  }
 0x1e3   : > { %v2677_v33 = vrot.slane %v2676_v37, 4  ;;  %v2683_v14 = vsel %vm2535_vm14, %v2299_v49, -inf  ;;  %v2691_v60 = vrot.slane %v2690_v26, 4  ;;  %v2697_v28 = vsel %vm2535_vm14, %v2300_v24, -inf  ;;  %v6196_v49 = vld [vmem:[%s8667_s2 + $0x30] sm:$0xff]  }
 0x1e4   : > { %v2653_v50 = vrot.slane %v2652_v40, 1  ;;  %v2659_v30 = vmax.f32 %v2657_v46, %v2658_v39  ;;  %v2666_v32 = vmax.f32 %v2664_v58, %v2665_v17  ;;  %v2672_v8 = vrot.slane %v2671_v61, 2 }
 0x1e5   : > { %v2678_v27 = vmax.f32 %v2676_v37, %v2677_v33  ;;  %v2684_v43 = vrot.slane %v2683_v14, 4  ;;  %v2692_v18 = vmax.f32 %v2690_v26, %v2691_v60  ;;  %v2698_v54 = vrot.slane %v2697_v28, 4  ;;  %v6197_v60 = vld [vmem:[%s8667_s2 + $0x68] sm:$0xff]  }
 0x1e6   : > { %v2654_v57 = vmax.f32 %v2652_v40, %v2653_v50  ;;  %v2660_v21 = vrot.slane %v2659_v30, 1  ;;  %v2667_v22 = vrot.slane %v2666_v32, 1  ;;  %v2673_v34 = vmax.f32 %v2671_v61, %v2672_v8 }
 0x1e7   : > { %v2679_v52 = vrot.slane %v2678_v27, 2  ;;  %v2685_v53 = vmax.f32 %v2683_v14, %v2684_v43  ;;  %v2693_v44 = vrot.slane %v2692_v18, 2  ;;  %v2699_v47 = vmax.f32 %v2697_v28, %v2698_v54 }
 0x1e8   : > { %v2661_v31 = vmax.f32 %v2659_v30, %v2660_v21  ;;  %v2668_v45 = vmax.f32 %v2666_v32, %v2667_v22  ;;  %v2674_v62 = vrot.slane %v2673_v34, 1  ;;  %v6038_v4 = vpack.i.bf16 %v7778_v20, %v7724_v23  ;;  %v6194_v23 = vld [vmem:[%s8667_s2 + $0x38] sm:$0xff]   ;;  %v6198_v30 = vld [vmem:[%s8667_s2 + $0x28] sm:$0xff]   ;;  %v6199_v32 = vld [vmem:[%s8667_s2 + $0x60] sm:$0xff]  }
 0x1e9   : > { %v2680_v63 = vmax.f32 %v2678_v27, %v2679_v52  ;;  %v2686_v1 = vrot.slane %v2685_v53, 2  ;;  %v2694_v2 = vmax.f32 %v2692_v18, %v2693_v44  ;;  %v2700_v3 = vrot.slane %v2699_v47, 2  ;;  %5166 = vmatpush3.bf16.msra.mxu1 %v6194_v23 }
 0x1ea   : > { %v2675_v56 = vmax.f32 %v2673_v34, %v2674_v62  ;;  %v3095_v9 = vsel %vm3074_vm0, %v2661_v31, %v2654_v57  ;;  %6039 = vrot.lane.b32.xlu0 %v6038_v4, %s6362_s29  ;;  %5167 = vmatprep.subr.bf16.mxu1 %v6195_v29  ;;  %v3196_v18 = vrot.slane %v7763_v59, 1  ;;  %v3197_v54 = vrot.slane %v7765_v10, 1  ;;  %v6200_v57 = vld [vmem:[%s8667_s2 + $0x20] sm:$0xff]   ;;  %v6202_v31 = vld [vmem:[%s8667_s2 + $0x18] sm:$0xff]  }
 0x1eb   : > { %v3096_v38 = vsel %vm3076_vm1, %v2668_v45, %v3095_v9  ;;  %v2681_v13 = vrot.slane %v2680_v63, 1  ;;  %v2687_v15 = vmax.f32 %v2685_v53, %v2686_v1  ;;  %v2695_v35 = vrot.slane %v2694_v2, 1 }
 0x1ec   : > { %v2701_v6 = vmax.f32 %v2699_v47, %v2700_v3  ;;  %v3097_v51 = vsel %vm3078_vm2, %v2675_v56, %v3096_v38 }
 0x1ed   : > { %v2682_v55 = vmax.f32 %v2680_v63, %v2681_v13  ;;  %v2688_v36 = vrot.slane %v2687_v15, 1  ;;  %v5285_v42 = vpop.f32.mrf.mxu0  ;;  %v2696_v7 = vmax.f32 %v2694_v2, %v2695_v35  ;;  %5168 = vmatpush3.bf16.msra.mxu1 %v6196_v49 }
 0x1ee   : > { %v2702_v16 = vrot.slane %v2701_v6, 1  ;;  %v2049_v12 = vmul.f32 %v5285_v42, %v7600_v19  ;;  %5169 = vmatprep.subr.bf16.mxu1 %v6197_v60  ;;  %v6205_v60 = vld [vmem:[%s8667_s2 + $0x48] sm:$0xff]  }
 0x1ef   : > { %v2689_v46 = vmax.f32 %v2687_v15, %v2688_v36  ;;  %v3098_v58 = vsel %vm3080_vm6, %v2682_v55, %v3097_v51  ;;  %v1950_v5 = vpop.f32.mrf.mxu0 }
 0x1f0   : > { %v2703_v24 = vmax.f32 %v2701_v6, %v2702_v16  ;;  %v2085_v37 = vadd.f32 %v7606_v41, %v2049_v12  ;;  %v2047_v26 = vmul.f32 %v7600_v19, %v1950_v5 }
 0x1f1   : > { %v3099_v40 = vsel %vm3082_vm7, %v2689_v46, %v3098_v58  ;;  %v5286_v39 = vpop.f32.mrf.mxu0  ;;  %5170 = vmatpush3.bf16.msra.mxu1 %v6198_v30  ;;  %v6204_v46 = vld [vmem:[%s8667_s2 + $0x10] sm:$0xff]  }
 0x1f2   : > { %v3100_v17 = vsel %vm3084_vm8, %v2696_v7, %v3099_v40  ;;  %v2117_v61 = vmax.f32 %v2085_v37, 0.0  ;;  %v2083_v33 = vadd.f32 %v7606_v41, %v2047_v26  ;;  %v2050_v14 = vmul.f32 %v5286_v39, %v7600_v19  ;;  %5171 = vmatprep.subr.bf16.mxu1 %v6199_v32 }
 0x1f3   : > { %v3101_v28 = vsel %vm3086_vm9, %v2703_v24, %v3100_v17  ;;  %v1953_v50 = vpop.f32.mrf.mxu0 }
 0x1f4   : > { %3148 = vst.msk [vmem:[#allocation3 + $0x31] sm:$0xff] %vm1598_vm5, %v3101_v28  ;;  %v2115_v8 = vmax.f32 %v2083_v33, 0.0  ;;  %v2086_v27 = vadd.f32 %v7606_v41, %v2050_v14  ;;  %v2048_v43 = vmul.f32 %v7600_v19, %v1953_v50  ;;  %v2154_v21 = vsel %vm1598_vm5, %v2117_v61, -inf  ;;  %v6201_v19 = vld [vmem:[%s8667_s2 + $0x58] sm:$0xff]  }
 0x1f5   : > { %5172 = vmatpush3.bf16.msra.mxu1 %v6200_v57 }
 0x1f6   : > { %v2153_v22 = vsel %vm1598_vm5, %v2115_v8, -inf  ;;  %v2118_v34 = vmax.f32 %v2086_v27, 0.0  ;;  %v2084_v52 = vadd.f32 %v7606_v41, %v2048_v43  ;;  %v7841_v41 = vsel %vm544_vm4, %v3196_v18, %v3197_v54  ;;  %5173 = vmatprep.subr.bf16.mxu1 %v6201_v19  ;;  %v6206_v8 = vld [vmem:[%s8667_s2 + $0x8] sm:$0xff]  }
 0x1f7   : > { %v2155_v53 = vmax.f32 %v2153_v22, %v2154_v21 }
 0x1f8   : > { %v2116_v44 = vmax.f32 %v2084_v52, 0.0  ;;  %v2157_v45 = vsel %vm1598_vm5, %v2118_v34, -inf }
 0x1f9   : > { %v2301_v10 = vcombine.high %v2155_v53, %v2155_v53  ;;  %v2308_v47 = vrot.slane %v2155_v53, %v7611_v11  ;;  %5174 = vmatpush3.bf16.msra.mxu1 %v6202_v31 }
 0x1fa   : > { %v2156_v62 = vsel %vm1598_vm5, %v2116_v44, -inf }
 0x1fb   : > { %v2315_v4 = vrot.slane %v2301_v10, %v7611_v11  ;;  %v2316_v63 = vcombine.high %v2308_v47, %v2308_v47  ;;  %v2704_v1 = vsel %vm2535_vm14, %v2308_v47, -inf  ;;  %v2158_v2 = vmax.f32 %v2156_v62, %v2157_v45  ;;  %v7845_v3 = vld [vmem:[#allocation3 + $0x30] sm:$0xff]  ;;  %v7847_v56 = vld [vmem:[#allocation3 + $0x38] sm:$0x3] }
 0x1fc   : > { %v2705_v9 = vrot.slane %v2704_v1, 4  ;;  %v6043_v48 = vpack.i.bf16 %v7845_v3, %v7763_v59  ;;  %v3199_v38 = vrot.slane %v7845_v3, 1  ;;  %v3200_v13 = vrot.slane %v7847_v56, 1  ;;  %v6203_v59 = vld [vmem:[%s8667_s2 + $0x50] sm:$0xff]   ;;  %v6207_v10 = vld [vmem:[%s8667_s2 + $0x40] sm:$0xff]  }
 0x1fd   : > { %v2317_v15 = vcombine.high %v2315_v4, %v2315_v4  ;;  %v2711_v35 = vsel %vm2535_vm14, %v2316_v63, -inf  ;;  %v2718_v23 = vsel %vm2535_vm14, %v2315_v4, -inf  ;;  %v2318_v6 = vcombine.high %v2158_v2, %v2158_v2  ;;  %5175 = vmatprep.subr.bf16.mxu1 %v6203_v59  ;;  %v6208_v4 = vld [vmem:[%s8667_s2] sm:$0xff]  }
 0x1fe   : > { %v2706_v51 = vmax.f32 %v2704_v1, %v2705_v9  ;;  %v2712_v55 = vrot.slane %v2711_v35, 4  ;;  %v2719_v36 = vrot.slane %v2718_v23, 4  ;;  %v2325_v42 = vrot.slane %v2158_v2, %v7611_v11  ;;  %6044 = vrot.lane.b32.xlu0 %v6043_v48, %s8680_s23  ;;  %5176 = vmatpush3.bf16.msra.mxu1 %v6204_v46 }
 0x1ff   : > { %v2725_v7 = vsel %vm2535_vm14, %v2317_v15, -inf  ;;  %v2332_v16 = vrot.slane %v2318_v6, %v7611_v11  ;;  %v7863_v12 = vsel %vm544_vm4, %v3199_v38, %v3200_v13  ;;  %v3223_v29 = vrot.slane %v7845_v3, 2  ;;  %5177 = vmatprep.subr.bf16.mxu1 %v6205_v60 }
 0x200   : > { %v2707_v58 = vrot.slane %v2706_v51, 2  ;;  %v2713_v5 = vmax.f32 %v2711_v35, %v2712_v55  ;;  %v2720_v49 = vmax.f32 %v2718_v23, %v2719_v36  ;;  %v2726_v24 = vrot.slane %v2725_v7, 4 }
 0x201   : > { %v2333_v37 = vcombine.high %v2325_v42, %v2325_v42  ;;  %v2334_v26 = vcombine.high %v2332_v16, %v2332_v16  ;;  %v2732_v40 = vsel %vm2535_vm14, %v2325_v42, -inf  ;;  %v2746_v39 = vsel %vm2535_vm14, %v2332_v16, -inf }
 0x202   : > { %v2708_v17 = vmax.f32 %v2706_v51, %v2707_v58  ;;  %v2714_v61 = vrot.slane %v2713_v5, 2  ;;  %v2721_v33 = vrot.slane %v2720_v49, 2  ;;  %v2727_v14 = vmax.f32 %v2725_v7, %v2726_v24  ;;  %5178 = vmatpush3.bf16.msra.mxu1 %v6206_v8 }
 0x203   : > { %v2733_v28 = vrot.slane %v2732_v40, 4  ;;  %v2739_v50 = vsel %vm2535_vm14, %v2333_v37, -inf  ;;  %v2747_v30 = vrot.slane %v2746_v39, 4  ;;  %v2753_v32 = vsel %vm2535_vm14, %v2334_v26, -inf  ;;  %5179 = vmatprep.subr.bf16.mxu1 %v6207_v10  ;;  %v7903_v37 = vld [vmem:[%s8670_s5] ss:$0 sm:$0xff] }
 0x204   : > { %v2709_v27 = vrot.slane %v2708_v17, 1  ;;  %v2715_v43 = vmax.f32 %v2713_v5, %v2714_v61  ;;  %v2722_v18 = vmax.f32 %v2720_v49, %v2721_v33  ;;  %v2728_v54 = vrot.slane %v2727_v14, 2 }
 0x205   : > { %v2734_v57 = vmax.f32 %v2732_v40, %v2733_v28  ;;  %v2740_v21 = vrot.slane %v2739_v50, 4  ;;  %v2748_v22 = vmax.f32 %v2746_v39, %v2747_v30  ;;  %v2754_v34 = vrot.slane %v2753_v32, 4 }
 0x206   : > { %v2710_v52 = vmax.f32 %v2708_v17, %v2709_v27  ;;  %v2716_v19 = vrot.slane %v2715_v43, 1  ;;  %v2723_v53 = vrot.slane %v2722_v18, 1  ;;  %v2729_v44 = vmax.f32 %v2727_v14, %v2728_v54  ;;  %5180 = vmatpush3.bf16.msra.mxu1 %v6208_v4  ;;  %v7914_v14 = vld [vmem:[%s8670_s5 + $0x1] ss:$0 sm:$0xff] }
 0x207   : > { %v2735_v47 = vrot.slane %v2734_v57, 2  ;;  %v2741_v31 = vmax.f32 %v2739_v50, %v2740_v21  ;;  %v2749_v45 = vrot.slane %v2748_v22, 2  ;;  %v2755_v62 = vmax.f32 %v2753_v32, %v2754_v34 }
 0x208   : > { %v2717_v63 = vmax.f32 %v2715_v43, %v2716_v19  ;;  %v2724_v1 = vmax.f32 %v2722_v18, %v2723_v53  ;;  %v2730_v2 = vrot.slane %v2729_v44, 1  ;;  %v6053_v9 = vpack.i.bf16 %v7863_v12, %v7841_v41 }
 0x209   : > { %v2736_v48 = vmax.f32 %v2734_v57, %v2735_v47  ;;  %v2742_v38 = vrot.slane %v2741_v31, 2  ;;  %v2750_v13 = vmax.f32 %v2748_v22, %v2749_v45  ;;  %v2756_v15 = vrot.slane %v2755_v62, 2 }
 0x20a   : > { %v2731_v35 = vmax.f32 %v2729_v44, %v2730_v2  ;;  %v3102_v23 = vsel %vm3074_vm0, %v2717_v63, %v2710_v52  ;;  %6054 = vrot.lane.b32.xlu1 %v6053_v9, %s6362_s29  ;;  %v3224_v6 = vrot.slane %v7847_v56, 2  ;;  %6049 = vrot.lane.b32.xlu0 %v6053_v9, %s8677_s14 }
 0x20b   : > { %v3103_v51 = vsel %vm3076_vm1, %v2724_v1, %v3102_v23  ;;  %v2737_v55 = vrot.slane %v2736_v48, 1  ;;  %v2743_v36 = vmax.f32 %v2741_v31, %v2742_v38  ;;  %v2751_v42 = vrot.slane %v2750_v13, 1 }
 0x20c   : > { %v2757_v59 = vmax.f32 %v2755_v62, %v2756_v15  ;;  %v3104_v7 = vsel %vm3078_vm2, %v2731_v35, %v3103_v51  ;;  %v7896_v16 = vsel %vm625_vm3, %v3223_v29, %v3224_v6  ;;  %v5289_v46 = vpop.f32.mrf.mxu0 }
 0x20d   : > { %v2738_v58 = vmax.f32 %v2736_v48, %v2737_v55  ;;  %v2744_v5 = vrot.slane %v2743_v36, 1  ;;  %v6058_v56 = vpack.i.bf16 %v7896_v16, %v7778_v20  ;;  %v2752_v49 = vmax.f32 %v2750_v13, %v2751_v42 }
 0x20e   : > { %v2758_v24 = vrot.slane %v2757_v59, 1  ;;  %v2053_v26 = vmul.f32 %v7903_v37, %v5289_v46  ;;  %v1966_v40 = vpop.f32.mrf.mxu0  ;;  %v3465_v29 = vpack.c.bf16 %v7896_v16, %v7778_v20 }
 0x20f   : > { %v2745_v39 = vmax.f32 %v2743_v36, %v2744_v5  ;;  %v3105_v17 = vsel %vm3080_vm6, %v2738_v58, %v3104_v7  ;;  %6059 = vrot.lane.b32.xlu1 %v6058_v56, %s8680_s23  ;;  %v2051_v61 = vmul.f32 %v7903_v37, %v1966_v40 }
 0x210   : > { %v2759_v33 = vmax.f32 %v2757_v59, %v2758_v24  ;;  %v2089_v60 = vadd.f32 %v7914_v14, %v2053_v26  ;;  %v5290_v28 = vpop.f32.mrf.mxu0 }
 0x211   : > { %v3106_v50 = vsel %vm3082_vm7, %v2745_v39, %v3105_v17  ;;  %v2087_v30 = vadd.f32 %v7914_v14, %v2051_v61  ;;  %v2054_v32 = vmul.f32 %v7903_v37, %v5290_v28 }
 0x212   : > { %v3107_v8 = vsel %vm3084_vm8, %v2752_v49, %v3106_v50  ;;  %v2121_v27 = vmax.f32 %v2089_v60, 0.0  ;;  %v1969_v43 = vpop.f32.mrf.mxu0 }
 0x213   : > { %v3108_v18 = vsel %vm3086_vm9, %v2759_v33, %v3107_v8  ;;  %v2119_v54 = vmax.f32 %v2087_v30, 0.0  ;;  %v2090_v57 = vadd.f32 %v7914_v14, %v2054_v32  ;;  %v2052_v21 = vmul.f32 %v7903_v37, %v1969_v43 }
 0x214   : > { %3149 = vst.msk [vmem:[#allocation3 + $0x41] sm:$0xff] %vm1598_vm5, %v3108_v18  ;;  %v2160_v22 = vsel %vm1598_vm5, %v2121_v27, -inf }
 0x215   : > { %v2159_v34 = vsel %vm1598_vm5, %v2119_v54, -inf  ;;  %v2122_v52 = vmax.f32 %v2090_v57, 0.0  ;;  %v2088_v19 = vadd.f32 %v7914_v14, %v2052_v21 }
 0x216   : > { %v2161_v53 = vmax.f32 %v2159_v34, %v2160_v22 }
 0x217   : > { %v2120_v44 = vmax.f32 %v2088_v19, 0.0  ;;  %v2163_v31 = vsel %vm1598_vm5, %v2122_v52, -inf }
 0x218   : > { %v2335_v10 = vcombine.high %v2161_v53, %v2161_v53  ;;  %v2342_v47 = vrot.slane %v2161_v53, %v7611_v11 }
 0x219   : > { %v2162_v45 = vsel %vm1598_vm5, %v2120_v44, -inf }
 0x21a   : > { %v2349_v62 = vrot.slane %v2335_v10, %v7611_v11  ;;  %v2350_v4 = vcombine.high %v2342_v47, %v2342_v47  ;;  %v2760_v63 = vsel %vm2535_vm14, %v2342_v47, -inf  ;;  %v2164_v1 = vmax.f32 %v2162_v45, %v2163_v31 }
 0x21b   : > { %v2761_v2 = vrot.slane %v2760_v63, 4  ;;  %v7933_v9 = vld [vmem:[#allocation3 + $0x40] sm:$0xff]  ;;  %v7948_v57 = vld [vmem:[#allocation3 + $0x48] sm:$0x3] }
 0x21c   : > { %v2351_v48 = vcombine.high %v2349_v62, %v2349_v62  ;;  %v2767_v38 = vsel %vm2535_vm14, %v2350_v4, -inf  ;;  %v2774_v13 = vsel %vm2535_vm14, %v2349_v62, -inf  ;;  %v2352_v15 = vcombine.high %v2164_v1, %v2164_v1 }
 0x21d   : > { %v2762_v35 = vmax.f32 %v2760_v63, %v2761_v2  ;;  %v2768_v23 = vrot.slane %v2767_v38, 4  ;;  %v2775_v6 = vrot.slane %v2774_v13, 4  ;;  %v2359_v51 = vrot.slane %v2164_v1, %v7611_v11 }
 0x21e   : > { %v2781_v55 = vsel %vm2535_vm14, %v2351_v48, -inf  ;;  %v2366_v36 = vrot.slane %v2352_v15, %v7611_v11  ;;  %v6063_v42 = vpack.i.bf16 %v7933_v9, %v7845_v3  ;;  %v3226_v59 = vrot.slane %v7933_v9, 2 }
 0x21f   : > { %v2763_v7 = vrot.slane %v2762_v35, 2  ;;  %v2769_v46 = vmax.f32 %v2767_v38, %v2768_v23  ;;  %v2776_v58 = vmax.f32 %v2774_v13, %v2775_v6  ;;  %v2782_v5 = vrot.slane %v2781_v55, 4 }
 0x220   : > { %v2367_v56 = vcombine.high %v2359_v51, %v2359_v51  ;;  %v2368_v49 = vcombine.high %v2366_v36, %v2366_v36  ;;  %v2788_v24 = vsel %vm2535_vm14, %v2359_v51, -inf  ;;  %v2802_v26 = vsel %vm2535_vm14, %v2366_v36, -inf  ;;  %6064 = vrot.lane.b32.xlu1 %v6063_v42, %s8677_s14 }
 0x221   : > { %v2764_v40 = vmax.f32 %v2762_v35, %v2763_v7  ;;  %v2770_v39 = vrot.slane %v2769_v46, 2  ;;  %v2777_v17 = vrot.slane %v2776_v58, 2  ;;  %v2783_v61 = vmax.f32 %v2781_v55, %v2782_v5 }
 0x222   : > { %v2789_v33 = vrot.slane %v2788_v24, 4  ;;  %v2795_v3 = vsel %vm2535_vm14, %v2367_v56, -inf  ;;  %v2803_v60 = vrot.slane %v2802_v26, 4  ;;  %v2809_v28 = vsel %vm2535_vm14, %v2368_v49, -inf }
 0x223   : > { %v2765_v50 = vrot.slane %v2764_v40, 1  ;;  %v2771_v30 = vmax.f32 %v2769_v46, %v2770_v39  ;;  %v2778_v32 = vmax.f32 %v2776_v58, %v2777_v17  ;;  %v2784_v8 = vrot.slane %v2783_v61, 2 }
 0x224   : > { %v2790_v27 = vmax.f32 %v2788_v24, %v2789_v33  ;;  %v2796_v43 = vrot.slane %v2795_v3, 4  ;;  %v2804_v18 = vmax.f32 %v2802_v26, %v2803_v60  ;;  %v2810_v54 = vrot.slane %v2809_v28, 4 }
 0x225   : > { %v2766_v21 = vmax.f32 %v2764_v40, %v2765_v50  ;;  %v2772_v22 = vrot.slane %v2771_v30, 1  ;;  %v2779_v34 = vrot.slane %v2778_v32, 1  ;;  %v2785_v52 = vmax.f32 %v2783_v61, %v2784_v8 }
 0x226   : > { %v2791_v19 = vrot.slane %v2790_v27, 2  ;;  %v2797_v53 = vmax.f32 %v2795_v3, %v2796_v43  ;;  %v2805_v44 = vrot.slane %v2804_v18, 2  ;;  %v2811_v10 = vmax.f32 %v2809_v28, %v2810_v54 }
 0x227   : > { %v2773_v47 = vmax.f32 %v2771_v30, %v2772_v22  ;;  %v2780_v31 = vmax.f32 %v2778_v32, %v2779_v34  ;;  %v2786_v45 = vrot.slane %v2785_v52, 1  ;;  %v3227_v62 = vrot.slane %v7948_v57, 2 }
 0x228   : > { %v2792_v4 = vmax.f32 %v2790_v27, %v2791_v19  ;;  %v2798_v63 = vrot.slane %v2797_v53, 2  ;;  %v2806_v1 = vmax.f32 %v2804_v18, %v2805_v44  ;;  %v2812_v2 = vrot.slane %v2811_v10, 2 }
 0x229   : > { %v2787_v48 = vmax.f32 %v2785_v52, %v2786_v45  ;;  %v3109_v38 = vsel %vm3074_vm0, %v2773_v47, %v2766_v21  ;;  %v7953_v13 = vsel %vm625_vm3, %v3226_v59, %v3227_v62 }
 0x22a   : > { %v3110_v15 = vsel %vm3076_vm1, %v2780_v31, %v3109_v38  ;;  %v2793_v35 = vrot.slane %v2792_v4, 1  ;;  %v2799_v23 = vmax.f32 %v2797_v53, %v2798_v63  ;;  %v2807_v6 = vrot.slane %v2806_v1, 1 }
 0x22b   : > { %v2813_v51 = vmax.f32 %v2811_v10, %v2812_v2  ;;  %v3111_v55 = vsel %vm3078_vm2, %v2787_v48, %v3110_v15  ;;  %v6068_v36 = vpack.i.bf16 %v7953_v13, %v7896_v16 }
 0x22c   : > { %v2794_v42 = vmax.f32 %v2792_v4, %v2793_v35  ;;  %v2800_v7 = vrot.slane %v2799_v23, 1  ;;  %v5293_v46 = vpop.f32.mrf.mxu0  ;;  %v2808_v58 = vmax.f32 %v2806_v1, %v2807_v6 }
 0x22d   : > { %v2814_v5 = vrot.slane %v2813_v51, 1  ;;  %6069 = vrot.lane.b32.xlu0 %v6068_v36, %s6362_s29  ;;  %v2057_v59 = vmul.f32 %v7903_v37, %v5293_v46 }
 0x22e   : > { %v2801_v56 = vmax.f32 %v2799_v23, %v2800_v7  ;;  %v3112_v49 = vsel %vm3080_vm6, %v2794_v42, %v3111_v55  ;;  %v1982_v24 = vpop.f32.mrf.mxu0 }
 0x22f   : > { %v2815_v26 = vmax.f32 %v2813_v51, %v2814_v5  ;;  %v2093_v40 = vadd.f32 %v7914_v14, %v2057_v59  ;;  %v2055_v39 = vmul.f32 %v7903_v37, %v1982_v24 }
 0x230   : > { %v3113_v17 = vsel %vm3082_vm7, %v2801_v56, %v3112_v49  ;;  %v5294_v61 = vpop.f32.mrf.mxu0 }
 0x231   : > { %v3114_v33 = vsel %vm3084_vm8, %v2808_v58, %v3113_v17  ;;  %v2125_v3 = vmax.f32 %v2093_v40, 0.0  ;;  %v2091_v60 = vadd.f32 %v7914_v14, %v2055_v39  ;;  %v2058_v28 = vmul.f32 %v7903_v37, %v5294_v61 }
 0x232   : > { %v3115_v50 = vsel %vm3086_vm9, %v2815_v26, %v3114_v33  ;;  %v1985_v30 = vpop.f32.mrf.mxu0  ;;  %v3202_v33 = vrot.slane %v7933_v9, 1 }
 0x233   : > { %3150 = vst.msk [vmem:[#allocation3 + $0x51] sm:$0xff] %vm1598_vm5, %v3115_v50  ;;  %v2123_v32 = vmax.f32 %v2091_v60, 0.0  ;;  %v2094_v8 = vadd.f32 %v7914_v14, %v2058_v28  ;;  %v2056_v27 = vmul.f32 %v7903_v37, %v1985_v30  ;;  %v2166_v43 = vsel %vm1598_vm5, %v2125_v3, -inf }
 0x234   : > { %v3203_v3 = vrot.slane %v7948_v57, 1 }
 0x235   : > { %v2165_v18 = vsel %vm1598_vm5, %v2123_v32, -inf  ;;  %v2126_v54 = vmax.f32 %v2094_v8, 0.0  ;;  %v2092_v21 = vadd.f32 %v7914_v14, %v2056_v27 }
 0x236   : > { %v2167_v22 = vmax.f32 %v2165_v18, %v2166_v43 }
 0x237   : > { %v2124_v34 = vmax.f32 %v2092_v21, 0.0  ;;  %v2169_v53 = vsel %vm1598_vm5, %v2126_v54, -inf }
 0x238   : > { %v2369_v52 = vcombine.high %v2167_v22, %v2167_v22  ;;  %v2376_v19 = vrot.slane %v2167_v22, %v7611_v11 }
 0x239   : > { %v2168_v44 = vsel %vm1598_vm5, %v2124_v34, -inf }
 0x23a   : > { %v2383_v10 = vrot.slane %v2369_v52, %v7611_v11  ;;  %v2384_v47 = vcombine.high %v2376_v19, %v2376_v19  ;;  %v2816_v31 = vsel %vm2535_vm14, %v2376_v19, -inf  ;;  %v2170_v45 = vmax.f32 %v2168_v44, %v2169_v53  ;;  %v7980_v62 = vld [vmem:[#allocation3 + $0x50] sm:$0xff]  ;;  %v7988_v51 = vld [vmem:[#allocation3 + $0x58] sm:$0x3] }
 0x23b   : > { %v2817_v4 = vrot.slane %v2816_v31, 4  ;;  %v6073_v63 = vpack.i.bf16 %v7980_v62, %v7933_v9  ;;  %v3205_v56 = vrot.slane %v7980_v62, 1  ;;  %v3206_v49 = vrot.slane %v7988_v51, 1 }
 0x23c   : > { %v2385_v1 = vcombine.high %v2383_v10, %v2383_v10  ;;  %v2823_v2 = vsel %vm2535_vm14, %v2384_v47, -inf  ;;  %v2830_v48 = vsel %vm2535_vm14, %v2383_v10, -inf  ;;  %v2386_v38 = vcombine.high %v2170_v45, %v2170_v45 }
 0x23d   : > { %v2818_v15 = vmax.f32 %v2816_v31, %v2817_v4  ;;  %v2824_v35 = vrot.slane %v2823_v2, 4  ;;  %v2831_v23 = vrot.slane %v2830_v48, 4  ;;  %v2393_v6 = vrot.slane %v2170_v45, %v7611_v11  ;;  %6074 = vrot.lane.b32.xlu0 %v6073_v63, %s8680_s23 }
 0x23e   : > { %v2837_v55 = vsel %vm2535_vm14, %v2385_v1, -inf  ;;  %v2400_v36 = vrot.slane %v2386_v38, %v7611_v11  ;;  %v8001_v22 = vsel %vm544_vm4, %v3205_v56, %v3206_v49 }
 0x23f   : > { %v2819_v42 = vrot.slane %v2818_v15, 2  ;;  %v2825_v7 = vmax.f32 %v2823_v2, %v2824_v35  ;;  %v2832_v46 = vmax.f32 %v2830_v48, %v2831_v23  ;;  %v2838_v58 = vrot.slane %v2837_v55, 4 }
 0x240   : > { %v2401_v5 = vcombine.high %v2393_v6, %v2393_v6  ;;  %v2402_v59 = vcombine.high %v2400_v36, %v2400_v36  ;;  %v2844_v17 = vsel %vm2535_vm14, %v2393_v6, -inf  ;;  %v2858_v27 = vsel %vm2535_vm14, %v2400_v36, -inf }
 0x241   : > { %v2820_v24 = vmax.f32 %v2818_v15, %v2819_v42  ;;  %v2826_v26 = vrot.slane %v2825_v7, 2  ;;  %v2833_v40 = vrot.slane %v2832_v46, 2  ;;  %v2839_v39 = vmax.f32 %v2837_v55, %v2838_v58 }
 0x242   : > { %v2851_v61 = vsel %vm2535_vm14, %v2401_v5, -inf  ;;  %v2845_v32 = vrot.slane %v2844_v17, 4  ;;  %v2865_v43 = vsel %vm2535_vm14, %v2402_v59, -inf  ;;  %v2859_v52 = vrot.slane %v2858_v27, 4 }
 0x243   : > { %v2821_v60 = vrot.slane %v2820_v24, 1  ;;  %v2827_v28 = vmax.f32 %v2825_v7, %v2826_v26  ;;  %v2834_v50 = vmax.f32 %v2832_v46, %v2833_v40  ;;  %v2840_v30 = vrot.slane %v2839_v39, 2 }
 0x244   : > { %v2852_v8 = vrot.slane %v2851_v61, 4  ;;  %v2846_v34 = vmax.f32 %v2844_v17, %v2845_v32  ;;  %v2866_v57 = vrot.slane %v2865_v43, 4  ;;  %v2860_v45 = vmax.f32 %v2858_v27, %v2859_v52 }
 0x245   : > { %v2828_v18 = vrot.slane %v2827_v28, 1  ;;  %v2835_v54 = vrot.slane %v2834_v50, 1  ;;  %v2841_v21 = vmax.f32 %v2839_v39, %v2840_v30  ;;  %v2822_v19 = vmax.f32 %v2820_v24, %v2821_v60 }
 0x246   : > { %v2853_v9 = vmax.f32 %v2851_v61, %v2852_v8  ;;  %v2847_v47 = vrot.slane %v2846_v34, 2  ;;  %v2867_v4 = vmax.f32 %v2865_v43, %v2866_v57  ;;  %v8005_v2 = vsel %vm544_vm4, %v3202_v33, %v3203_v3 }
 0x247   : > { %v2829_v53 = vmax.f32 %v2827_v28, %v2828_v18  ;;  %v2836_v44 = vmax.f32 %v2834_v50, %v2835_v54  ;;  %v2842_v10 = vrot.slane %v2841_v21, 1  ;;  %v2861_v35 = vrot.slane %v2860_v45, 2 }
 0x248   : > { %v2854_v31 = vrot.slane %v2853_v9, 2  ;;  %v2848_v38 = vmax.f32 %v2846_v34, %v2847_v47  ;;  %v2868_v23 = vrot.slane %v2867_v4, 2  ;;  %v6083_v6 = vpack.i.bf16 %v8001_v22, %v8005_v2 }
 0x249   : > { %v2843_v63 = vmax.f32 %v2841_v21, %v2842_v10  ;;  %v3116_v1 = vsel %vm3074_vm0, %v2829_v53, %v2822_v19  ;;  %v3229_v55 = vrot.slane %v7980_v62, 2  ;;  %v2862_v7 = vmax.f32 %v2860_v45, %v2861_v35 }
 0x24a   : > { %v3117_v48 = vsel %vm3076_vm1, %v2836_v44, %v3116_v1  ;;  %v2855_v15 = vmax.f32 %v2853_v9, %v2854_v31  ;;  %v2849_v36 = vrot.slane %v2848_v38, 1  ;;  %v2869_v58 = vmax.f32 %v2867_v4, %v2868_v23  ;;  %6084 = vrot.lane.b32.xlu1 %v6083_v6, %s6362_s29  ;;  %6079 = vrot.lane.b32.xlu0 %v6083_v6, %s8677_s14 }
 0x24b   : > { %v3118_v5 = vsel %vm3078_vm2, %v2843_v63, %v3117_v48  ;;  %v3230_v59 = vrot.slane %v7988_v51, 2  ;;  %v2863_v26 = vrot.slane %v2862_v7, 1 }
 0x24c   : > { %v2856_v42 = vrot.slane %v2855_v15, 1  ;;  %v5297_v46 = vpop.f32.mrf.mxu0  ;;  %v2850_v49 = vmax.f32 %v2848_v38, %v2849_v36  ;;  %v2870_v39 = vrot.slane %v2869_v58, 1 }
 0x24d   : > { %v2061_v56 = vmul.f32 %v7903_v37, %v5297_v46  ;;  %v8017_v17 = vsel %vm625_vm3, %v3229_v55, %v3230_v59  ;;  %v2864_v3 = vmax.f32 %v2862_v7, %v2863_v26 }
 0x24e   : > { %v2857_v24 = vmax.f32 %v2855_v15, %v2856_v42  ;;  %v1998_v40 = vpop.f32.mrf.mxu0  ;;  %v3119_v60 = vsel %vm3080_vm6, %v2850_v49, %v3118_v5  ;;  %v6088_v51 = vpack.i.bf16 %v8017_v17, %v7953_v13  ;;  %v3468_v28 = vpack.c.bf16 %v8017_v17, %v7953_v13  ;;  %v6221_v13 = vld [vmem:[%s8668_s3 + $0x78] sm:$0xff]  }
 0x24f   : > { %v2097_v61 = vadd.f32 %v7914_v14, %v2061_v56  ;;  %v2059_v33 = vmul.f32 %v7903_v37, %v1998_v40  ;;  %v2871_v30 = vmax.f32 %v2869_v58, %v2870_v39  ;;  %5211 = vmatprep.subr.bf16.mxu0 %v6221_v13 }
 0x250   : > { %v5298_v50 = vpop.f32.mrf.mxu0  ;;  %v3120_v32 = vsel %vm3082_vm7, %v2857_v24, %v3119_v60  ;;  %6089 = vrot.lane.b32.xlu1 %v6088_v51, %s8680_s23 }
 0x251   : > { %v3121_v8 = vsel %vm3084_vm8, %v2864_v3, %v3120_v32  ;;  %v2129_v27 = vmax.f32 %v2097_v61, 0.0  ;;  %v2095_v43 = vadd.f32 %v7914_v14, %v2059_v33  ;;  %v2062_v18 = vmul.f32 %v7903_v37, %v5298_v50 }
 0x252   : > { %v2001_v54 = vpop.f32.mrf.mxu0  ;;  %v3122_v21 = vsel %vm3086_vm9, %v2871_v30, %v3121_v8 }
 0x253   : > { %v2060_v34 = vmul.f32 %v7903_v37, %v2001_v54  ;;  %3151 = vst.msk [vmem:[#allocation3 + $0x61] sm:$0xff] %vm1598_vm5, %v3122_v21  ;;  %v2127_v9 = vmax.f32 %v2095_v43, 0.0  ;;  %v2098_v52 = vadd.f32 %v7914_v14, %v2062_v18  ;;  %v2172_v19 = vsel %vm1598_vm5, %v2129_v27, -inf }
 0x255   : > { %v2096_v57 = vadd.f32 %v7914_v14, %v2060_v34  ;;  %v2171_v53 = vsel %vm1598_vm5, %v2127_v9, -inf  ;;  %v2130_v44 = vmax.f32 %v2098_v52, 0.0 }
 0x256   : > { %v2173_v10 = vmax.f32 %v2171_v53, %v2172_v19 }
 0x257   : > { %v2128_v47 = vmax.f32 %v2096_v57, 0.0  ;;  %v2175_v4 = vsel %vm1598_vm5, %v2130_v44, -inf }
 0x258   : > { %v2403_v31 = vcombine.high %v2173_v10, %v2173_v10  ;;  %v2410_v45 = vrot.slane %v2173_v10, %v7611_v11 }
 0x259   : > { %v2174_v63 = vsel %vm1598_vm5, %v2128_v47, -inf }
 0x25a   : > { %v2176_v1 = vmax.f32 %v2174_v63, %v2175_v4  ;;  %v2417_v48 = vrot.slane %v2403_v31, %v7611_v11  ;;  %v2418_v38 = vcombine.high %v2410_v45, %v2410_v45  ;;  %v2872_v15 = vsel %vm2535_vm14, %v2410_v45, -inf  ;;  %v8043_v35 = vld [vmem:[#allocation3 + $0x60] sm:$0xff] }
 0x25b   : > { %v2873_v23 = vrot.slane %v2872_v15, 4  ;;  %v6093_v36 = vpack.i.bf16 %v8043_v35, %v7980_v62 }
 0x25c   : > { %v2420_v6 = vcombine.high %v2176_v1, %v2176_v1  ;;  %v2427_v55 = vrot.slane %v2176_v1, %v7611_v11  ;;  %v2419_v42 = vcombine.high %v2417_v48, %v2417_v48  ;;  %v2879_v7 = vsel %vm2535_vm14, %v2418_v38, -inf }
 0x25d   : > { %v2886_v46 = vsel %vm2535_vm14, %v2417_v48, -inf  ;;  %v2874_v58 = vmax.f32 %v2872_v15, %v2873_v23  ;;  %v2880_v5 = vrot.slane %v2879_v7, 4  ;;  %6094 = vrot.lane.b32.xlu1 %v6093_v36, %s8677_s14  ;;  %v8057_v15 = vld [vmem:[#allocation3 + $0x68] sm:$0x3]  ;;  %v3232_v36 = vrot.slane %v8043_v35, 2 }
 0x25e   : > { %v2887_v59 = vrot.slane %v2886_v46, 4  ;;  %v2893_v56 = vsel %vm2535_vm14, %v2419_v42, -inf  ;;  %v2434_v49 = vrot.slane %v2420_v6, %v7611_v11  ;;  %v2435_v24 = vcombine.high %v2427_v55, %v2427_v55  ;;  %v6025_v42 = vpop.permute.xlu1 %6024 }
 0x25f   : > { %v2900_v26 = vsel %vm2535_vm14, %v2427_v55, -inf  ;;  %v2875_v40 = vrot.slane %v2874_v58, 2  ;;  %v2881_v39 = vmax.f32 %v2879_v7, %v2880_v5  ;;  %v2894_v33 = vrot.slane %v2893_v56, 4 }
 0x260   : > { %v2888_v61 = vmax.f32 %v2886_v46, %v2887_v59  ;;  %v2436_v3 = vcombine.high %v2434_v49, %v2434_v49  ;;  %v2901_v60 = vrot.slane %v2900_v26, 4  ;;  %v2907_v51 = vsel %vm2535_vm14, %v2435_v24, -inf }
 0x261   : > { %v2914_v50 = vsel %vm2535_vm14, %v2434_v49, -inf  ;;  %v2876_v30 = vmax.f32 %v2874_v58, %v2875_v40  ;;  %v2882_v32 = vrot.slane %v2881_v39, 2  ;;  %v2895_v27 = vmax.f32 %v2893_v56, %v2894_v33 }
 0x262   : > { %v2889_v8 = vrot.slane %v2888_v61, 2  ;;  %v2902_v43 = vmax.f32 %v2900_v26, %v2901_v60  ;;  %v2908_v18 = vrot.slane %v2907_v51, 4  ;;  %v2915_v54 = vrot.slane %v2914_v50, 4 }
 0x263   : > { %v2921_v21 = vsel %vm2535_vm14, %v2436_v3, -inf  ;;  %v2877_v34 = vrot.slane %v2876_v30, 1  ;;  %v2883_v9 = vmax.f32 %v2881_v39, %v2882_v32  ;;  %v2896_v57 = vrot.slane %v2895_v27, 2 }
 0x264   : > { %v2890_v52 = vmax.f32 %v2888_v61, %v2889_v8  ;;  %v2903_v19 = vrot.slane %v2902_v43, 2  ;;  %v2909_v53 = vmax.f32 %v2907_v51, %v2908_v18  ;;  %v2916_v44 = vmax.f32 %v2914_v50, %v2915_v54  ;;  %v6030_v8 = vpop.permute.xlu1 %6029  ;;  %v6040_v54 = vpop.permute.xlu0 %6039 }
 0x265   : > { %v2922_v10 = vrot.slane %v2921_v21, 4  ;;  %v2878_v47 = vmax.f32 %v2876_v30, %v2877_v34  ;;  %v2884_v31 = vrot.slane %v2883_v9, 1  ;;  %v2897_v4 = vmax.f32 %v2895_v27, %v2896_v57 }
 0x266   : > { %v2891_v45 = vrot.slane %v2890_v52, 1  ;;  %v2904_v63 = vmax.f32 %v2902_v43, %v2903_v19  ;;  %v2910_v1 = vrot.slane %v2909_v53, 2  ;;  %v2917_v48 = vrot.slane %v2916_v44, 2 }
 0x267   : > { %v2923_v38 = vmax.f32 %v2921_v21, %v2922_v10  ;;  %v2885_v23 = vmax.f32 %v2883_v9, %v2884_v31  ;;  %v2898_v55 = vrot.slane %v2897_v4, 1  ;;  %v3233_v49 = vrot.slane %v8057_v15, 2 }
 0x268   : > { %v2892_v6 = vmax.f32 %v2890_v52, %v2891_v45  ;;  %v2905_v7 = vrot.slane %v2904_v63, 1  ;;  %v2911_v46 = vmax.f32 %v2909_v53, %v2910_v1  ;;  %v2918_v58 = vmax.f32 %v2916_v44, %v2917_v48  ;;  %v6035_v52 = vpop.permute.xlu1 %6034  ;;  %v6292_v45 = vld [vmem:[#allocation3] sm:$0xff] }
 0x269   : > { %v2924_v5 = vrot.slane %v2923_v38, 2  ;;  %v2899_v59 = vmax.f32 %v2897_v4, %v2898_v55  ;;  %v3123_v56 = vsel %vm3074_vm0, %v2885_v23, %v2878_v47  ;;  %v8065_v3 = vsel %vm625_vm3, %v3232_v36, %v3233_v49  ;;  %v6291_v47 = vld [vmem:[#allocation3 + $0x10] sm:$0xff] }
 0x26a   : > { %v3124_v24 = vsel %vm3076_vm1, %v2892_v6, %v3123_v56  ;;  %v2906_v26 = vmax.f32 %v2904_v63, %v2905_v7  ;;  %v2912_v40 = vrot.slane %v2911_v46, 1  ;;  %v2919_v39 = vrot.slane %v2918_v58, 1 }
 0x26b   : > { %v2925_v61 = vmax.f32 %v2923_v38, %v2924_v5  ;;  %v3125_v33 = vsel %vm3078_vm2, %v2899_v59, %v3124_v24  ;;  %v6098_v30 = vpack.i.bf16 %v8065_v3, %v8017_v17  ;;  %v6027_v34 = vunpack.i.h.bf16 %v6025_v42  ;;  %v6222_v17 = vld [vmem:[%s8668_s3 + $0x38] sm:$0xff]  }
 0x26c   : > { %v2913_v60 = vmax.f32 %v2911_v46, %v2912_v40  ;;  %v2920_v51 = vmax.f32 %v2918_v58, %v2919_v39  ;;  %v3126_v50 = vsel %vm3080_vm6, %v2906_v26, %v3125_v33  ;;  %v6026_v9 = vunpack.i.l.bf16 %v6025_v42  ;;  %5212 = vmatpush3.bf16.msra.mxu0 %v6222_v17 }
 0x26d   : > { %v2926_v32 = vrot.slane %v2925_v61, 1  ;;  %6099 = vrot.lane.b32.xlu0 %v6098_v30, %s6362_s29  ;;  %v6032_v57 = vunpack.i.h.bf16 %v6030_v8  ;;  %v6031_v19 = vunpack.i.l.bf16 %v6030_v8  ;;  %v6037_v53 = vunpack.i.h.bf16 %v6035_v52  ;;  %v6209_v30 = vld [vmem:[%s8667_s2 + $0x88] sm:$0xff]  }
 0x26e   : > { %v3127_v27 = vsel %vm3082_vm7, %v2913_v60, %v3126_v50  ;;  %v6036_v44 = vunpack.i.l.bf16 %v6035_v52  ;;  %v3415_v31 = vsel %vm1598_vm5, %v6291_v47, %v6027_v34  ;;  %v3414_v4 = vsel %vm1598_vm5, %v6292_v45, %v6026_v9  ;;  %5303 = vmatprep.subr.bf16.mxu1 %v6209_v30 }
 0x26f   : > { %v2927_v43 = vmax.f32 %v2925_v61, %v2926_v32  ;;  %v3128_v18 = vsel %vm3084_vm8, %v2920_v51, %v3127_v27  ;;  %v6041_v63 = vunpack.i.l.bf16 %v6040_v54  ;;  %v3422_v48 = vsel %vm1730_vm12, %v3414_v4, %v6031_v19 }
 0x270   : > { %v6045_v10 = vpop.permute.xlu0 %6044  ;;  %v3423_v38 = vsel %vm1730_vm12, %v3415_v31, %v6032_v57  ;;  %v6042_v23 = vunpack.i.h.bf16 %v6040_v54  ;;  %v3208_v7 = vrot.slane %v8043_v35, 1  ;;  %v3209_v46 = vrot.slane %v8057_v15, 1 }
 0x271   : > { %v3129_v21 = vsel %vm3086_vm9, %v2927_v43, %v3128_v18  ;;  %v6047_v36 = vunpack.i.h.bf16 %v6045_v10  ;;  %v6046_v42 = vunpack.i.l.bf16 %v6045_v10  ;;  %v3431_v59 = vsel %vm3430_vm10, %v3422_v48, %v6036_v44 }
 0x272   : > { %3152 = vst.msk [vmem:[#allocation3 + $0x71] sm:$0xff] %vm1598_vm5, %v3129_v21  ;;  %v3432_v56 = vsel %vm3430_vm10, %v3423_v38, %v6037_v53  ;;  %v3439_v40 = vsel %vm1598_vm5, %v7721_v25, %v6041_v63  ;;  %v3440_v50 = vsel %vm1598_vm5, %v7841_v41, %v6042_v23  ;;  %v8104_v27 = vsel %vm544_vm4, %v3208_v7, %v3209_v46 }
 0x273   : > { %v3447_v25 = vsel %vm1730_vm12, %v3439_v40, %v6046_v42  ;;  %v3448_v8 = vsel %vm1730_vm12, %v3440_v50, %v6047_v36 }
 0x277   : > { %v5301_v1 = vpop.f32.mrf.mxu0 }
 0x278   : > { %v2065_v6 = vmul.f32 %v7903_v37, %v5301_v1 }
 0x279   : > { %v2014_v55 = vpop.f32.mrf.mxu0  ;;  %v8086_v49 = vld [vmem:[#allocation3 + $0x70] sm:$0xff]  ;;  %v3169_v24 = vld [vmem:[#allocation3 + $0x78] sm:$0x3] }
 0x27a   : > { %v2101_v58 = vadd.f32 %v7914_v14, %v2065_v6  ;;  %v2063_v5 = vmul.f32 %v7903_v37, %v2014_v55  ;;  %v6103_v39 = vpack.i.bf16 %v8086_v49, %v8043_v35  ;;  %v3211_v15 = vrot.slane %v8086_v49, 1 }
 0x27b   : > { %v5302_v26 = vpop.f32.mrf.mxu0  ;;  %v3212_v61 = vrot.slane %v3169_v24, 1  ;;  %v3235_v34 = vrot.slane %v8086_v49, 2  ;;  %v3236_v19 = vrot.slane %v3169_v24, 2  ;;  %v3463_v6 = vpack.c.bf16 %v3432_v56, %v3431_v59 }
 0x27c   : > { %v2133_v33 = vmax.f32 %v2101_v58, 0.0  ;;  %v2099_v60 = vadd.f32 %v7914_v14, %v2063_v5  ;;  %v2066_v51 = vmul.f32 %v7903_v37, %v5302_v26  ;;  %6104 = vrot.lane.b32.xlu0 %v6103_v39, %s8680_s23  ;;  %v6050_v21 = vpop.permute.xlu0 %6049 }
 0x27d   : > { %v2017_v32 = vpop.f32.mrf.mxu0  ;;  %v8107_v43 = vsel %vm544_vm4, %v3211_v15, %v3212_v61  ;;  %v6052_v52 = vunpack.i.h.bf16 %v6050_v21  ;;  %v6051_v57 = vunpack.i.l.bf16 %v6050_v21  ;;  %v8123_v38 = vsel %vm625_vm3, %v3235_v34, %v3236_v19 }
 0x27e   : > { %v2131_v18 = vmax.f32 %v2099_v60, 0.0  ;;  %v2102_v41 = vadd.f32 %v7914_v14, %v2066_v51  ;;  %v2064_v54 = vmul.f32 %v7903_v37, %v2017_v32  ;;  %v2178_v9 = vsel %vm1598_vm5, %v2133_v33, -inf }
 0x27f   : > { %v6113_v47 = vpack.i.bf16 %v8107_v43, %v8104_v27  ;;  %v3455_v37 = vsel %vm3430_vm10, %v3447_v25, %v6051_v57  ;;  %v3456_v45 = vsel %vm3430_vm10, %v3448_v8, %v6052_v52  ;;  %v6118_v55 = vpack.i.bf16 %v8123_v38, %v8065_v3 }
 0x280   : > { %v2177_v53 = vsel %vm1598_vm5, %v2131_v18, -inf  ;;  %v2134_v44 = vmax.f32 %v2102_v41, 0.0  ;;  %v2100_v10 = vadd.f32 %v7914_v14, %v2064_v54  ;;  %v3464_v48 = vpack.c.bf16 %v3456_v45, %v3455_v37 }
 0x281   : > { %v2179_v31 = vmax.f32 %v2177_v53, %v2178_v9  ;;  %6114 = vrot.lane.b32.xlu1 %v6113_v47, %s6362_s29  ;;  %6109 = vrot.lane.b32.xlu0 %v6113_v47, %s8677_s14  ;;  %v3471_v5 = vpack.c.bf16 %v8123_v38, %v8065_v3 }
 0x282   : > { %v2132_v4 = vmax.f32 %v2100_v10, 0.0  ;;  %v2181_v14 = vsel %vm1598_vm5, %v2134_v44, -inf  ;;  %3663 = vmatprep.mubr.bf16.mxu1 %v3464_v48 }
 0x283   : > { %v2437_v63 = vcombine.high %v2179_v31, %v2179_v31  ;;  %v2444_v1 = vrot.slane %v2179_v31, %v7611_v11  ;;  %3664 = vmatmul.mubr.bf16.vlgmr.msra.gmra.mxu1 %v3463_v6 }
 0x284   : > { %v2180_v23 = vsel %vm1598_vm5, %v2132_v4, -inf  ;;  %5304 = vmatpush3.bf16.msra.mxu1 %v6209_v30 }
 0x285   : > { %v2451_v36 = vrot.slane %v2437_v63, %v7611_v11  ;;  %v2452_v42 = vcombine.high %v2444_v1, %v2444_v1  ;;  %v2928_v7 = vsel %vm2535_vm14, %v2444_v1, -inf  ;;  %v2182_v46 = vmax.f32 %v2180_v23, %v2181_v14  ;;  %6119 = vrot.lane.b32.xlu1 %v6118_v55, %s8680_s23 }
 0x286   : > { %v2929_v58 = vrot.slane %v2928_v7, 4 }
 0x287   : > { %v2453_v24 = vcombine.high %v2451_v36, %v2451_v36  ;;  %v2935_v59 = vsel %vm2535_vm14, %v2452_v42, -inf  ;;  %v2942_v56 = vsel %vm2535_vm14, %v2451_v36, -inf  ;;  %v2454_v26 = vcombine.high %v2182_v46, %v2182_v46 }
 0x288   : > { %v2930_v40 = vmax.f32 %v2928_v7, %v2929_v58  ;;  %v2936_v39 = vrot.slane %v2935_v59, 4  ;;  %v2943_v15 = vrot.slane %v2942_v56, 4  ;;  %v2461_v61 = vrot.slane %v2182_v46, %v7611_v11 }
 0x289   : > { %v2949_v33 = vsel %vm2535_vm14, %v2453_v24, -inf  ;;  %v2468_v60 = vrot.slane %v2454_v26, %v7611_v11 }
 0x28a   : > { %v2931_v51 = vrot.slane %v2930_v40, 2  ;;  %v2937_v50 = vmax.f32 %v2935_v59, %v2936_v39  ;;  %v2944_v32 = vmax.f32 %v2942_v56, %v2943_v15  ;;  %v2950_v25 = vrot.slane %v2949_v33, 4 }
 0x28b   : > { %v2469_v8 = vcombine.high %v2461_v61, %v2461_v61  ;;  %v2470_v18 = vcombine.high %v2468_v60, %v2468_v60  ;;  %v2956_v41 = vsel %vm2535_vm14, %v2461_v61, -inf  ;;  %v2970_v54 = vsel %vm2535_vm14, %v2468_v60, -inf }
 0x28c   : > { %v2932_v30 = vmax.f32 %v2930_v40, %v2931_v51  ;;  %v2938_v21 = vrot.slane %v2937_v50, 2  ;;  %v2945_v34 = vrot.slane %v2944_v32, 2  ;;  %v2951_v9 = vmax.f32 %v2949_v33, %v2950_v25 }
 0x28d   : > { %v2957_v52 = vrot.slane %v2956_v41, 4  ;;  %v2963_v57 = vsel %vm2535_vm14, %v2469_v8, -inf  ;;  %v2971_v19 = vrot.slane %v2970_v54, 4  ;;  %v2977_v53 = vsel %vm2535_vm14, %v2470_v18, -inf }
 0x28e   : > { %v2933_v44 = vrot.slane %v2932_v30, 1  ;;  %v2939_v10 = vmax.f32 %v2937_v50, %v2938_v21  ;;  %v2946_v47 = vmax.f32 %v2944_v32, %v2945_v34  ;;  %v2952_v31 = vrot.slane %v2951_v9, 2 }
 0x28f   : > { %v2958_v37 = vmax.f32 %v2956_v41, %v2957_v52  ;;  %v2964_v45 = vrot.slane %v2963_v57, 4  ;;  %v2972_v4 = vmax.f32 %v2970_v54, %v2971_v19  ;;  %v2978_v63 = vrot.slane %v2977_v53, 4  ;;  %v3172_v52 = vld [vmem:[#allocation3 + $0x90] sm:$0xff] }
 0x290   : > { %v2940_v1 = vrot.slane %v2939_v10, 1  ;;  %v2947_v48 = vrot.slane %v2946_v47, 1  ;;  %v2953_v14 = vmax.f32 %v2951_v9, %v2952_v31  ;;  %v2934_v42 = vmax.f32 %v2932_v30, %v2933_v44 }
 0x291   : > { %v2959_v23 = vrot.slane %v2958_v37, 2  ;;  %v2965_v6 = vmax.f32 %v2963_v57, %v2964_v45  ;;  %v2973_v55 = vrot.slane %v2972_v4, 2  ;;  %v2979_v36 = vmax.f32 %v2977_v53, %v2978_v63  ;;  %v3173_v57 = vld [vmem:[#allocation3 + $0x98] sm:$0x3]  ;;  %v6210_v53 = vld [vmem:[%s8667_s2 + $0x80] sm:$0xff]  }
 0x292   : > { %v2941_v7 = vmax.f32 %v2939_v10, %v2940_v1  ;;  %v2948_v46 = vmax.f32 %v2946_v47, %v2947_v48  ;;  %v2954_v58 = vrot.slane %v2953_v14, 1  ;;  %v3259_v19 = vrot.slane %v3172_v52, 2  ;;  %5305 = vmatprep.subr.bf16.mxu1 %v6210_v53 }
 0x293   : > { %v2960_v24 = vmax.f32 %v2958_v37, %v2959_v23  ;;  %v2966_v59 = vrot.slane %v2965_v6, 2  ;;  %v2974_v56 = vmax.f32 %v2972_v4, %v2973_v55  ;;  %v2980_v26 = vrot.slane %v2979_v36, 2  ;;  %5306 = vmatpush3.bf16.msra.mxu1 %v6210_v53 }
 0x294   : > { %v2955_v40 = vmax.f32 %v2953_v14, %v2954_v58  ;;  %v3130_v39 = vsel %vm3074_vm0, %v2941_v7, %v2934_v42  ;;  %v3260_v44 = vrot.slane %v3173_v57, 2  ;;  %v3256_v1 = vrot.slane %v3172_v52, 1  ;;  %v6055_v58 = vpop.permute.xlu1 %6054 }
 0x295   : > { %v3131_v15 = vsel %vm3076_vm1, %v2948_v46, %v3130_v39  ;;  %v2961_v61 = vrot.slane %v2960_v24, 1  ;;  %v2967_v33 = vmax.f32 %v2965_v6, %v2966_v59  ;;  %v2975_v60 = vrot.slane %v2974_v56, 1 }
 0x296   : > { %v2981_v51 = vmax.f32 %v2979_v36, %v2980_v26  ;;  %v3132_v50 = vsel %vm3078_vm2, %v2955_v40, %v3131_v15  ;;  %v8155_v31 = vsel %vm625_vm3, %v3259_v19, %v3260_v44  ;;  %v3257_v23 = vrot.slane %v3173_v57, 1 }
 0x297   : > { %v2962_v32 = vmax.f32 %v2960_v24, %v2961_v61  ;;  %v2968_v25 = vrot.slane %v2967_v33, 1  ;;  %v2976_v8 = vmax.f32 %v2974_v56, %v2975_v60  ;;  %v6057_v26 = vunpack.i.h.bf16 %v6055_v58 }
 0x298   : > { %v2982_v18 = vrot.slane %v2981_v51, 1  ;;  %v3258_v7 = vsel %vm544_vm4, %v3256_v1, %v3257_v23  ;;  %v6060_v59 = vpop.permute.xlu1 %6059  ;;  %v6056_v40 = vunpack.i.l.bf16 %v6055_v58 }
 0x299   : > { %v2969_v41 = vmax.f32 %v2967_v33, %v2968_v25  ;;  %v3133_v54 = vsel %vm3080_vm6, %v2962_v32, %v3132_v50  ;;  %v6062_v15 = vunpack.i.h.bf16 %v6060_v59  ;;  %v6061_v61 = vunpack.i.l.bf16 %v6060_v59 }
 0x29a   : > { %v2983_v30 = vmax.f32 %v2981_v51, %v2982_v18 }
 0x29b   : > { %v3134_v21 = vsel %vm3082_vm7, %v2969_v41, %v3133_v54  ;;  %v6294_v41 = vld [vmem:[#allocation3 + $0x20] sm:$0xff]  ;;  %vm8377_vm7 = vmor %vm4075_vm11, %vm4076_vm13  ;;  %vm6369_vm11 = vmmov 0  }
 0x29c   : > { %v3135_v34 = vsel %vm3084_vm8, %v2976_v8, %v3134_v21  ;;  %v6065_v39 = vpop.permute.xlu1 %6064  ;;  %v6293_v8 = vld [vmem:[#allocation3 + $0x30] sm:$0xff]  ;;  %v3416_v54 = vsel %vm1598_vm5, %v6294_v41, %v6056_v40 }
 0x29d   : > { %v3136_v9 = vsel %vm3086_vm9, %v2983_v30, %v3135_v34  ;;  %v6067_v51 = vunpack.i.h.bf16 %v6065_v39  ;;  %v6066_v50 = vunpack.i.l.bf16 %v6065_v39  ;;  %v3417_v18 = vsel %vm1598_vm5, %v6293_v8, %v6057_v26 }
 0x29e   : > { %3153 = vst.msk [vmem:[#allocation3 + $0x81] sm:$0xff] %vm1598_vm5, %v3136_v9  ;;  %v3424_v30 = vsel %vm1730_vm12, %v3416_v54, %v6061_v61  ;;  %v3425_v21 = vsel %vm1730_vm12, %v3417_v18, %v6062_v15  ;;  %v6295_v15 = vld [vmem:[#allocation3 + $0x40] sm:$0xff]  ;;  %vm4094_vm9 = vcmask 1041408  }
 0x29f   : > { %v6070_v24 = vpop.permute.xlu0 %6069 }
 0x2a0   : > { %v6072_v33 = vunpack.i.h.bf16 %v6070_v24  ;;  %v6071_v60 = vunpack.i.l.bf16 %v6070_v24 }
 0x2a2   : > { %v3441_v9 = vsel %vm1598_vm5, %v7863_v12, %v6071_v60 }
 0x2a5   : > { %v3170_v10 = vld [vmem:[#allocation3 + $0x80] sm:$0xff]  ;;  %v3171_v47 = vld [vmem:[#allocation3 + $0x88] sm:$0x3] }
 0x2a6   : > { %v6138_v37 = vpack.i.bf16 %v3170_v10, %v8086_v49  ;;  %v6123_v45 = vpack.i.bf16 %v3172_v52, %v3170_v10  ;;  %v3251_v4 = vrot.slane %v3170_v10, 2  ;;  %v3252_v63 = vrot.slane %v3171_v47, 2 }
 0x2a7   : > { %v3240_v48 = vrot.slane %v3170_v10, 1  ;;  %v3241_v14 = vrot.slane %v3171_v47, 1  ;;  %v3442_v52 = vsel %vm1598_vm5, %v8005_v2, %v6072_v33  ;;  %v3433_v10 = vsel %vm3430_vm10, %v3424_v30, %v6066_v50 }
 0x2a8   : > { %6139 = vrot.lane.b32.xlu1 %v6138_v37, %s8677_s14  ;;  %6124 = vrot.lane.b32.xlu0 %v6123_v45, %s8680_s23  ;;  %v8161_v6 = vsel %vm625_vm3, %v3251_v4, %v3252_v63  ;;  %v3434_v47 = vsel %vm3430_vm10, %v3425_v21, %v6067_v51  ;;  %vm4056_vm3 = vcmask 257024  }
 0x2a9   : > { %v6128_v55 = vpack.i.bf16 %v8161_v6, %v8123_v38  ;;  %v3474_v36 = vpack.c.bf16 %v8155_v31, %v8161_v6  ;;  %v8168_v42 = vsel %vm544_vm4, %v3240_v48, %v3241_v14  ;;  %v3466_v63 = vpack.c.bf16 %v3434_v47, %v3433_v10  ;;  %4512 = vst.msk [vmem:[#allocation5] sm:$0xf] %vm4056_vm3, %v6358_v0  ;;  %v6224_v38 = vld [vmem:[%s8668_s3 + $0x30] sm:$0xff]   ;;  %v6225_v31 = vld [vmem:[%s8668_s3 + $0x68] sm:$0xff]  }
 0x2aa   : > { %v6133_v46 = vpack.i.bf16 %v3258_v7, %v8168_v42  ;;  %4514 = vst.msk [vmem:[#allocation5 + $0xc] sm:$0xf] %vm4056_vm3, %v6358_v0  ;;  %vm4007_vm4 = vcmask 259072   ;;  %v6226_v6 = vld [vmem:[%s8668_s3 + $0x28] sm:$0xff]  }
 0x2ab   : > { %4515 = vst.msk [vmem:[#allocation5] sm:$0x1] %vm2989_vm15, %v6358_v0  ;;  %4518 = vst.msk [vmem:[#allocation5 + $0xc] sm:$0x1] %vm2989_vm15, %v6358_v0 }
 0x2ac   : > { %6129 = vrot.lane.b32.xlu0 %v6128_v55, %s6362_s29  ;;  %4519 = vst.msk [vmem:[#allocation5 + $0x3] sm:$0x1] %vm2989_vm15, %v6358_v0  ;;  %4522 = vst.msk [vmem:[#allocation5 + $0xf] sm:$0x1] %vm2989_vm15, %v6358_v0 }
 0x2ad   : > { %4008 = vst.msk [vmem:[#allocation4] sm:$0x3f] %vm4007_vm4, %v6358_v0  ;;  %4010 = vst.msk [vmem:[#allocation4 + $0x28] sm:$0x3f] %vm4007_vm4, %v6358_v0  ;;  %vm4095_vm4 = vcmask 1045508  }
 0x2ae   : > { %4011 = vst.msk [vmem:[#allocation4] sm:$0x1] %vm2989_vm15, %v6358_v0  ;;  %4016 = vst.msk [vmem:[#allocation4 + $0x28] sm:$0x1] %vm2989_vm15, %v6358_v0 }
 0x2af   : > { %v6075_v56 = vpop.permute.xlu0 %6074  ;;  %4017 = vst.msk [vmem:[#allocation4 + $0x5] sm:$0x1] %vm2989_vm15, %v6358_v0  ;;  %4022 = vst.msk [vmem:[#allocation4 + $0x2d] sm:$0x1] %vm2989_vm15, %v6358_v0 }
 0x2b0   : > { %6134 = vrot.lane.b32.xlu0 %v6133_v46, %s8677_s14  ;;  %v6077_v32 = vunpack.i.h.bf16 %v6075_v56  ;;  %v6076_v25 = vunpack.i.l.bf16 %v6075_v56 }
 0x2b2   : > { %v3450_v53 = vsel %vm1730_vm12, %v3442_v52, %v6077_v32  ;;  %v3449_v44 = vsel %vm1730_vm12, %v3441_v9, %v6076_v25 }
 0x2bc   : > { %v6080_v34 = vpop.permute.xlu0 %6079  ;;  %v6085_v12 = vpop.permute.xlu1 %6084 }
 0x2bd   : > { %v6082_v57 = vunpack.i.h.bf16 %v6080_v34  ;;  %v6081_v19 = vunpack.i.l.bf16 %v6080_v34  ;;  %v6087_v14 = vunpack.i.h.bf16 %v6085_v12  ;;  %v6086_v23 = vunpack.i.l.bf16 %v6085_v12 }
 0x2bf   : > { %v3457_v37 = vsel %vm3430_vm10, %v3449_v44, %v6081_v19  ;;  %v3458_v45 = vsel %vm3430_vm10, %v3450_v53, %v6082_v57  ;;  %v3419_v39 = vsel %vm1598_vm5, %v7980_v62, %v6087_v14  ;;  %v3418_v61 = vsel %vm1598_vm5, %v6295_v15, %v6086_v23  ;;  %v6228_v15 = vld [vmem:[%s8668_s3 + $0x20] sm:$0xff]  }
 0x2c0   : > { %v3467_v4 = vpack.c.bf16 %v3458_v45, %v3457_v37 }
 0x2c2   : > { %3671 = vmatprep.mubr.bf16.mxu1 %v3467_v4  ;;  %v6090_v1 = vpop.permute.xlu1 %6089 }
 0x2c3   : > { %3672 = vmatmul.mubr.bf16.gmra.mxu1 %v3466_v63  ;;  %v6092_v7 = vunpack.i.h.bf16 %v6090_v1  ;;  %v6091_v46 = vunpack.i.l.bf16 %v6090_v1 }
 0x2c5   : > { %v3426_v33 = vsel %vm1730_vm12, %v3418_v61, %v6091_v46  ;;  %v3427_v60 = vsel %vm1730_vm12, %v3419_v39, %v6092_v7  ;;  %v6227_v39 = vld [vmem:[%s8668_s3 + $0x60] sm:$0xff]  }
 0x2cf   : > { %v6095_v55 = vpop.permute.xlu1 %6094 }
 0x2d0   : > { %v6097_v59 = vunpack.i.h.bf16 %v6095_v55  ;;  %v6096_v56 = vunpack.i.l.bf16 %v6095_v55 }
 0x2d2   : > { %v3435_v41 = vsel %vm3430_vm10, %v3426_v33, %v6096_v56  ;;  %v3436_v54 = vsel %vm3430_vm10, %v3427_v60, %v6097_v59  ;;  %v6229_v33 = vld [vmem:[%s8668_s3 + $0x58] sm:$0xff]  }
 0x2d3   : > { %v3469_v9 = vpack.c.bf16 %v3436_v54, %v3435_v41  ;;  %v6230_v60 = vld [vmem:[%s8668_s3 + $0x18] sm:$0xff]  }
 0x2df   : > { %v6100_v2 = vpop.permute.xlu0 %6099 }
 0x2e0   : > { %v6102_v58 = vunpack.i.h.bf16 %v6100_v2  ;;  %v6101_v24 = vunpack.i.l.bf16 %v6100_v2 }
 0x2e2   : > { %v3443_v50 = vsel %vm1598_vm5, %v8001_v22, %v6101_v24  ;;  %v3444_v32 = vsel %vm1598_vm5, %v8104_v27, %v6102_v58 }
 0x2ee   : > { %v6105_v48 = vpop.permute.xlu0 %6104 }
 0x2ef   : > { %v6107_v26 = vunpack.i.h.bf16 %v6105_v48  ;;  %v6106_v40 = vunpack.i.l.bf16 %v6105_v48 }
 0x2f1   : > { %v3452_v18 = vsel %vm1730_vm12, %v3444_v32, %v6107_v26  ;;  %v3451_v62 = vsel %vm1730_vm12, %v3443_v50, %v6106_v40  ;;  %v6231_v50 = vld [vmem:[%s8668_s3 + $0x50] sm:$0xff]  }
 0x2f3   : > { %v6110_v51 = vpop.permute.xlu0 %6109  ;;  %v6115_v22 = vpop.permute.xlu1 %6114 }
 0x2f4   : > { %v6112_v25 = vunpack.i.h.bf16 %v6110_v51  ;;  %v6111_v8 = vunpack.i.l.bf16 %v6110_v51  ;;  %v6117_v19 = vunpack.i.h.bf16 %v6115_v22  ;;  %v6116_v53 = vunpack.i.l.bf16 %v6115_v22  ;;  %v5077_v22 = vld [vmem:[%s8671_s6] ss:$0 sm:$0xff] }
 0x2f6   : > { %v3459_v30 = vsel %vm3430_vm10, %v3451_v62, %v6111_v8  ;;  %v3460_v21 = vsel %vm3430_vm10, %v3452_v18, %v6112_v25  ;;  %v3421_v1 = vsel %vm1598_vm5, %v8086_v49, %v6117_v19  ;;  %v3420_v48 = vsel %vm1598_vm5, %v8043_v35, %v6116_v53  ;;  %v6232_v25 = vld [vmem:[%s8668_s3 + $0x10] sm:$0xff]  }
 0x2f7   : > { %v3470_v34 = vpack.c.bf16 %v3460_v21, %v3459_v30  ;;  %v6120_v27 = vpop.permute.xlu1 %6119 }
 0x2f8   : > { %v6122_v10 = vunpack.i.h.bf16 %v6120_v27  ;;  %v6121_v47 = vunpack.i.l.bf16 %v6120_v27 }
 0x2f9   : > { %3679 = vmatprep.mubr.bf16.mxu1 %v3470_v34 }
 0x2fa   : > { %3680 = vmatmul.mubr.bf16.gmra.mxu1 %v3469_v9  ;;  %v3428_v7 = vsel %vm1730_vm12, %v3420_v48, %v6121_v47  ;;  %v3429_v46 = vsel %vm1730_vm12, %v3421_v1, %v6122_v10 }
 0x31a   : > { %v6125_v52 = vpop.permute.xlu0 %6124  ;;  %v6140_v57 = vpop.permute.xlu1 %6139 }
 0x31b   : > { %v6142_v4 = vunpack.i.h.bf16 %v6140_v57  ;;  %v6141_v63 = vunpack.i.l.bf16 %v6140_v57  ;;  %v6127_v14 = vunpack.i.h.bf16 %v6125_v52  ;;  %v6126_v23 = vunpack.i.l.bf16 %v6125_v52  ;;  %v8299_v57 = vld [vmem:[%s8671_s6 + $0x1] ss:$0 sm:$0xff] }
 0x31d   : > { %v3438_v49 = vsel %vm3430_vm10, %v3429_v46, %v6142_v4 }
 0x31e   : > { %v6130_v44 = vpop.permute.xlu0 %6129 }
 0x31f   : > { %v6132_v37 = vunpack.i.h.bf16 %v6130_v44  ;;  %v6131_v45 = vunpack.i.l.bf16 %v6130_v44 }
 0x321   : > { %v3445_v12 = vsel %vm1598_vm5, %v8107_v43, %v6131_v45  ;;  %v3446_v2 = vsel %vm1598_vm5, %v8168_v42, %v6132_v37  ;;  %v3437_v42 = vsel %vm3430_vm10, %v3428_v7, %v6141_v63 }
 0x322   : > { %v6135_v55 = vpop.permute.xlu0 %6134  ;;  %v3453_v43 = vsel %vm1730_vm12, %v3445_v12, %v6126_v23  ;;  %v3454_v59 = vsel %vm1730_vm12, %v3446_v2, %v6127_v14  ;;  %v3472_v40 = vpack.c.bf16 %v3438_v49, %v3437_v42 }
 0x323   : > { %v6137_v58 = vunpack.i.h.bf16 %v6135_v55  ;;  %v6136_v24 = vunpack.i.l.bf16 %v6135_v55 }
 0x325   : > { %v3461_v56 = vsel %vm3430_vm10, %v3453_v43, %v6136_v24  ;;  %v3462_v35 = vsel %vm3430_vm10, %v3454_v59, %v6137_v58 }
 0x326   : > { %v3473_v26 = vpack.c.bf16 %v3462_v35, %v3461_v56 }
 0x328   : > { %3687 = vmatprep.mubr.bf16.mxu1 %v3473_v26 }
 0x329   : > { %3688 = vmatmul.mubr.bf16.gmra.mxu1 %v3472_v40 }
 0x32a   : > { %5307 = vmatprep.mubr.msk.bf16.mxu1 %vm1598_vm5, %v3465_v29 }
 0x331   : > { %5308 = vmatmul.mubr.msk.bf16.vlgmr.msra.gmra.mxu1 %vm1598_vm5, %v3468_v28  ;;  %v6223_v28 = vld [vmem:[%s8668_s3 + $0x70] sm:$0xff]  }
 0x332   : > { %5311 = vmatprep.mubr.msk.bf16.mxu1 %vm1598_vm5, %v3471_v5  ;;  %5213 = vmatprep.subr.bf16.mxu0 %v6223_v28 }
 0x333   : > { %5214 = vmatpush3.bf16.msra.mxu0 %v6224_v38 }
 0x334   : > { %5215 = vmatprep.subr.bf16.mxu0 %v6225_v31 }
 0x337   : > { %5216 = vmatpush3.bf16.msra.mxu0 %v6226_v6 }
 0x338   : > { %5217 = vmatprep.subr.bf16.mxu0 %v6227_v39 }
 0x339   : > { %5312 = vmatmul.mubr.msk.bf16.gmra.mxu1 %vm1598_vm5, %v3474_v36 }
 0x33b   : > { %5218 = vmatpush3.bf16.msra.mxu0 %v6228_v15 }
 0x33c   : > { %5219 = vmatprep.subr.bf16.mxu0 %v6229_v33 }
 0x33f   : > { %5220 = vmatpush3.bf16.msra.mxu0 %v6230_v60 }
 0x340   : > { %5221 = vmatprep.subr.bf16.mxu0 %v6231_v50 }
 0x343   : > { %v5181_v20 = vpop.f32.mrf.mxu1  ;;  %5222 = vmatpush3.bf16.msra.mxu0 %v6232_v25 }
 0x345   : > { %v5182_v16 = vpop.f32.mrf.mxu1 }
 0x346   : > { %v5183_v27 = vadd.f32 %v5182_v16, %v5181_v20 }
 0x347   : > { %v5184_v29 = vpop.f32.mrf.mxu1 }
 0x349   : > { %v5185_v3 = vpop.f32.mrf.mxu1 }
 0x34a   : > { %v5186_v37 = vadd.f32 %v5185_v3, %v5184_v29 }
 0x383   : > { %v5187_v5 = vpop.f32.mrf.mxu1 }
 0x385   : > { %v5188_v36 = vpop.f32.mrf.mxu1 }
 0x386   : > { %v5189_v34 = vadd.f32 %v5188_v36, %v5187_v5 }
 0x387   : > { %v5190_v61 = vpop.f32.mrf.mxu1 }
 0x389   : > { %v5191_v51 = vpop.f32.mrf.mxu1 }
 0x38a   : > { %v5192_v53 = vadd.f32 %v5191_v51, %v5190_v61 }
 0x3ba   : > { %v5193_v32 = vpop.f32.mrf.mxu1 }
 0x3bc   : > { %v5194_v8 = vpop.f32.mrf.mxu1 }
 0x3bd   : > { %v5195_v7 = vadd.f32 %v5194_v8, %v5193_v32 }
 0x3be   : > { %v5196_v18 = vpop.f32.mrf.mxu1 }
 0x3c0   : > { %v5197_v62 = vpop.f32.mrf.mxu1 }
 0x3c1   : > { %v5198_v26 = vadd.f32 %v5197_v62, %v5196_v18 }
 0x3e9   : > { %v5199_v41 = vpop.f32.mrf.mxu1 }
 0x3eb   : > { %v5200_v54 = vpop.f32.mrf.mxu1 }
 0x3ec   : > { %v5201_v14 = vadd.f32 %v5200_v54, %v5199_v41 }
 0x3ed   : > { %v5202_v30 = vpop.f32.mrf.mxu1 }
 0x3ef   : > { %v5203_v21 = vpop.f32.mrf.mxu1 }
 0x3f0   : > { %v5204_v42 = vadd.f32 %v5203_v21, %v5202_v30 }
 0x3f1   : > { %v5309_v9 = vpop.f32.mrf.mxu1 }
 0x3f2   : > { %v3739_v52 = vadd.f32 %v5309_v9, %v5189_v34 }
 0x3f3   : > { %v3730_v19 = vpop.f32.mrf.mxu1 }
 0x3f4   : > { %v3769_v44 = vmul.f32 %v5077_v22, %v3739_v52  ;;  %v3731_v10 = vadd.f32 %v5183_v27, %v3730_v19 }
 0x3f5   : > { %v5310_v47 = vpop.f32.mrf.mxu1 }
 0x3f6   : > { %v3781_v45 = vadd.f32 %v8299_v57, %v3769_v44  ;;  %v3767_v4 = vmul.f32 %v5077_v22, %v3731_v10  ;;  %v3742_v63 = vadd.f32 %v5310_v47, %v5192_v53 }
 0x3f7   : > { %v3733_v12 = vpop.f32.mrf.mxu1 }
 0x3f8   : > { %v3779_v2 = vadd.f32 %v8299_v57, %v3767_v4  ;;  %v3770_v1 = vmul.f32 %v5077_v22, %v3742_v63  ;;  %v3734_v48 = vadd.f32 %v5186_v37, %v3733_v12  ;;  %v3789_v23 = vmax.f32 %v3781_v45, 0.0 }
 0x3f9   : > { %v5313_v55 = vpop.f32.mrf.mxu1 }
 0x3fa   : > { %v3782_v46 = vadd.f32 %v8299_v57, %v3770_v1  ;;  %v3768_v58 = vmul.f32 %v5077_v22, %v3734_v48  ;;  %v3787_v24 = vmax.f32 %v3779_v2, 0.0  ;;  %v3755_v43 = vadd.f32 %v5313_v55, %v5201_v14 }
 0x3fb   : > { %v3746_v59 = vpop.f32.mrf.mxu1  ;;  %v3798_v40 = vsel %vm1598_vm5, %v3789_v23, -inf }
 0x3fc   : > { %v3790_v49 = vmax.f32 %v3782_v46, 0.0  ;;  %v3780_v56 = vadd.f32 %v8299_v57, %v3768_v58  ;;  %v3747_v35 = vadd.f32 %v5195_v7, %v3746_v59  ;;  %v3773_v20 = vmul.f32 %v5077_v22, %v3755_v43 }
 0x3fd   : > { %v5314_v16 = vpop.f32.mrf.mxu1  ;;  %v3795_v3 = vsel %vm1598_vm5, %v3787_v24, -inf }
 0x3fe   : > { %v3799_v29 = vsel %vm1598_vm5, %v3790_v49, -inf  ;;  %v3788_v13 = vmax.f32 %v3780_v56, 0.0  ;;  %v3771_v17 = vmul.f32 %v5077_v22, %v3747_v35  ;;  %v3758_v28 = vadd.f32 %v5314_v16, %v5204_v42 }
 0x3ff   : > { %v3800_v38 = vmax.f32 %v3798_v40, %v3799_v29  ;;  %v8309_v5 = vadd.f32 %v8299_v57, %v3773_v20  ;;  %v3749_v31 = vpop.f32.mrf.mxu1 }
 0x400   : > { %v3796_v6 = vsel %vm1598_vm5, %v3788_v13, -inf  ;;  %v8313_v36 = vadd.f32 %v8299_v57, %v3771_v17  ;;  %v3774_v39 = vmul.f32 %v5077_v22, %v3758_v28  ;;  %v3750_v15 = vadd.f32 %v5198_v26, %v3749_v31 }
 0x401   : > { %v3828_v61 = vcombine.high %v3800_v38, %v3800_v38  ;;  %v3835_v33 = vrot.slane %v3800_v38, %v7611_v11  ;;  %v3797_v60 = vmax.f32 %v3795_v3, %v3796_v6  ;;  %v3793_v51 = vmax.f32 %v8309_v5, 0.0 }
 0x402   : > { %v3791_v50 = vmax.f32 %v8313_v36, 0.0  ;;  %v3786_v54 = vadd.f32 %v8299_v57, %v3774_v39  ;;  %v3772_v30 = vmul.f32 %v5077_v22, %v3750_v15 }
 0x403   : > { %v3842_v32 = vrot.slane %v3828_v61, %v7611_v11  ;;  %v3843_v25 = vcombine.high %v3835_v33, %v3835_v33  ;;  %v3923_v8 = vsel %vm2535_vm14, %v3835_v33, -inf  ;;  %v3811_v18 = vcombine.high %v3797_v60, %v3797_v60 }
 0x404   : > { %v3924_v62 = vrot.slane %v3923_v8, 4  ;;  %v3818_v41 = vrot.slane %v3797_v60, %v7611_v11  ;;  %v3794_v33 = vmax.f32 %v3786_v54, 0.0 }
 0x405   : > { %v3844_v21 = vcombine.high %v3842_v32, %v3842_v32  ;;  %v3930_v34 = vsel %vm2535_vm14, %v3843_v25, -inf  ;;  %v3937_v9 = vsel %vm2535_vm14, %v3842_v32, -inf  ;;  %v3825_v27 = vrot.slane %v3811_v18, %v7611_v11 }
 0x406   : > { %v3925_v52 = vmax.f32 %v3923_v8, %v3924_v62  ;;  %v3931_v19 = vrot.slane %v3930_v34, 4  ;;  %v3938_v53 = vrot.slane %v3937_v9, 4  ;;  %v3826_v44 = vcombine.high %v3818_v41, %v3818_v41 }
 0x407   : > { %v3944_v10 = vsel %vm2535_vm14, %v3844_v21, -inf  ;;  %v3827_v47 = vcombine.high %v3825_v27, %v3825_v27  ;;  %v3895_v37 = vsel %vm2535_vm14, %v3818_v41, -inf  ;;  %v3909_v45 = vsel %vm2535_vm14, %v3825_v27, -inf }
 0x408   : > { %v3926_v4 = vrot.slane %v3925_v52, 2  ;;  %v3932_v22 = vmax.f32 %v3930_v34, %v3931_v19  ;;  %v3939_v63 = vmax.f32 %v3937_v9, %v3938_v53  ;;  %v3945_v12 = vrot.slane %v3944_v10, 4 }
 0x409   : > { %v3896_v2 = vrot.slane %v3895_v37, 4  ;;  %v3902_v1 = vsel %vm2535_vm14, %v3826_v44, -inf  ;;  %v3910_v48 = vrot.slane %v3909_v45, 4  ;;  %v3916_v14 = vsel %vm2535_vm14, %v3827_v47, -inf }
 0x40a   : > { %v3927_v23 = vmax.f32 %v3925_v52, %v3926_v4  ;;  %v3933_v55 = vrot.slane %v3932_v22, 2  ;;  %v3940_v7 = vrot.slane %v3939_v63, 2  ;;  %v3946_v46 = vmax.f32 %v3944_v10, %v3945_v12 }
 0x40b   : > { %v3897_v58 = vmax.f32 %v3895_v37, %v3896_v2  ;;  %v3903_v24 = vrot.slane %v3902_v1, 4  ;;  %v3911_v43 = vmax.f32 %v3909_v45, %v3910_v48  ;;  %v3917_v59 = vrot.slane %v3916_v14, 4 }
 0x40c   : > { %v3928_v42 = vrot.slane %v3927_v23, 1  ;;  %v3934_v49 = vmax.f32 %v3932_v22, %v3933_v55  ;;  %v3941_v56 = vmax.f32 %v3939_v63, %v3940_v7  ;;  %v3947_v35 = vrot.slane %v3946_v46, 2 }
 0x40d   : > { %v3898_v26 = vrot.slane %v3897_v58, 2  ;;  %v3904_v40 = vmax.f32 %v3902_v1, %v3903_v24  ;;  %v3912_v20 = vrot.slane %v3911_v43, 2  ;;  %v3918_v16 = vmax.f32 %v3916_v14, %v3917_v59 }
 0x40e   : > { %v3929_v29 = vmax.f32 %v3927_v23, %v3928_v42  ;;  %v3935_v13 = vrot.slane %v3934_v49, 1  ;;  %v3942_v17 = vrot.slane %v3941_v56, 1  ;;  %v3948_v28 = vmax.f32 %v3946_v46, %v3947_v35 }
 0x40f   : > { %v3899_v3 = vmax.f32 %v3897_v58, %v3898_v26  ;;  %v3905_v38 = vrot.slane %v3904_v40, 2  ;;  %v3913_v31 = vmax.f32 %v3911_v43, %v3912_v20  ;;  %v3919_v6 = vrot.slane %v3918_v16, 2 }
 0x410   : > { %v3936_v39 = vmax.f32 %v3934_v49, %v3935_v13  ;;  %v3943_v15 = vmax.f32 %v3941_v56, %v3942_v17  ;;  %v3949_v61 = vrot.slane %v3948_v28, 1  ;;  %v3805_v41 = vsel %vm1598_vm5, %v3794_v33, -inf }
 0x411   : > { %v3900_v60 = vrot.slane %v3899_v3, 1  ;;  %v3906_v32 = vmax.f32 %v3904_v40, %v3905_v38  ;;  %v3914_v25 = vrot.slane %v3913_v31, 1  ;;  %v3920_v8 = vmax.f32 %v3918_v16, %v3919_v6 }
 0x412   : > { %v3950_v18 = vmax.f32 %v3948_v28, %v3949_v61  ;;  %v4042_v62 = vsel %vm3074_vm0, %v3936_v39, %v3929_v29  ;;  %v3784_v21 = vadd.f32 %v8299_v57, %v3772_v30  ;;  %v3804_v52 = vsel %vm1598_vm5, %v3793_v51, -inf }
 0x413   : > { %v4043_v34 = vsel %vm3076_vm1, %v3943_v15, %v4042_v62  ;;  %v3907_v9 = vrot.slane %v3906_v32, 1  ;;  %v3915_v27 = vmax.f32 %v3913_v31, %v3914_v25  ;;  %v3921_v19 = vrot.slane %v3920_v8, 1 }
 0x414   : > { %v4044_v54 = vsel %vm3078_vm2, %v3950_v18, %v4043_v34  ;;  %v3806_v53 = vmax.f32 %v3804_v52, %v3805_v41  ;;  %v3792_v44 = vmax.f32 %v3784_v21, 0.0  ;;  %v3901_v10 = vmax.f32 %v3899_v3, %v3900_v60 }
 0x415   : > { %4058 = vst.msk [vmem:[#allocation4 + $0x11] sm:$0xf] %vm4056_vm3, %v4044_v54  ;;  %v3908_v47 = vmax.f32 %v3906_v32, %v3907_v9  ;;  %v3801_v57 = vsel %vm1598_vm5, %v3791_v50, -inf  ;;  %v3922_v30 = vmax.f32 %v3920_v8, %v3921_v19 }
 0x416   : > { %v3862_v37 = vcombine.high %v3806_v53, %v3806_v53  ;;  %v3869_v45 = vrot.slane %v3806_v53, %v7611_v11  ;;  %v3802_v5 = vsel %vm1598_vm5, %v3792_v44, -inf }
 0x417   : > { %v4039_v51 = vsel %vm3074_vm0, %v3908_v47, %v3901_v10  ;;  %v3803_v4 = vmax.f32 %v3801_v57, %v3802_v5 }
 0x418   : > { %v4040_v22 = vsel %vm3076_vm1, %v3915_v27, %v4039_v51  ;;  %v3876_v63 = vrot.slane %v3862_v37, %v7611_v11  ;;  %v3877_v12 = vcombine.high %v3869_v45, %v3869_v45  ;;  %v3979_v2 = vsel %vm2535_vm14, %v3869_v45, -inf }
 0x419   : > { %v4041_v36 = vsel %vm3078_vm2, %v3922_v30, %v4040_v22  ;;  %v3980_v1 = vrot.slane %v3979_v2, 4  ;;  %v3845_v50 = vcombine.high %v3803_v4, %v3803_v4  ;;  %v3852_v48 = vrot.slane %v3803_v4, %v7611_v11 }
 0x41a   : > { %4057 = vst.msk [vmem:[#allocation4 + $0x9] sm:$0xf] %vm4056_vm3, %v4041_v36  ;;  %v3878_v14 = vcombine.high %v3876_v63, %v3876_v63  ;;  %v3986_v23 = vsel %vm2535_vm14, %v3877_v12, -inf  ;;  %v3993_v55 = vsel %vm2535_vm14, %v3876_v63, -inf }
 0x41b   : > { %v3981_v7 = vmax.f32 %v3979_v2, %v3980_v1  ;;  %v3987_v46 = vrot.slane %v3986_v23, 4  ;;  %v3994_v58 = vrot.slane %v3993_v55, 4  ;;  %v3859_v24 = vrot.slane %v3845_v50, %v7611_v11  ;;  %v8372_v50 = vld [vmem:[#allocation4 + $0x28] sm:$0x3f] }
 0x41c   : > { %v4000_v43 = vsel %vm2535_vm14, %v3878_v14, -inf  ;;  %v3860_v59 = vcombine.high %v3852_v48, %v3852_v48  ;;  %v3951_v42 = vsel %vm2535_vm14, %v3852_v48, -inf  ;;  %v8361_v53 = vld [vmem:[#allocation4 + $0x10] sm:$0x3f] }
 0x41d   : > { %v3982_v49 = vrot.slane %v3981_v7, 2  ;;  %v3988_v56 = vmax.f32 %v3986_v23, %v3987_v46  ;;  %v3995_v35 = vmax.f32 %v3993_v55, %v3994_v58  ;;  %v4001_v26 = vrot.slane %v4000_v43, 4 }
 0x41e   : > { %v3861_v40 = vcombine.high %v3859_v24, %v3859_v24  ;;  %v3952_v20 = vrot.slane %v3951_v42, 4  ;;  %v3958_v16 = vsel %vm2535_vm14, %v3860_v59, -inf  ;;  %v3965_v29 = vsel %vm2535_vm14, %v3859_v24, -inf }
 0x41f   : > { %v3983_v13 = vmax.f32 %v3981_v7, %v3982_v49  ;;  %v3989_v17 = vrot.slane %v3988_v56, 2  ;;  %v3996_v28 = vrot.slane %v3995_v35, 2  ;;  %v4002_v3 = vmax.f32 %v4000_v43, %v4001_v26  ;;  %v8382_v43 = vld [vmem:[#allocation4] sm:$0x3f] }
 0x420   : > { %v3953_v38 = vmax.f32 %v3951_v42, %v3952_v20  ;;  %v3959_v31 = vrot.slane %v3958_v16, 4  ;;  %v3966_v6 = vrot.slane %v3965_v29, 4  ;;  %v3972_v39 = vsel %vm2535_vm14, %v3861_v40, -inf }
 0x421   : > { %v3984_v15 = vrot.slane %v3983_v13, 1  ;;  %v3990_v61 = vmax.f32 %v3988_v56, %v3989_v17  ;;  %v3997_v33 = vmax.f32 %v3995_v35, %v3996_v28  ;;  %v4003_v60 = vrot.slane %v4002_v3, 2  ;;  %v8359_v62 = vld [vmem:[#allocation4 + $0x8] sm:$0x3f]  ;;  %v6234_v17 = vld [vmem:[%s8668_s3 + $0x8] sm:$0xff]  }
 0x422   : > { %v3954_v32 = vrot.slane %v3953_v38, 2  ;;  %v3960_v25 = vmax.f32 %v3958_v16, %v3959_v31  ;;  %v3967_v8 = vmax.f32 %v3965_v29, %v3966_v6  ;;  %v3973_v18 = vrot.slane %v3972_v39, 4 }
 0x423   : > { %v3985_v41 = vmax.f32 %v3983_v13, %v3984_v15  ;;  %v3991_v21 = vrot.slane %v3990_v61, 1  ;;  %v3998_v34 = vrot.slane %v3997_v33, 1  ;;  %v4004_v9 = vmax.f32 %v4002_v3, %v4003_v60  ;;  %v6233_v13 = vld [vmem:[%s8668_s3 + $0x48] sm:$0xff]  }
 0x424   : > { %v3955_v27 = vmax.f32 %v3953_v38, %v3954_v32  ;;  %v3961_v52 = vrot.slane %v3960_v25, 2  ;;  %v3968_v54 = vrot.slane %v3967_v8, 2  ;;  %v3974_v19 = vmax.f32 %v3972_v39, %v3973_v18  ;;  %5223 = vmatprep.subr.bf16.mxu0 %v6233_v13 }
 0x425   : > { %v3992_v44 = vmax.f32 %v3990_v61, %v3991_v21  ;;  %v3999_v10 = vmax.f32 %v3997_v33, %v3998_v34  ;;  %v4005_v47 = vrot.slane %v4004_v9, 1  ;;  %v4072_v57 = vcombine.high %v8359_v62, %v8359_v62  ;;  %5224 = vmatpush3.bf16.msra.mxu0 %v6234_v17 }
 0x426   : > { %v3956_v30 = vrot.slane %v3955_v27, 1  ;;  %v3962_v37 = vmax.f32 %v3960_v25, %v3961_v52  ;;  %v3969_v45 = vmax.f32 %v3967_v8, %v3968_v54  ;;  %v3975_v5 = vrot.slane %v3974_v19, 2 }
 0x427   : > { %v4006_v51 = vmax.f32 %v4004_v9, %v4005_v47  ;;  %v4048_v4 = vsel %vm3074_vm0, %v3992_v44, %v3985_v41  ;;  %v8368_v22 = vcombine.high %v8361_v53, %v8361_v53  ;;  %v5080_v48 = vrot.slane %v8359_v62, 9 }
 0x428   : > { %v4049_v63 = vsel %vm3076_vm1, %v3999_v10, %v4048_v4  ;;  %v3963_v12 = vrot.slane %v3962_v37, 1  ;;  %v3970_v2 = vrot.slane %v3969_v45, 1  ;;  %v3976_v1 = vmax.f32 %v3974_v19, %v3975_v5 }
 0x429   : > { %v4050_v36 = vsel %vm3078_vm2, %v4006_v51, %v4049_v63  ;;  %v4084_v14 = vrot.slane %v4072_v57, 5  ;;  %v3957_v23 = vmax.f32 %v3955_v27, %v3956_v30  ;;  %v4088_v58 = vrot.slane %v8368_v22, 5 }
 0x42a   : > { %4060 = vst.msk [vmem:[#allocation4 + $0x21] sm:$0xf] %vm4056_vm3, %v4050_v36  ;;  %v3964_v55 = vmax.f32 %v3962_v37, %v3963_v12  ;;  %v3971_v7 = vmax.f32 %v3969_v45, %v3970_v2  ;;  %v3977_v24 = vrot.slane %v3976_v1, 1  ;;  %v5081_v42 = vrot.slane %v8361_v53, 9  ;;  %v6236_v12 = vld [vmem:[%s8668_s3 + $0x40] sm:$0xff]  }
 0x42b   : > { %v8386_v59 = vsel %vm8377_vm7, %v5080_v48, %v4084_v14  ;;  %v8392_v56 = vcombine.high %v8372_v50, %v8372_v50  ;;  %v4071_v20 = vcombine.high %v8382_v43, %v8382_v43  ;;  %v5090_v28 = vrot.slane %v8372_v50, 10  ;;  %v6237_v2 = vld [vmem:[%s8668_s3] sm:$0xff]   ;;  %5225 = vmatprep.subr.bf16.mxu0 %v6236_v12  ;;  %v6246_v12 = vld [vmem:[%s8669_s4 + $0x70] sm:$0xff]  }
 0x42c   : > { %v4045_v49 = vsel %vm3074_vm0, %v3964_v55, %v3957_v23  ;;  %v3978_v35 = vmax.f32 %v3976_v1, %v3977_v24  ;;  %v8397_v40 = vsel %vm8377_vm7, %v5081_v42, %v4088_v58  ;;  %v5079_v31 = vrot.slane %v8382_v43, 9  ;;  %5226 = vmatpush3.bf16.msra.mxu0 %v6237_v2  ;;  %v6247_v2 = vld [vmem:[%s8669_s4 + $0x30] sm:$0xff]  }
 0x42d   : > { %v4046_v26 = vsel %vm3076_vm1, %v3971_v7, %v4045_v49  ;;  %v4161_v16 = vcombine.low %v8386_v59, %v8397_v40  ;;  %v4131_v3 = vrot.slane %v8392_v56, 6  ;;  %v4080_v6 = vrot.slane %v4071_v20, 5  ;;  %5315 = vmatprep.subr.bf16.mxu0 %v6358_v0 }
 0x42e   : > { %v4047_v29 = vsel %vm3078_vm2, %v3978_v35, %v4046_v26  ;;  %vm8418_vm2 = vmor %vm4094_vm9, %vm4095_vm4  ;;  %v4103_v61 = vrot.slane %v4072_v57, 6  ;;  %v5084_v25 = vrot.slane %v8359_v62, 10  ;;  %v4107_v8 = vrot.slane %v8368_v22, 6 }
 0x42f   : > { %4059 = vst.msk [vmem:[#allocation4 + $0x19] sm:$0xf] %vm4056_vm3, %v4047_v29  ;;  %v4132_v32 = vsel %vm8418_vm2, %v5090_v28, %v4131_v3  ;;  %v4081_v18 = vsel %vm8377_vm7, %v5079_v31, %v4080_v6  ;;  %v5083_v21 = vrot.slane %v8382_v43, 10  ;;  %v4099_v34 = vrot.slane %v4071_v20, 6 }
 0x430   : > { %v4104_v27 = vsel %vm8418_vm2, %v5084_v25, %v4103_v61  ;;  %v5085_v52 = vrot.slane %v8361_v53, 10  ;;  %v5089_v19 = vrot.slane %v8372_v50, 9  ;;  %v4127_v5 = vrot.slane %v8392_v56, 5 }
 0x431   : > { %v8413_v38 = vld [vmem:[#allocation4 + $0x20] sm:$0x3f]  ;;  %v4137_v36 = vcombine.low %v4081_v18, %v8386_v59  ;;  %v4100_v24 = vsel %vm8418_vm2, %v5083_v21, %v4099_v34  ;;  %v4153_v46 = vcombine.low %v8359_v62, %v8361_v53  ;;  %v4133_v59 = vcombine.low %v8382_v43, %v8359_v62 }
 0x432   : > { %v4114_v39 = vcombine.high %v8413_v38, %v8413_v38  ;;  %v5088_v33 = vrot.slane %v8413_v38, 10  ;;  %v4173_v10 = vcombine.low %v8413_v38, %v8372_v50  ;;  %v4108_v37 = vsel %vm8418_vm2, %v5085_v52, %v4107_v8 }
 0x433   : > { %v5087_v45 = vrot.slane %v8413_v38, 9  ;;  %v4165_v1 = vcombine.low %v4104_v27, %v4108_v37  ;;  %v4128_v42 = vsel %vm8377_vm7, %v5089_v19, %v4127_v5  ;;  %v4145_v26 = vcombine.low %v4100_v24, %v4104_v27 }
 0x434   : > { %v4121_v60 = vrot.slane %v4114_v39, 6  ;;  %v4117_v57 = vrot.slane %v4114_v39, 5 }
 0x436   : > { %v4122_v41 = vsel %vm8418_vm2, %v5088_v33, %v4121_v60  ;;  %v4064_v9 = vld [vmem:[#allocation4 + $0x18] sm:$0x3f]  ;;  %v4118_v14 = vsel %vm8377_vm7, %v5087_v45, %v4117_v57 }
 0x437   : > { %v4187_v54 = vcombine.low %v4122_v41, %v4132_v32  ;;  %v8437_v44 = vcombine.low %v8361_v53, %v4064_v9  ;;  %v4074_v47 = vcombine.high %v4064_v9, %v4064_v9  ;;  %v5082_v30 = vrot.slane %v4064_v9, 9  ;;  %v6238_v45 = vld [vmem:[%s8668_s3 + $0x88] sm:$0xff]  }
 0x438   : > { %v5086_v22 = vrot.slane %v4064_v9, 10  ;;  %v4180_v20 = vcombine.low %v4118_v14, %v4128_v42  ;;  %v4154_v17 = vcombine.low %v4064_v9, %v8413_v38 }
 0x439   : > { %v6143_v51 = vpack.i.bf16 %v4173_v10, %v8437_v44  ;;  %v4092_v4 = vrot.slane %v4074_v47, 5  ;;  %v4111_v63 = vrot.slane %v4074_v47, 6 }
 0x43a   : > { %v6168_v28 = vpack.i.bf16 %v4154_v17, %v4153_v46 }
 0x43b   : > { %6144 = vrot.lane.b32.xlu0 %v6143_v51, %s8680_s23  ;;  %v4093_v50 = vsel %vm8377_vm7, %v5082_v30, %v4092_v4  ;;  %v4112_v48 = vsel %vm8418_vm2, %v5086_v22, %v4111_v63  ;;  %v6240_v51 = vld [vmem:[%s8669_s4 + $0x88] sm:$0xff]   ;;  %v6241_v4 = vld [vmem:[%s8669_s4 + $0x80] sm:$0xff]   ;;  %v6244_v22 = vld [vmem:[%s8669_s4 + $0x78] sm:$0xff]  }
 0x43c   : > { %v4138_v23 = vcombine.low %v8397_v40, %v4093_v50  ;;  %v4166_v55 = vcombine.low %v4112_v48, %v4122_v41  ;;  %v4146_v7 = vcombine.low %v4108_v37, %v4112_v48  ;;  %v4162_v58 = vcombine.low %v4093_v50, %v4118_v14  ;;  %v6245_v63 = vld [vmem:[%s8669_s4 + $0x38] sm:$0xff]   ;;  %5236 = vmatprep.subr.bf16.mxu1 %v6244_v22  ;;  %v6251_v50 = vld [vmem:[%s8669_s4 + $0x20] sm:$0xff]  }
 0x43d   : > { %5237 = vmatpush3.bf16.msra.mxu1 %v6245_v63  ;;  %v6252_v48 = vld [vmem:[%s8669_s4 + $0x58] sm:$0xff]   ;;  %v8556_v22 = vld [vmem:[#allocation5] sm:$0xf] }
 0x43e   : > { %v6153_v49 = vpack.i.bf16 %v4138_v23, %v4137_v36  ;;  %v6148_v56 = vpack.i.bf16 %v4166_v55, %v4165_v1  ;;  %v4204_v35 = vpack.c.bf16 %v4187_v54, %v4146_v7  ;;  %v6158_v29 = vpack.i.bf16 %v4146_v7, %v4145_v26  ;;  %5238 = vmatprep.subr.bf16.mxu1 %v6246_v12  ;;  %v6249_v36 = vld [vmem:[%s8669_s4 + $0x28] sm:$0xff]   ;;  %v6250_v1 = vld [vmem:[%s8669_s4 + $0x60] sm:$0xff]   ;;  %v6253_v14 = vld [vmem:[%s8669_s4 + $0x18] sm:$0xff]  }
 0x43f   : > { %v6163_v13 = vpack.i.bf16 %v4180_v20, %v4138_v23 }
 0x440   : > { %6154 = vrot.lane.b32.xlu1 %v6153_v49, %s6362_s29  ;;  %6149 = vrot.lane.b32.xlu0 %v6148_v56, %s6362_s29  ;;  %v5110_v49 = vld [vmem:[%s8672_s7] ss:$0 sm:$0xff] }
 0x441   : > { %5239 = vmatpush3.bf16.msra.mxu1 %v6247_v2 }
 0x444   : > { %6159 = vrot.lane.b32.xlu1 %v6158_v29, %s8680_s23  ;;  %6164 = vrot.lane.b32.xlu0 %v6163_v13, %s8677_s14 }
 0x448   : > { %6169 = vrot.lane.b32.xlu1 %v6168_v28, %s8677_s14 }
 0x4ad   : > { %v6145_v3 = vpop.permute.xlu0 %6144 }
 0x4ae   : > { %v6147_v33 = vunpack.i.h.bf16 %v6145_v3  ;;  %v6146_v60 = vunpack.i.l.bf16 %v6145_v3 }
 0x4b2   : > { %v6155_v31 = vpop.permute.xlu1 %6154  ;;  %v6150_v6 = vpop.permute.xlu0 %6149 }
 0x4b3   : > { %v6152_v39 = vunpack.i.h.bf16 %v6150_v6  ;;  %v6151_v15 = vunpack.i.l.bf16 %v6150_v6  ;;  %v6157_v53 = vunpack.i.h.bf16 %v6155_v31  ;;  %v6156_v8 = vunpack.i.l.bf16 %v6155_v31 }
 0x4b5   : > { %v4196_v38 = vsel %vm1598_vm5, %v4161_v16, %v6151_v15  ;;  %v4197_v61 = vsel %vm1598_vm5, %v4162_v58, %v6152_v39  ;;  %v4191_v19 = vsel %vm1598_vm5, %v8437_v44, %v6157_v53  ;;  %v4190_v10 = vsel %vm1598_vm5, %v4133_v59, %v6156_v8  ;;  %v6239_v44 = vld [vmem:[%s8668_s3 + $0x80] sm:$0xff]  }
 0x4b6   : > { %v6160_v32 = vpop.permute.xlu1 %6159  ;;  %v6165_v25 = vpop.permute.xlu0 %6164  ;;  %v4198_v9 = vsel %vm1730_vm12, %v4196_v38, %v6146_v60  ;;  %v4199_v27 = vsel %vm1730_vm12, %v4197_v61, %v6147_v33 }
 0x4b7   : > { %v6167_v18 = vunpack.i.h.bf16 %v6165_v25  ;;  %v6166_v41 = vunpack.i.l.bf16 %v6165_v25  ;;  %v6162_v21 = vunpack.i.h.bf16 %v6160_v32  ;;  %v6161_v34 = vunpack.i.l.bf16 %v6160_v32 }
 0x4b9   : > { %v4200_v40 = vsel %vm3430_vm10, %v4198_v9, %v6166_v41  ;;  %v4201_v16 = vsel %vm3430_vm10, %v4199_v27, %v6167_v18  ;;  %v4192_v30 = vsel %vm1730_vm12, %v4190_v10, %v6161_v34  ;;  %v4193_v37 = vsel %vm1730_vm12, %v4191_v19, %v6162_v21 }
 0x4ba   : > { %v6170_v52 = vpop.permute.xlu1 %6169  ;;  %v4203_v54 = vpack.c.bf16 %v4201_v16, %v4200_v40 }
 0x4bb   : > { %v6172_v47 = vunpack.i.h.bf16 %v6170_v52  ;;  %v6171_v57 = vunpack.i.l.bf16 %v6170_v52 }
 0x4bc   : > { %4384 = vmatprep.mubr.bf16.mxu0 %v4203_v54 }
 0x4bd   : > { %v4195_v62 = vsel %vm3430_vm10, %v4193_v37, %v6172_v47  ;;  %v4194_v43 = vsel %vm3430_vm10, %v4192_v30, %v6171_v57 }
 0x4be   : > { %v4202_v5 = vpack.c.bf16 %v4195_v62, %v4194_v43 }
 0x4c0   : > { %4385 = vmatmul.mubr.bf16.vlgmr.msra.gmra.mxu0 %v4202_v5 }
 0x4c1   : > { %5316 = vmatpush3.bf16.msra.mxu0 %v6238_v45  ;;  %5319 = vmatprep.mubr.msk.bf16.mxu0 %vm6369_vm11, %v6358_v0 }
 0x4c2   : > { %5317 = vmatprep.subr.bf16.mxu0 %v6358_v0 }
 0x4c5   : > { %5318 = vmatpush3.bf16.msra.mxu0 %v6239_v44 }
 0x4c6   : > { %5323 = vmatprep.subr.bf16.mxu0 %v6358_v0 }
 0x4c8   : > { %5320 = vmatmul.mubr.msk.bf16.vlgmr.msra.gmra.mxu0 %vm1598_vm5, %v4204_v35  ;;  %v5111_v35 = vld [vmem:[%s8672_s7 + $0x1] ss:$0 sm:$0xff] }
 0x4c9   : > { %5327 = vmatprep.mubr.msk.bf16.mxu0 %vm6369_vm11, %v6358_v0  ;;  %5324 = vmatpush3.bf16.msra.mxu0 %v6240_v51 }
 0x4ca   : > { %5325 = vmatprep.subr.bf16.mxu0 %v6358_v0  ;;  %v6248_v0 = vld [vmem:[%s8669_s4 + $0x68] sm:$0xff]  }
 0x4cb   : > { %5240 = vmatprep.subr.bf16.mxu1 %v6248_v0 }
 0x4cc   : > { %5241 = vmatpush3.bf16.msra.mxu1 %v6249_v36 }
 0x4cd   : > { %5326 = vmatpush3.bf16.msra.mxu0 %v6241_v4  ;;  %5242 = vmatprep.subr.bf16.mxu1 %v6250_v1 }
 0x4d0   : > { %5243 = vmatpush3.bf16.msra.mxu1 %v6251_v50  ;;  %v4546_v50 = vrot.slane %v8556_v22, %v7611_v11 }
 0x4d1   : > { %5244 = vmatprep.subr.bf16.mxu1 %v6252_v48 }
 0x4d4   : > { %5245 = vmatpush3.bf16.msra.mxu1 %v6253_v14 }
 0x580   : > { %v5227_v23 = vpop.f32.mrf.mxu0 }
 0x582   : > { %v5228_v55 = vpop.f32.mrf.mxu0 }
 0x583   : > { %v5229_v24 = vadd.f32 %v5228_v55, %v5227_v23  ;;  %v4537_v23 = vld [vmem:[#allocation5 + $0xc] sm:$0xf] }
 0x584   : > { %v5230_v7 = vpop.f32.mrf.mxu0 }
 0x586   : > { %v5231_v58 = vpop.f32.mrf.mxu0 }
 0x587   : > { %v5232_v20 = vadd.f32 %v5231_v58, %v5230_v7  ;;  %v4547_v7 = vcombine.high %v4546_v50, %v4546_v50  ;;  %v4588_v58 = vrot.slane %v4537_v23, %v7611_v11 }
 0x588   : > { %v4427_v42 = vpop.f32.mrf.mxu0 }
 0x589   : > { %v4428_v56 = vadd.f32 %v5229_v24, %v4427_v42  ;;  %v6254_v24 = vld [vmem:[%s8669_s4 + $0x50] sm:$0xff]  }
 0x58a   : > { %v5321_v26 = vpop.f32.mrf.mxu0  ;;  %v6255_v42 = vld [vmem:[%s8669_s4 + $0x10] sm:$0xff]   ;;  %5246 = vmatprep.subr.bf16.mxu1 %v6254_v24 }
 0x58b   : > { %v4440_v29 = vmul.f32 %v5110_v49, %v4428_v56  ;;  %v5112_v56 = vrot.slane %v4546_v50, 9  ;;  %5247 = vmatpush3.bf16.msra.mxu1 %v6255_v42 }
 0x58c   : > { %v4430_v13 = vpop.f32.mrf.mxu0 }
 0x58d   : > { %v4446_v17 = vadd.f32 %v5111_v35, %v4440_v29  ;;  %v4431_v46 = vadd.f32 %v5232_v20, %v4430_v13  ;;  %v4589_v29 = vcombine.high %v4588_v58, %v4588_v58  ;;  %v6257_v13 = vld [vmem:[%s8669_s4 + $0x48] sm:$0xff]  }
 0x58e   : > { %v5322_v28 = vpop.f32.mrf.mxu0  ;;  %5248 = vmatprep.subr.bf16.mxu1 %v6257_v13 }
 0x58f   : > { %v4448_v3 = vmax.f32 %v4446_v17, 0.0  ;;  %v4441_v31 = vmul.f32 %v5110_v49, %v4431_v46  ;;  %v6258_v28 = vld [vmem:[%s8669_s4 + $0x8] sm:$0xff]  }
 0x590   : > { %5249 = vmatpush3.bf16.msra.mxu1 %v6258_v28 }
 0x591   : > { %v4452_v6 = vcombine.high %v4448_v3, %v4448_v3  ;;  %v4447_v39 = vadd.f32 %v5111_v35, %v4441_v31  ;;  %v4456_v15 = vsel %vm4056_vm3, %v4448_v3, -inf  ;;  %v4562_v35 = vrot.slane %v4547_v7, 7 }
 0x593   : > { %v4457_v38 = vsel %vm4056_vm3, %v4452_v6, -inf  ;;  %v4449_v61 = vmax.f32 %v4447_v39, 0.0 }
 0x594   : > { %v4458_v33 = vmax.f32 %v4456_v15, %v4457_v38 }
 0x595   : > { %v4453_v60 = vcombine.high %v4449_v61, %v4449_v61  ;;  %v4459_v25 = vsel %vm4056_vm3, %v4449_v61, -inf }
 0x596   : > { %v4470_v32 = vrot.slane %v4458_v33, %v7611_v11  ;;  %v5115_v33 = vrot.slane %v4588_v58, 9 }
 0x597   : > { %v4460_v53 = vsel %vm4056_vm3, %v4453_v60, -inf  ;;  %vm4556_vm3 = vcmask 1040384   ;;  %v4592_v60 = vrot.slane %v4589_v29, 7 }
 0x598   : > { %v4471_v8 = vcombine.high %v4470_v32, %v4470_v32  ;;  %v4484_v18 = vsel %vm2535_vm14, %v4470_v32, -inf  ;;  %v4461_v41 = vmax.f32 %v4459_v25, %v4460_v53  ;;  %vm4557_vm13 = vmor %vm4556_vm3, %vm3076_vm1  ;;  %v6259_v32 = vld [vmem:[%s8669_s4 + $0x40] sm:$0xff]  }
 0x599   : > { %v4485_v21 = vrot.slane %v4484_v18, 4  ;;  %vm4558_vm7 = vmor %vm4557_vm13, %vm3080_vm6  ;;  %5250 = vmatprep.subr.bf16.mxu1 %v6259_v32 }
 0x59a   : > { %v4491_v34 = vsel %vm2535_vm14, %v4471_v8, -inf  ;;  %v4478_v9 = vrot.slane %v4461_v41, %v7611_v11  ;;  %v6260_v41 = vld [vmem:[%s8669_s4] sm:$0xff]  }
 0x59b   : > { %v4486_v27 = vmax.f32 %v4484_v18, %v4485_v21  ;;  %v4492_v59 = vrot.slane %v4491_v34, 4  ;;  %5251 = vmatpush3.bf16.msra.mxu1 %v6260_v41 }
 0x59c   : > { %v4479_v40 = vcombine.high %v4478_v9, %v4478_v9  ;;  %v4498_v16 = vsel %vm2535_vm14, %v4478_v9, -inf }
 0x59d   : > { %v4487_v52 = vrot.slane %v4486_v27, 2  ;;  %v4493_v54 = vmax.f32 %v4491_v34, %v4492_v59  ;;  %v4499_v19 = vrot.slane %v4498_v16, 4 }
 0x59e   : > { %v4505_v10 = vsel %vm2535_vm14, %v4479_v40, -inf }
 0x59f   : > { %v4488_v47 = vmax.f32 %v4486_v27, %v4487_v52  ;;  %v4494_v57 = vrot.slane %v4493_v54, 2  ;;  %v4500_v30 = vmax.f32 %v4498_v16, %v4499_v19  ;;  %v4506_v37 = vrot.slane %v4505_v10, 4 }
 0x5a1   : > { %v4489_v62 = vrot.slane %v4488_v47, 1  ;;  %v4495_v43 = vmax.f32 %v4493_v54, %v4494_v57  ;;  %v4501_v45 = vrot.slane %v4500_v30, 2  ;;  %v4507_v5 = vmax.f32 %v4505_v10, %v4506_v37 }
 0x5a3   : > { %v4496_v44 = vrot.slane %v4495_v43, 1  ;;  %v4502_v51 = vmax.f32 %v4500_v30, %v4501_v45  ;;  %v4508_v4 = vrot.slane %v4507_v5, 2  ;;  %v4490_v63 = vmax.f32 %v4488_v47, %v4489_v62 }
 0x5a5   : > { %v4497_v12 = vmax.f32 %v4495_v43, %v4496_v44  ;;  %v4503_v2 = vrot.slane %v4502_v51, 1  ;;  %v4509_v0 = vmax.f32 %v4507_v5, %v4508_v4 }
 0x5a7   : > { %v4527_v36 = vsel %vm3074_vm0, %v4497_v12, %v4490_v63  ;;  %v4510_v1 = vrot.slane %v4509_v0, 1  ;;  %v4504_v48 = vmax.f32 %v4502_v51, %v4503_v2 }
 0x5a8   : > { %4532 = vst.msk [vmem:[#allocation5 + $0x5] sm:$0x3] %vm2535_vm14, %v4527_v36 }
 0x5a9   : > { %v4511_v14 = vmax.f32 %v4509_v0, %v4510_v1 }
 0x5ab   : > { %v4528_v55 = vsel %vm3074_vm0, %v4511_v14, %v4504_v48  ;;  %vm8575_vm0 = vmor %vm4558_vm7, %vm3084_vm8 }
 0x5ac   : > { %4533 = vst.msk [vmem:[#allocation5 + $0x9] sm:$0x3] %vm2535_vm14, %v4528_v55  ;;  %v4563_v31 = vsel %vm8575_vm0, %v5112_v56, %v4562_v35  ;;  %v4593_v54 = vsel %vm8575_vm0, %v5115_v33, %v4592_v60 }
 0x5af   : > { %v4535_v49 = vld [vmem:[#allocation5 + $0x4] sm:$0xf] }
 0x5b0   : > { %v4554_v26 = vrot.slane %v4535_v49, %v7611_v11  ;;  %v4594_v5 = vcombine.low %v8556_v22, %v4535_v49 }
 0x5b2   : > { %v5116_v17 = vcombine.high %v4546_v50, %v4554_v26  ;;  %v4555_v46 = vcombine.high %v4554_v26, %v4554_v26  ;;  %v5113_v15 = vrot.slane %v4554_v26, 9  ;;  %v4601_v12 = vrot.slane %v4594_v5, %v7611_v11 }
 0x5b3   : > { %v4536_v3 = vld [vmem:[#allocation5 + $0x8] sm:$0xf] }
 0x5b4   : > { %v4575_v6 = vrot.slane %v4536_v3, %v7611_v11  ;;  %v4656_v39 = vcombine.low %v4536_v3, %v4537_v23  ;;  %v4566_v38 = vrot.slane %v4555_v46, 7  ;;  %v4621_v61 = vrot.slane %v5116_v17, %v7611_v11  ;;  %v5138_v17 = vld [vmem:[%s8673_s8] ss:$0 sm:$0xff] }
 0x5b5   : > { %v4625_v10 = vcombine.low %v4535_v49, %v4536_v3  ;;  %v5139_v3 = vld [vmem:[%s8673_s8 + $0x1] ss:$0 sm:$0xff] }
 0x5b6   : > { %v4663_v25 = vrot.slane %v4656_v39, %v7611_v11  ;;  %v5118_v53 = vcombine.high %v4575_v6, %v4588_v58  ;;  %v4567_v8 = vsel %vm8575_vm0, %v5113_v15, %v4566_v38  ;;  %v5117_v18 = vcombine.high %v4554_v26, %v4575_v6 }
 0x5b7   : > { %v4603_v21 = vcombine.low %v4563_v31, %v4567_v8  ;;  %v4576_v34 = vcombine.high %v4575_v6, %v4575_v6  ;;  %v5114_v16 = vrot.slane %v4575_v6, 9  ;;  %v4632_v62 = vrot.slane %v4625_v10, %v7611_v11 }
 0x5b8   : > { %v6178_v9 = vpack.i.bf16 %v4621_v61, %v4663_v25  ;;  %v4685_v27 = vrot.slane %v5118_v53, %v7611_v11  ;;  %v4652_v59 = vrot.slane %v5117_v18, %v7611_v11 }
 0x5b9   : > { %v4610_v40 = vrot.slane %v4603_v21, %v7611_v11  ;;  %v4579_v52 = vrot.slane %v4576_v34, 7 }
 0x5ba   : > { %6179 = vrot.lane.b32.xlu1 %v6178_v9, %s8680_s23  ;;  %v4695_v19 = vpack.c.bf16 %v4685_v27, %v4685_v27  ;;  %s6370_s23 = smov [#allocation6]  }
 0x5bb   : > { %v6173_v47 = vpack.i.bf16 %v4610_v40, %v4652_v59  ;;  %v4580_v57 = vsel %vm8575_vm0, %v5114_v16, %v4579_v52  ;;  %s6300_s16 = sshll.u32 %s6370_s23, 4  ;;  %s6301_s16 = int_to_ptr.vmem [resolvable:$false] %s6300_s16 }
 0x5bc   : > { %5328 = vmatmul.mubr.msk.bf16.vlgmr.msra.gmra.mxu0 %vm1598_vm5, %v4695_v19  ;;  %v4667_v30 = vcombine.low %v4580_v57, %v4593_v54  ;;  %v4636_v37 = vcombine.low %v4567_v8, %v4580_v57  ;;  %s6302_s13 = scalar_lea.vmem %s6301_s16, 32  ;;  %p6303_p0 = scmp.lt.s32.totalorder %s4972_s25, %s6301_s16 }
 0x5bd   : > { %6174 = vrot.lane.b32.xlu0 %v6173_v47, %s6362_s29  ;;  %s6296_s29 = scalar_lea.vmem %s4972_s25, 16 }
 0x5be   : > { %v4674_v43 = vrot.slane %v4667_v30, %v7611_v11  ;;  %v4643_v2 = vrot.slane %v4636_v37, %v7611_v11  ;;  %p6297_p11 = scmp.ne.s32.totalorder %s4972_s25, %s6296_s29  ;;  %p6304_p1 = scmp.lt.s32.totalorder %s6302_s13, %s6296_s29 }
 0x5c0   : > { %v6183_v45 = vpack.i.bf16 %v4632_v62, %v4674_v43  ;;  %p6298_p12 = pnand %p6297_p11, %p6459_p5  ;;  %p6305_p2 = por %p6304_p1, %p6303_p0 }
 0x5c2   : > { %6184 = vrot.lane.b32.xlu0 %v6183_v45, %s8687_s28  ;;  %s4959_s28 = scalar_lea.sflag [#allocation7], %s323_s24  ;;  %p6299_p13 = pneg %p6298_p12 }
 0x5c4   : > { %p6306_p3 = pnand %p6305_p2, %p6299_p13 }
 0x62c   : > { %v6180_v63 = vpop.permute.xlu1 %6179 }
 0x62d   : > { %v6182_v1 = vunpack.i.h.bf16 %v6180_v63  ;;  %v6181_v50 = vunpack.i.l.bf16 %v6180_v63 }
 0x62f   : > { %v6175_v44 = vpop.permute.xlu0 %6174 }
 0x630   : > { %v6177_v51 = vunpack.i.h.bf16 %v6175_v44  ;;  %v6176_v4 = vunpack.i.l.bf16 %v6175_v44 }
 0x632   : > { %v4687_v0 = vsel %vm1598_vm5, %v4601_v12, %v6177_v51  ;;  %v4690_v36 = vsel %vm1598_vm5, %v4643_v2, %v6176_v4 }
 0x633   : > { %v4688_v55 = vsel %vm1730_vm12, %v4687_v0, %v6182_v1  ;;  %v4691_v22 = vsel %vm1730_vm12, %v4690_v36, %v6181_v50 }
 0x634   : > { %v6185_v48 = vpop.permute.xlu0 %6184 }
 0x635   : > { %v6187_v14 = vunpack.i.h.bf16 %v6185_v48  ;;  %v6186_v23 = vunpack.i.l.bf16 %v6185_v48 }
 0x637   : > { %v4689_v7 = vsel %vm3430_vm10, %v4688_v55, %v6187_v14  ;;  %v4692_v58 = vsel %vm3430_vm10, %v4691_v22, %v6186_v23 }
 0x638   : > { %v4693_v24 = vpack.c.bf16 %v4689_v7, %v4689_v7  ;;  %v4694_v42 = vpack.c.bf16 %v4692_v58, %v4692_v58 }
 0x63a   : > { %4875 = vmatprep.mubr.bf16.mxu1 %v4694_v42 }
 0x63b   : > { %4876 = vmatmul.mubr.bf16.vlgmr.msra.gmra.mxu1 %v4693_v24 }
 0x67c   : > { %v4917_v49 = vpop.f32.mrf.mxu0 }
 0x67e   : > { %v5329_v56 = vpop.f32.mrf.mxu0 }
 0x680   : > { %v4920_v35 = vpop.f32.mrf.mxu0 }
 0x682   : > { %v5330_v26 = vpop.f32.mrf.mxu0 }
 0x6fb   : > { %v5252_v20 = vpop.f32.mrf.mxu1 }
 0x6fd   : > { %v5253_v29 = vpop.f32.mrf.mxu1 }
 0x6fe   : > { %v5254_v13 = vadd.f32 %v5253_v29, %v5252_v20 }
 0x6ff   : > { %v5255_v46 = vpop.f32.mrf.mxu1 }
 0x700   : > { %v4918_v28 = vadd.f32 %v5254_v13, %v4917_v49 }
 0x701   : > { %v5256_v31 = vpop.f32.mrf.mxu1 }
 0x702   : > { %v4929_v6 = vmul.f32 %v5138_v17, %v4918_v28 }
 0x704   : > { %v4934_v39 = vadd.f32 %v5139_v3, %v4929_v6 }
 0x706   : > { %v4935_v15 = vmax.f32 %v4934_v39, 0.0 }
 0x708   : > { %v4943_v38 = vrot.slane %v4935_v15, %v7611_v11 }
 0x70a   : > { %v4944_v61 = vcombine.high %v4943_v38, %v4943_v38  ;;  %v4947_v33 = vsel %vm2535_vm14, %v4943_v38, -inf }
 0x70c   : > { %v4948_v60 = vsel %vm2535_vm14, %v4944_v61, -inf }
 0x70d   : > { %v4949_v32 = vmax.f32 %v4947_v33, %v4948_v60 }
 0x70f   : > { %v4950_v25 = vsel %vm2535_vm14, %v4949_v32, -inf }
 0x710   : > { %v4951_v53 = vrot.slane %v4950_v25, 4 }
 0x712   : > { %v4952_v8 = vmax.f32 %v4950_v25, %v4951_v53 }
 0x714   : > { %v4953_v18 = vrot.slane %v4952_v8, 2 }
 0x716   : > { %v4954_v41 = vmax.f32 %v4952_v8, %v4953_v18 }
 0x718   : > { %v4955_v21 = vrot.slane %v4954_v41, 1 }
 0x71a   : > { %v4956_v34 = vmax.f32 %v4954_v41, %v4955_v21 }
 0x71c   : > { %4957 = vst.msk [vmem:[%s324_s22] sm:$0x1] %vm2989_vm15, %v4956_v34 }
 0x71d   : > { %6309 = shalt.err (!%p6306_p3)
}
 0x71e   : > { %s6310_s17 = scalar_lea.hbm %s4969_s27, 16  ;;  %s6314_s22 = scalar_lea.hbm %s8674_s9, 32 }
 0x71f   : > { %p6311_p4 = scmp.ne.s32.totalorder %s4969_s27, %s6310_s17  ;;  %p6315_p9 = scmp.lt.s32.totalorder %s4969_s27, %s8674_s9 }
 0x720   : > { %p6316_p10 = scmp.lt.s32.totalorder %s6314_s22, %s6310_s17 }
 0x721   : > { %p6312_p7 = pnand %p6311_p4, %p6459_p5 }
 0x722   : > { %p6317_p11 = por %p6316_p10, %p6315_p9 }
 0x723   : > { %p6313_p8 = pneg %p6312_p7 }
 0x725   : > { %p6318_p12 = pnand %p6317_p11, %p6313_p8 }
 0x727   : > { %6321 = shalt.err (!%p6318_p12)
}
 0x728   : > { %5332 = dma.vmem_to_hbm [thread:$0]  (%p6459_p5), %s4972_s25, 16, %s4969_s27, %s4959_s28  }
 0x729 PF: > { %p5338_p13 = scmp.ge.s32.totalorder %s6356_s12, 2  ;;  %s4983_s29 = sand.u32 1, %s6344_s30  }
 0x72a   : > { %s4984_s23 = scalar_lea.sflag [#allocation7], %s4983_s29 }
 0x72b   : > { %p5335_p0 = pnand %p5338_p13, %p6463_p6 }
 0x72d   : > { %p5336_p1 = pneg %p5335_p0 }
 0x72f   : > { %6339 = dma.done.wait (%p5336_p1), %s4984_s23, 16  }
 0x730   : > { %6341 = vsyncadd (%p5336_p1), %s4984_s23, 4294967280  ;;  %p19_p2 = scmp.ge.s32.totalorder %s6446_s15, 4   ;;  %s8688_s30 = smov %s6348_s10 }
 0x731   : > { %s8689_s10 = smov %s6352_s11  ;;  %s8690_s11 = smov %s6457_s18 }
 0x732   : > { %s8691_s12 = smov %s6446_s15  ;;  %21 = sbr.rel (!%p19_p2) target bundleno = 3 (0x3), region = 99 }
 0x737   :  { %4988 = vsyncpa [#allocation7], 1 }
 0x738   :  { %4990 = vsyncpa [#allocation7 + $0x1], 1 }

</bundles_post_ra>
